<compile_context>
chip_gen: v7x
topology: tpu7x:2x2x1
jax: 0.10.0
libtpu: 0.0.40
codegen_flags: <defaults>
</compile_context>

<pallas_src>
import functools
import numpy as np
import jax
import jax.numpy as jnp
from jax import lax
from jax.experimental import pallas as pl
from jax.experimental.pallas import tpu as pltpu

# ---- model hyper-params (config['recdim'], config['layer'], config['num_neighbors']) ----
D = 32           # latent_dim
NUM_LAYERS = 2   # num_layers
K = 4            # num_neighbors

USER_FEATURE_NUM = 3207
ITEM_FEATURE_NUM = 2094


# ------------------------- fused Pallas kernel -------------------------

def _fused_kernel(nb_ref, bagmat_u_ref, bagmat_i_ref, utab_ref, itab_ref,
                  wu_ref, bu_ref, wi_ref, bi_ref, ws_ref, wa_ref, bl_ref,
                  o_ref, *, mode_offset, B, n_users, n_items):
    f32 = jnp.float32

    # ---- F.embedding_bag(mode='mean') folded into dense MXU matmuls ----
    user_bag = jnp.dot(bagmat_u_ref[...], utab_ref[...], preferred_element_type=f32)
    item_bag = jnp.dot(bagmat_i_ref[...], itab_ref[...], preferred_element_type=f32)

    # ---- user_proj / item_proj ----
    user_init = jnp.dot(user_bag, wu_ref[...], preferred_element_type=f32) + bu_ref[...]
    item_init = jnp.dot(item_bag, wi_ref[...], preferred_element_type=f32) + bi_ref[...]

    # ---- per-level neighbor gathers: one-hot matmuls (MXU), no dynamic gather ----
    levels = []
    start = 0
    for lvl in range(NUM_LAYERS + 1):
        n_rows = B * K ** lvl
        use_item = (mode_offset + lvl) % 2 == 1
        table = item_init if use_item else user_init
        n_nodes = n_items if use_item else n_users
        idx = nb_ref[start:start + n_rows, :]                      # (n_rows, 1) int32
        onehot = (lax.broadcasted_iota(jnp.int32, (n_rows, n_nodes), 1)
                  == idx).astype(f32)                              # (n_rows, n_nodes)
        levels.append(jnp.dot(onehot, table, preferred_element_type=f32))
        start += n_rows

    # ---- 0/1 aggregation matrices: K-child sum as an MXU contraction (hoisted,
    #      built once per distinct parent count and reused across layers) ----
    agg_mats = {}
    for b in range(NUM_LAYERS):
        m = B * K ** b
        if m not in agg_mats:
            row_id = lax.broadcasted_iota(jnp.int32, (m, m * K), 0)
            col_id = lax.broadcasted_iota(jnp.int32, (m, m * K), 1)
            lo = row_id * K
            agg_mats[m] = ((col_id >= lo) & (col_id < lo + K)).astype(f32)

    # ---- GraphSAGE layers, fully unrolled, band-wise (all tiles 8-row aligned) ----
    for i in range(NUM_LAYERS):
        new_levels = []
        for b in range(NUM_LAYERS - i):
            parents = levels[b]                                    # (m, D)
            children = levels[b + 1]                               # (m*K, D)
            m = B * K ** b
            agg = jnp.dot(agg_mats[m], children, preferred_element_type=f32)
            new_levels.append(
                jnp.dot(parents, ws_ref[i], preferred_element_type=f32)
                + jnp.dot(agg, wa_ref[i], preferred_element_type=f32)
                + bl_ref[i])
        levels = new_levels

    o_ref[...] = levels[0]                                         # only (B, D) hits HBM


def make_fused_forward(mode, B, n_users, n_items):
    """Builds the single-call fused forward for a fixed (mode, B)."""
    mode_offset = 0 if mode == "user" else 1
    kernel = functools.partial(_fused_kernel, mode_offset=mode_offset, B=B,
                               n_users=n_users, n_items=n_items)
    vmem = pl.BlockSpec(memory_space=pltpu.MemorySpace.VMEM)       # whole array in VMEM
    return pl.pallas_call(
        kernel,
        out_shape=jax.ShapeDtypeStruct((B, D), jnp.float32),
        in_specs=[vmem] * 12,
        out_specs=vmem,
    )


# ------------------------- host-side (static) preprocessing -------------------------

def build_bag_matrix(idx, seg, counts, n_bags, n_features):
    """Dense bag-mean matrix: embedding_bag(mean) == bagmat @ table.

    The per-node feature indices are fixed model data (loaded at __init__ in
    the torch module), so this is one-time preprocessing, not per-forward work.
    """
    mat = np.zeros((n_bags, n_features), dtype=np.float32)
    np.add.at(mat, (np.asarray(seg), np.asarray(idx)), 1.0)
    mat = mat / np.asarray(counts, dtype=np.float32)[:, None]
    return jnp.asarray(mat)


def fastsage_forward(params, feats, neighbors, mode, bagmat_u, bagmat_i):
    """Mirrors FastSAGEPro.forward(neighbors, offsets, mode) for mode='user'/'item'."""
    # Flatten the neighbor tree into one int32 column vector (level slices are static
    # and start at 8-aligned row offsets).
    nb_all = jnp.concatenate([jnp.asarray(nb, jnp.int32) for nb in neighbors]
                             ).reshape(-1, 1)

    # Pre-transpose / split the SAGE Linear(2D -> D) weights:
    #   ws_t acts on x_self, wa_t on the aggregated neighbors.
    ws_t = jnp.stack([w[:, :D].T for w in params["w_linears"]])    # (L, D, D)
    wa_t = jnp.stack([w[:, D:].T for w in params["w_linears"]])    # (L, D, D)
    bl = jnp.stack([b.reshape(1, D) for b in params["b_linears"]])  # (L, 1, D)

    B = int(neighbors[0].shape[0])
    fwd = make_fused_forward(mode, B, feats["n_users"], feats["n_items"])
    return fwd(nb_all, bagmat_u, bagmat_i,
               params["user_feature_embeddings"], params["item_feature_embeddings"],
               params["user_proj_w"].T, params["user_proj_b"].reshape(1, D),
               params["item_proj_w"].T, params["item_proj_b"].reshape(1, D),
               ws_t, wa_t, bl)


# ------------------------- pure-JAX reference (faithful to torch code) -------------------------

def embedding_bag_mean(table, indices, seg_ids, n_bags, counts):
    gathered = table[indices]
    summed = jax.ops.segment_sum(gathered, seg_ids, num_segments=n_bags)
    return summed / counts[:, None]


def ref_forward(params, feats, neighbors, mode):
    user_bag = embedding_bag_mean(params["user_feature_embeddings"],
                                  feats["user_idx"], feats["user_seg"],
                                  feats["n_users"], feats["user_cnt"])
    item_bag = embedding_bag_mean(params["item_feature_embeddings"],
                                  feats["item_idx"], feats["item_seg"],
                                  feats["n_items"], feats["item_cnt"])
    user_init = user_bag @ params["user_proj_w"].T + params["user_proj_b"]
    item_init = item_bag @ params["item_proj_w"].T + params["item_proj_b"]

    offset = 0 if mode == "user" else 1
    hiddens = []
    for i, nb in enumerate(neighbors):
        tab = item_init if (offset + i) % 2 else user_init
        hiddens.append(tab[nb])
    x = jnp.concatenate(hiddens, axis=0)

    B = neighbors[0].shape[0]
    N = x.shape[0]
    source = np.arange(N)
    target = np.zeros(B, dtype=np.int64)
    begin = 0
    layer_offsets = []
    for layer in range(NUM_LAYERS):
        tt = np.repeat(np.arange(begin, begin + B * K ** layer), K)
        begin += B * K ** layer
        target = np.concatenate([target, tt])
        layer_offsets.insert(0, begin)
    layer_offsets.insert(0, N)

    for i in range(NUM_LAYERS):
        sl = source[:layer_offsets[i]]
        tl = jnp.asarray(target[:layer_offsets[i]])
        sx = x[sl]
        sx = sx.at[:B].set(0.0)
        agg = jax.ops.segment_sum(sx, tl, num_segments=layer_offsets[i + 1])
        w = params["w_linears"][i]
        b = params["b_linears"][i]
        x = jnp.concatenate([x[:layer_offsets[i + 1]], agg], axis=1) @ w.T + b
    return x


# ------------------------- deterministic setup -------------------------

def xavier_uniform(key, shape, gain=1.0):
    fan_out, fan_in = shape[0], shape[1]
    bound = gain * np.sqrt(6.0 / (fan_in + fan_out))
    return jax.random.uniform(key, shape, jnp.float32, -bound, bound)


def build_everything():
    key = jax.random.PRNGKey(0)
    keys = jax.random.split(key, 16)
    gain = np.sqrt(2.0)  # calculate_gain('relu')

    params = {
        "user_feature_embeddings": xavier_uniform(keys[0], (USER_FEATURE_NUM, D)),
        "item_feature_embeddings": xavier_uniform(keys[1], (ITEM_FEATURE_NUM, D)),
        "user_proj_w": xavier_uniform(keys[2], (D, D)),
        "user_proj_b": jax.random.uniform(keys[3], (D,), jnp.float32, -0.1, 0.1),
        "item_proj_w": xavier_uniform(keys[4], (D, D)),
        "item_proj_b": jax.random.uniform(keys[5], (D,), jnp.float32, -0.1, 0.1),
        "w_linears": [
            xavier_uniform(keys[6], (D, 2 * D), gain=gain),   # layer 0
            xavier_uniform(keys[7], (D, 2 * D)),              # last layer
        ],
        "b_linears": [jnp.zeros((D,), jnp.float32), jnp.zeros((D,), jnp.float32)],
    }

    # synthetic ragged per-node feature bags (deterministic), mirroring
    # get_indice_offset on user_features / item_features
    n_users, n_items = 40, 40
    user_lens = np.array([1 + (u % 4) for u in range(n_users)])
    item_lens = np.array([1 + ((i + 1) % 3) for i in range(n_items)])
    user_idx = jax.random.randint(keys[8], (int(user_lens.sum()),), 0, USER_FEATURE_NUM)
    item_idx = jax.random.randint(keys[9], (int(item_lens.sum()),), 0, ITEM_FEATURE_NUM)
    feats = {
        "n_users": n_users,
        "n_items": n_items,
        "user_idx": user_idx,
        "item_idx": item_idx,
        "user_seg": jnp.asarray(np.repeat(np.arange(n_users), user_lens)),
        "item_seg": jnp.asarray(np.repeat(np.arange(n_items), item_lens)),
        "user_cnt": jnp.asarray(user_lens, jnp.float32),
        "item_cnt": jnp.asarray(item_lens, jnp.float32),
    }

    # sampled neighbor trees (mode='user'): level 0 users, level 1 items, level 2 users
    B = 8
    neighbors = [
        jax.random.randint(keys[10], (B,), 0, n_users),
        jax.random.randint(keys[11], (B * K,), 0, n_items),
        jax.random.randint(keys[12], (B * K * K,), 0, n_users),
    ]
    return params, feats, neighbors


if __name__ == "__main__":
    params, feats, neighbors = build_everything()

    # one-time static preprocessing of the fixed feature-index lists
    bagmat_u = build_bag_matrix(feats["user_idx"], feats["user_seg"], feats["user_cnt"],
                                feats["n_users"], USER_FEATURE_NUM)
    bagmat_i = build_bag_matrix(feats["item_idx"], feats["item_seg"], feats["item_cnt"],
                                feats["n_items"], ITEM_FEATURE_NUM)

    out = fastsage_forward(params, feats, neighbors, "user", bagmat_u, bagmat_i)
    out = jax.block_until_ready(out)

    ref = jax.block_until_ready(ref_forward(params, feats, neighbors, "user"))
    np.testing.assert_allclose(np.asarray(out), np.asarray(ref), rtol=1e-4, atol=1e-4)

    # TODO(synk): multiprocessing producer/consumer training loop (stageOne),
    # neighbor sampling, BPR loss and the Adam step are host-side orchestration,
    # not kernel work — omitted.
    print("KERNEL_OK")
</pallas_src>

<mosaic_0001>
module attributes {stable_mosaic.version = 11 : i64} {
  func.func @_fused_kernel(%arg0: memref<168x1xi32, #tpu.memory_space<vmem>>, %arg1: memref<40x3207xf32, #tpu.memory_space<vmem>>, %arg2: memref<40x2094xf32, #tpu.memory_space<vmem>>, %arg3: memref<3207x32xf32, #tpu.memory_space<vmem>>, %arg4: memref<2094x32xf32, #tpu.memory_space<vmem>>, %arg5: memref<32x32xf32, #tpu.memory_space<vmem>>, %arg6: memref<1x32xf32, #tpu.memory_space<vmem>>, %arg7: memref<32x32xf32, #tpu.memory_space<vmem>>, %arg8: memref<1x32xf32, #tpu.memory_space<vmem>>, %arg9: memref<2x32x32xf32, #tpu.memory_space<vmem>>, %arg10: memref<2x32x32xf32, #tpu.memory_space<vmem>>, %arg11: memref<2x1x32xf32, #tpu.memory_space<vmem>>, %arg12: memref<8x32xf32, #tpu.memory_space<vmem>>) attributes {dimension_semantics = [], scalar_prefetch = 0 : i64, scratch_operands = 0 : i64, tpu.core_type = #tpu.core_type<tc>} {
    %c0 = arith.constant 0 : index
    %c0_0 = arith.constant 0 : index
    %0 = vector.load %arg1[%c0, %c0_0] : memref<40x3207xf32, #tpu.memory_space<vmem>>, vector<40x3207xf32>
    %c0_1 = arith.constant 0 : index
    %c0_2 = arith.constant 0 : index
    %1 = vector.load %arg3[%c0_1, %c0_2] : memref<3207x32xf32, #tpu.memory_space<vmem>>, vector<3207x32xf32>
    %cst = arith.constant dense<0.000000e+00> : vector<40x32xf32>
    %2 = tpu.matmul %0, %1, %cst {dimension_numbers = #tpu.dot_dimension_numbers<[1], [0], [0], [1], [0, 0, 1, 1], [], []>} : vector<40x3207xf32>, vector<3207x32xf32>, vector<40x32xf32> -> vector<40x32xf32>
    %c0_3 = arith.constant 0 : index
    %c0_4 = arith.constant 0 : index
    %3 = vector.load %arg2[%c0_3, %c0_4] : memref<40x2094xf32, #tpu.memory_space<vmem>>, vector<40x2094xf32>
    %c0_5 = arith.constant 0 : index
    %c0_6 = arith.constant 0 : index
    %4 = vector.load %arg4[%c0_5, %c0_6] : memref<2094x32xf32, #tpu.memory_space<vmem>>, vector<2094x32xf32>
    %cst_7 = arith.constant dense<0.000000e+00> : vector<40x32xf32>
    %5 = tpu.matmul %3, %4, %cst_7 {dimension_numbers = #tpu.dot_dimension_numbers<[1], [0], [0], [1], [0, 0, 1, 1], [], []>} : vector<40x2094xf32>, vector<2094x32xf32>, vector<40x32xf32> -> vector<40x32xf32>
    %c0_8 = arith.constant 0 : index
    %c0_9 = arith.constant 0 : index
    %6 = vector.load %arg5[%c0_8, %c0_9] : memref<32x32xf32, #tpu.memory_space<vmem>>, vector<32x32xf32>
    %cst_10 = arith.constant dense<0.000000e+00> : vector<40x32xf32>
    %7 = tpu.matmul %2, %6, %cst_10 {dimension_numbers = #tpu.dot_dimension_numbers<[1], [0], [0], [1], [0, 0, 1, 1], [], []>} : vector<40x32xf32>, vector<32x32xf32>, vector<40x32xf32> -> vector<40x32xf32>
    %c0_11 = arith.constant 0 : index
    %c0_12 = arith.constant 0 : index
    %8 = vector.load %arg6[%c0_11, %c0_12] : memref<1x32xf32, #tpu.memory_space<vmem>>, vector<1x32xf32>
    %9 = vector.broadcast %8 : vector<1x32xf32> to vector<40x32xf32>
    %10 = arith.addf %7, %9 : vector<40x32xf32>
    %c0_13 = arith.constant 0 : index
    %c0_14 = arith.constant 0 : index
    %11 = vector.load %arg7[%c0_13, %c0_14] : memref<32x32xf32, #tpu.memory_space<vmem>>, vector<32x32xf32>
    %cst_15 = arith.constant dense<0.000000e+00> : vector<40x32xf32>
    %12 = tpu.matmul %5, %11, %cst_15 {dimension_numbers = #tpu.dot_dimension_numbers<[1], [0], [0], [1], [0, 0, 1, 1], [], []>} : vector<40x32xf32>, vector<32x32xf32>, vector<40x32xf32> -> vector<40x32xf32>
    %c0_16 = arith.constant 0 : index
    %c0_17 = arith.constant 0 : index
    %13 = vector.load %arg8[%c0_16, %c0_17] : memref<1x32xf32, #tpu.memory_space<vmem>>, vector<1x32xf32>
    %14 = vector.broadcast %13 : vector<1x32xf32> to vector<40x32xf32>
    %15 = arith.addf %12, %14 : vector<40x32xf32>
    %c0_18 = arith.constant 0 : index
    %c0_19 = arith.constant 0 : index
    %16 = vector.load %arg0[%c0_18, %c0_19] : memref<168x1xi32, #tpu.memory_space<vmem>>, vector<8x1xi32>
    %17 = tpu.iota {dimensions = array<i32: 1>} : vector<8x40xi32>
    %18 = vector.broadcast %16 : vector<8x1xi32> to vector<8x40xi32>
    %19 = arith.cmpi eq, %17, %18 : vector<8x40xi32>
    %20 = arith.extui %19 : vector<8x40xi1> to vector<8x40xi32>
    %21 = arith.sitofp %20 : vector<8x40xi32> to vector<8x40xf32>
    %cst_20 = arith.constant dense<0.000000e+00> : vector<8x32xf32>
    %22 = tpu.matmul %21, %10, %cst_20 {dimension_numbers = #tpu.dot_dimension_numbers<[1], [0], [0], [1], [0, 0, 1, 1], [], []>} : vector<8x40xf32>, vector<40x32xf32>, vector<8x32xf32> -> vector<8x32xf32>
    %c8 = arith.constant 8 : index
    %c0_21 = arith.constant 0 : index
    %23 = vector.load %arg0[%c8, %c0_21] : memref<168x1xi32, #tpu.memory_space<vmem>>, vector<32x1xi32>
    %24 = tpu.iota {dimensions = array<i32: 1>} : vector<32x40xi32>
    %25 = vector.broadcast %23 : vector<32x1xi32> to vector<32x40xi32>
    %26 = arith.cmpi eq, %24, %25 : vector<32x40xi32>
    %27 = arith.extui %26 : vector<32x40xi1> to vector<32x40xi32>
    %28 = arith.sitofp %27 : vector<32x40xi32> to vector<32x40xf32>
    %cst_22 = arith.constant dense<0.000000e+00> : vector<32x32xf32>
    %29 = tpu.matmul %28, %15, %cst_22 {dimension_numbers = #tpu.dot_dimension_numbers<[1], [0], [0], [1], [0, 0, 1, 1], [], []>} : vector<32x40xf32>, vector<40x32xf32>, vector<32x32xf32> -> vector<32x32xf32>
    %c40 = arith.constant 40 : index
    %c0_23 = arith.constant 0 : index
    %30 = vector.load %arg0[%c40, %c0_23] : memref<168x1xi32, #tpu.memory_space<vmem>>, vector<128x1xi32>
    %31 = tpu.iota {dimensions = array<i32: 1>} : vector<128x40xi32>
    %32 = vector.broadcast %30 : vector<128x1xi32> to vector<128x40xi32>
    %33 = arith.cmpi eq, %31, %32 : vector<128x40xi32>
    %34 = arith.extui %33 : vector<128x40xi1> to vector<128x40xi32>
    %35 = arith.sitofp %34 : vector<128x40xi32> to vector<128x40xf32>
    %cst_24 = arith.constant dense<0.000000e+00> : vector<128x32xf32>
    %36 = tpu.matmul %35, %10, %cst_24 {dimension_numbers = #tpu.dot_dimension_numbers<[1], [0], [0], [1], [0, 0, 1, 1], [], []>} : vector<128x40xf32>, vector<40x32xf32>, vector<128x32xf32> -> vector<128x32xf32>
    %37 = tpu.iota {dimensions = array<i32: 0>} : vector<8x32xi32>
    %38 = tpu.iota {dimensions = array<i32: 1>} : vector<8x32xi32>
    %c4_i32 = arith.constant 4 : i32
    %39 = vector.broadcast %c4_i32 : i32 to vector<8x32xi32>
    %40 = arith.muli %37, %39 : vector<8x32xi32>
    %41 = arith.cmpi sge, %38, %40 : vector<8x32xi32>
    %c4_i32_25 = arith.constant 4 : i32
    %42 = vector.broadcast %c4_i32_25 : i32 to vector<8x32xi32>
    %43 = arith.addi %40, %42 : vector<8x32xi32>
    %44 = arith.cmpi slt, %38, %43 : vector<8x32xi32>
    %45 = arith.andi %41, %44 : vector<8x32xi1>
    %46 = arith.extui %45 : vector<8x32xi1> to vector<8x32xi32>
    %47 = arith.sitofp %46 : vector<8x32xi32> to vector<8x32xf32>
    %48 = tpu.iota {dimensions = array<i32: 0>} : vector<32x128xi32>
    %49 = tpu.iota {dimensions = array<i32: 1>} : vector<32x128xi32>
    %c4_i32_26 = arith.constant 4 : i32
    %50 = vector.broadcast %c4_i32_26 : i32 to vector<32x128xi32>
    %51 = arith.muli %48, %50 : vector<32x128xi32>
    %52 = arith.cmpi sge, %49, %51 : vector<32x128xi32>
    %c4_i32_27 = arith.constant 4 : i32
    %53 = vector.broadcast %c4_i32_27 : i32 to vector<32x128xi32>
    %54 = arith.addi %51, %53 : vector<32x128xi32>
    %55 = arith.cmpi slt, %49, %54 : vector<32x128xi32>
    %56 = arith.andi %52, %55 : vector<32x128xi1>
    %57 = arith.extui %56 : vector<32x128xi1> to vector<32x128xi32>
    %58 = arith.sitofp %57 : vector<32x128xi32> to vector<32x128xf32>
    %cst_28 = arith.constant dense<0.000000e+00> : vector<8x32xf32>
    %59 = tpu.matmul %47, %29, %cst_28 {dimension_numbers = #tpu.dot_dimension_numbers<[1], [0], [0], [1], [0, 0, 1, 1], [], []>} : vector<8x32xf32>, vector<32x32xf32>, vector<8x32xf32> -> vector<8x32xf32>
    %c0_29 = arith.constant 0 : index
    %c0_30 = arith.constant 0 : index
    %c0_31 = arith.constant 0 : index
    %60 = vector.load %arg9[%c0_29, %c0_30, %c0_31] : memref<2x32x32xf32, #tpu.memory_space<vmem>>, vector<1x32x32xf32>
    %61 = vector.shape_cast %60 : vector<1x32x32xf32> to vector<32x32xf32>
    %cst_32 = arith.constant dense<0.000000e+00> : vector<8x32xf32>
    %62 = tpu.matmul %22, %61, %cst_32 {dimension_numbers = #tpu.dot_dimension_numbers<[1], [0], [0], [1], [0, 0, 1, 1], [], []>} : vector<8x32xf32>, vector<32x32xf32>, vector<8x32xf32> -> vector<8x32xf32>
    %c0_33 = arith.constant 0 : index
    %c0_34 = arith.constant 0 : index
    %c0_35 = arith.constant 0 : index
    %63 = vector.load %arg10[%c0_33, %c0_34, %c0_35] : memref<2x32x32xf32, #tpu.memory_space<vmem>>, vector<1x32x32xf32>
    %64 = vector.shape_cast %63 : vector<1x32x32xf32> to vector<32x32xf32>
    %cst_36 = arith.constant dense<0.000000e+00> : vector<8x32xf32>
    %65 = tpu.matmul %59, %64, %cst_36 {dimension_numbers = #tpu.dot_dimension_numbers<[1], [0], [0], [1], [0, 0, 1, 1], [], []>} : vector<8x32xf32>, vector<32x32xf32>, vector<8x32xf32> -> vector<8x32xf32>
    %66 = arith.addf %62, %65 : vector<8x32xf32>
    %c0_37 = arith.constant 0 : index
    %c0_38 = arith.constant 0 : index
    %c0_39 = arith.constant 0 : index
    %67 = vector.load %arg11[%c0_37, %c0_38, %c0_39] : memref<2x1x32xf32, #tpu.memory_space<vmem>>, vector<1x1x32xf32>
    %68 = vector.shape_cast %67 : vector<1x1x32xf32> to vector<1x32xf32>
    %69 = vector.broadcast %68 : vector<1x32xf32> to vector<8x32xf32>
    %70 = arith.addf %66, %69 : vector<8x32xf32>
    %cst_40 = arith.constant dense<0.000000e+00> : vector<32x32xf32>
    %71 = tpu.matmul %58, %36, %cst_40 {dimension_numbers = #tpu.dot_dimension_numbers<[1], [0], [0], [1], [0, 0, 1, 1], [], []>} : vector<32x128xf32>, vector<128x32xf32>, vector<32x32xf32> -> vector<32x32xf32>
    %c0_41 = arith.constant 0 : index
    %c0_42 = arith.constant 0 : index
    %c0_43 = arith.constant 0 : index
    %72 = vector.load %arg9[%c0_41, %c0_42, %c0_43] : memref<2x32x32xf32, #tpu.memory_space<vmem>>, vector<1x32x32xf32>
    %73 = vector.shape_cast %72 : vector<1x32x32xf32> to vector<32x32xf32>
    %cst_44 = arith.constant dense<0.000000e+00> : vector<32x32xf32>
    %74 = tpu.matmul %29, %73, %cst_44 {dimension_numbers = #tpu.dot_dimension_numbers<[1], [0], [0], [1], [0, 0, 1, 1], [], []>} : vector<32x32xf32>, vector<32x32xf32>, vector<32x32xf32> -> vector<32x32xf32>
    %c0_45 = arith.constant 0 : index
    %c0_46 = arith.constant 0 : index
    %c0_47 = arith.constant 0 : index
    %75 = vector.load %arg10[%c0_45, %c0_46, %c0_47] : memref<2x32x32xf32, #tpu.memory_space<vmem>>, vector<1x32x32xf32>
    %76 = vector.shape_cast %75 : vector<1x32x32xf32> to vector<32x32xf32>
    %cst_48 = arith.constant dense<0.000000e+00> : vector<32x32xf32>
    %77 = tpu.matmul %71, %76, %cst_48 {dimension_numbers = #tpu.dot_dimension_numbers<[1], [0], [0], [1], [0, 0, 1, 1], [], []>} : vector<32x32xf32>, vector<32x32xf32>, vector<32x32xf32> -> vector<32x32xf32>
    %78 = arith.addf %74, %77 : vector<32x32xf32>
    %c0_49 = arith.constant 0 : index
    %c0_50 = arith.constant 0 : index
    %c0_51 = arith.constant 0 : index
    %79 = vector.load %arg11[%c0_49, %c0_50, %c0_51] : memref<2x1x32xf32, #tpu.memory_space<vmem>>, vector<1x1x32xf32>
    %80 = vector.shape_cast %79 : vector<1x1x32xf32> to vector<1x32xf32>
    %81 = vector.broadcast %80 : vector<1x32xf32> to vector<32x32xf32>
    %82 = arith.addf %78, %81 : vector<32x32xf32>
    %cst_52 = arith.constant dense<0.000000e+00> : vector<8x32xf32>
    %83 = tpu.matmul %47, %82, %cst_52 {dimension_numbers = #tpu.dot_dimension_numbers<[1], [0], [0], [1], [0, 0, 1, 1], [], []>} : vector<8x32xf32>, vector<32x32xf32>, vector<8x32xf32> -> vector<8x32xf32>
    %c1 = arith.constant 1 : index
    %c0_53 = arith.constant 0 : index
    %c0_54 = arith.constant 0 : index
    %84 = vector.load %arg9[%c1, %c0_53, %c0_54] : memref<2x32x32xf32, #tpu.memory_space<vmem>>, vector<1x32x32xf32>
    %85 = vector.shape_cast %84 : vector<1x32x32xf32> to vector<32x32xf32>
    %cst_55 = arith.constant dense<0.000000e+00> : vector<8x32xf32>
    %86 = tpu.matmul %70, %85, %cst_55 {dimension_numbers = #tpu.dot_dimension_numbers<[1], [0], [0], [1], [0, 0, 1, 1], [], []>} : vector<8x32xf32>, vector<32x32xf32>, vector<8x32xf32> -> vector<8x32xf32>
    %c1_56 = arith.constant 1 : index
    %c0_57 = arith.constant 0 : index
    %c0_58 = arith.constant 0 : index
    %87 = vector.load %arg10[%c1_56, %c0_57, %c0_58] : memref<2x32x32xf32, #tpu.memory_space<vmem>>, vector<1x32x32xf32>
    %88 = vector.shape_cast %87 : vector<1x32x32xf32> to vector<32x32xf32>
    %cst_59 = arith.constant dense<0.000000e+00> : vector<8x32xf32>
    %89 = tpu.matmul %83, %88, %cst_59 {dimension_numbers = #tpu.dot_dimension_numbers<[1], [0], [0], [1], [0, 0, 1, 1], [], []>} : vector<8x32xf32>, vector<32x32xf32>, vector<8x32xf32> -> vector<8x32xf32>
    %90 = arith.addf %86, %89 : vector<8x32xf32>
    %c1_60 = arith.constant 1 : index
    %c0_61 = arith.constant 0 : index
    %c0_62 = arith.constant 0 : index
    %91 = vector.load %arg11[%c1_60, %c0_61, %c0_62] : memref<2x1x32xf32, #tpu.memory_space<vmem>>, vector<1x1x32xf32>
    %92 = vector.shape_cast %91 : vector<1x1x32xf32> to vector<1x32xf32>
    %93 = vector.broadcast %92 : vector<1x32xf32> to vector<8x32xf32>
    %94 = arith.addf %90, %93 : vector<8x32xf32>
    %c0_63 = arith.constant 0 : index
    %c0_64 = arith.constant 0 : index
    %95 = vector.load %arg12[%c0_63, %c0_64] : memref<8x32xf32, #tpu.memory_space<vmem>>, vector<8x32xf32>
    tpu.vector_store %arg12[%c0_63, %c0_64], %94 {strides = array<i32>} : memref<8x32xf32, #tpu.memory_space<vmem>>, vector<8x32xf32>,
    return
  }
}

</mosaic_0001>

<bundles_post_ra>
// kernel: tpu_custom_call.1
= control target key start
LH: loop header
LB: loop body
LE: loop exit
PB: predicated region body
PF: predicated region fallthrough
CT: control target
= control target key end

     0   :  { %vm573_vm0 = vcmask 56320   ;;  %vm589_vm1 = vcmask 1046528   ;;  %s9890_s0 = inlined_call_operand.vmem [shape: s32[168,1], index: 0, kind: input, shape index: {}]   ;;  %s9891_s1 = inlined_call_operand.vmem [shape: f32[40,3207], index: 1, kind: input, shape index: {}]   ;;  %s9892_s2 = inlined_call_operand.vmem [shape: f32[40,2094], index: 2, kind: input, shape index: {}]   ;;  %s9893_s3 = inlined_call_operand.vmem [shape: f32[3207,32], index: 3, kind: input, shape index: {}]   ;;  %s9894_s4 = inlined_call_operand.vmem [shape: f32[2094,32], index: 4, kind: input, shape index: {}]   ;;  %s9895_s5 = inlined_call_operand.vmem [shape: f32[32,32], index: 5, kind: input, shape index: {}]   ;;  %s9896_s6 = inlined_call_operand.vmem [shape: f32[1,32], index: 6, kind: input, shape index: {}]   ;;  %s9897_s7 = inlined_call_operand.vmem [shape: f32[32,32], index: 7, kind: input, shape index: {}]   ;;  %s9898_s8 = inlined_call_operand.vmem [shape: f32[1,32], index: 8, kind: input, shape index: {}]   ;;  %s9899_s9 = inlined_call_operand.vmem [shape: f32[2,32,32], index: 9, kind: input, shape index: {}]   ;;  %s9900_s10 = inlined_call_operand.vmem [shape: f32[2,32,32], index: 10, kind: input, shape index: {}]   ;;  %s9901_s11 = inlined_call_operand.vmem [shape: f32[2,1,32], index: 11, kind: input, shape index: {}]   ;;  %s9902_s12 = inlined_call_operand.hbm [shape: f32[8,32], index: 12, kind: output, shape index: {}]  }
   0x1   :  { %v188_v0 = vld [vmem:[%s9893_s3 + $0x80] sm:$0xff]  ;;  %v189_v1 = vld [vmem:[%s9893_s3 + $0x88] sm:$0xff]  ;;  %v190_v11 = vld [vmem:[%s9893_s3 + $0x90] sm:$0xff] }
   0x2   :  { %v220_v2 = vld [vmem:[%s9893_s3 + $0x180] sm:$0xff]  ;;  %v5925_v3 = vpack.c.bf16 %v189_v1, %v188_v0  ;;  %v221_v4 = vld [vmem:[%s9893_s3 + $0x188] sm:$0xff]  ;;  %v191_v13 = vld [vmem:[%s9893_s3 + $0x98] sm:$0xff] }
   0x3   :  { %v172_v5 = vld [vmem:[%s9893_s3] sm:$0xff]  ;;  %v173_v6 = vld [vmem:[%s9893_s3 + $0x8] sm:$0xff]  ;;  %v5957_v7 = vpack.c.bf16 %v221_v4, %v220_v2  ;;  %v222_v14 = vld [vmem:[%s9893_s3 + $0x190] sm:$0xff]  ;;  %v5929_v16 = vpack.c.bf16 %v191_v13, %v190_v11 }
   0x4   :  { %v5927_v8 = vpack.c.bf16 %v173_v6, %v172_v5  ;;  %v204_v9 = vld [vmem:[%s9893_s3 + $0x100] sm:$0xff]  ;;  %v205_v10 = vld [vmem:[%s9893_s3 + $0x108] sm:$0xff]  ;;  %5926 = vmatprep.subr.bf16.mxu0 %v5925_v3  ;;  %v223_v15 = vld [vmem:[%s9893_s3 + $0x198] sm:$0xff] }
   0x5   :  { %v5959_v12 = vpack.c.bf16 %v205_v10, %v204_v9  ;;  %5958 = vmatprep.subr.bf16.mxu1 %v5957_v7  ;;  %v5961_v17 = vpack.c.bf16 %v223_v15, %v222_v14  ;;  %v174_v18 = vld [vmem:[%s9893_s3 + $0x10] sm:$0xff]  ;;  %v175_v19 = vld [vmem:[%s9893_s3 + $0x18] sm:$0xff]  ;;  %v192_v23 = vld [vmem:[%s9893_s3 + $0xa0] sm:$0xff] }
   0x6   :  { %5928 = vmatpush3.bf16.msra.mxu0 %v5927_v8  ;;  %v206_v20 = vld [vmem:[%s9893_s3 + $0x110] sm:$0xff]  ;;  %v5931_v21 = vpack.c.bf16 %v175_v19, %v174_v18  ;;  %v207_v22 = vld [vmem:[%s9893_s3 + $0x118] sm:$0xff]  ;;  %v193_v24 = vld [vmem:[%s9893_s3 + $0xa8] sm:$0xff] }
   0x7   :  { %5960 = vmatpush3.bf16.msra.mxu1 %v5959_v12  ;;  %5930 = vmatprep.subr.bf16.mxu0 %v5929_v16  ;;  %v5963_v25 = vpack.c.bf16 %v207_v22, %v206_v20  ;;  %v5933_v26 = vpack.c.bf16 %v193_v24, %v192_v23  ;;  %v224_v27 = vld [vmem:[%s9893_s3 + $0x1a0] sm:$0xff]  ;;  %v225_v28 = vld [vmem:[%s9893_s3 + $0x1a8] sm:$0xff]  ;;  %v194_v35 = vld [vmem:[%s9893_s3 + $0xb0] sm:$0xff] }
   0x8   :  { %5962 = vmatprep.subr.bf16.mxu1 %v5961_v17  ;;  %v176_v29 = vld [vmem:[%s9893_s3 + $0x20] sm:$0xff]  ;;  %v5965_v30 = vpack.c.bf16 %v225_v28, %v224_v27  ;;  %v177_v31 = vld [vmem:[%s9893_s3 + $0x28] sm:$0xff]  ;;  %v195_v36 = vld [vmem:[%s9893_s3 + $0xb8] sm:$0xff] }
   0x9   :  { %v208_v32 = vld [vmem:[%s9893_s3 + $0x120] sm:$0xff]  ;;  %v209_v33 = vld [vmem:[%s9893_s3 + $0x128] sm:$0xff]  ;;  %v5935_v34 = vpack.c.bf16 %v177_v31, %v176_v29  ;;  %v226_v37 = vld [vmem:[%s9893_s3 + $0x1b0] sm:$0xff]  ;;  %v5937_v39 = vpack.c.bf16 %v195_v36, %v194_v35 }
   0xa   :  { %5932 = vmatpush3.bf16.msra.mxu0 %v5931_v21  ;;  %v5967_v38 = vpack.c.bf16 %v209_v33, %v208_v32  ;;  %v227_v40 = vld [vmem:[%s9893_s3 + $0x1b8] sm:$0xff]  ;;  %v178_v41 = vld [vmem:[%s9893_s3 + $0x30] sm:$0xff]  ;;  %v196_v46 = vld [vmem:[%s9893_s3 + $0xc0] sm:$0xff] }
   0xb   :  { %5964 = vmatpush3.bf16.msra.mxu1 %v5963_v25  ;;  %5934 = vmatprep.subr.bf16.mxu0 %v5933_v26  ;;  %v179_v42 = vld [vmem:[%s9893_s3 + $0x38] sm:$0xff]  ;;  %v5969_v43 = vpack.c.bf16 %v227_v40, %v226_v37  ;;  %v210_v44 = vld [vmem:[%s9893_s3 + $0x130] sm:$0xff]  ;;  %v197_v47 = vld [vmem:[%s9893_s3 + $0xc8] sm:$0xff] }
   0xc   :  { %5966 = vmatprep.subr.bf16.mxu1 %v5965_v30  ;;  %v211_v45 = vld [vmem:[%s9893_s3 + $0x138] sm:$0xff]  ;;  %v228_v48 = vld [vmem:[%s9893_s3 + $0x1c0] sm:$0xff]  ;;  %v229_v49 = vld [vmem:[%s9893_s3 + $0x1c8] sm:$0xff]  ;;  %v5939_v50 = vpack.c.bf16 %v179_v42, %v178_v41  ;;  %v5941_v52 = vpack.c.bf16 %v197_v47, %v196_v46 }
   0xd   :  { %v5971_v51 = vpack.c.bf16 %v211_v45, %v210_v44  ;;  %v180_v53 = vld [vmem:[%s9893_s3 + $0x40] sm:$0xff]  ;;  %v181_v54 = vld [vmem:[%s9893_s3 + $0x48] sm:$0xff]  ;;  %v5973_v56 = vpack.c.bf16 %v229_v49, %v228_v48  ;;  %v198_v58 = vld [vmem:[%s9893_s3 + $0xd0] sm:$0xff] }
   0xe   :  { %5936 = vmatpush3.bf16.msra.mxu0 %v5935_v34  ;;  %v212_v55 = vld [vmem:[%s9893_s3 + $0x140] sm:$0xff]  ;;  %v213_v57 = vld [vmem:[%s9893_s3 + $0x148] sm:$0xff]  ;;  %v199_v59 = vld [vmem:[%s9893_s3 + $0xd8] sm:$0xff]  ;;  %v5943_v62 = vpack.c.bf16 %v181_v54, %v180_v53 }
   0xf   :  { %5968 = vmatpush3.bf16.msra.mxu1 %v5967_v38  ;;  %5938 = vmatprep.subr.bf16.mxu0 %v5937_v39  ;;  %v230_v60 = vld [vmem:[%s9893_s3 + $0x1d0] sm:$0xff]  ;;  %v231_v61 = vld [vmem:[%s9893_s3 + $0x1d8] sm:$0xff]  ;;  %v5975_v63 = vpack.c.bf16 %v213_v57, %v212_v55  ;;  %v5945_v0 = vpack.c.bf16 %v199_v59, %v198_v58  ;;  %v200_v6 = vld [vmem:[%s9893_s3 + $0xe0] sm:$0xff] }
  0x10   :  { %5970 = vmatprep.subr.bf16.mxu1 %v5969_v43  ;;  %v182_v1 = vld [vmem:[%s9893_s3 + $0x50] sm:$0xff]  ;;  %v183_v2 = vld [vmem:[%s9893_s3 + $0x58] sm:$0xff]  ;;  %v5977_v4 = vpack.c.bf16 %v231_v61, %v230_v60  ;;  %v201_v7 = vld [vmem:[%s9893_s3 + $0xe8] sm:$0xff] }
  0x11   :  { %v214_v3 = vld [vmem:[%s9893_s3 + $0x150] sm:$0xff]  ;;  %v215_v5 = vld [vmem:[%s9893_s3 + $0x158] sm:$0xff]  ;;  %v232_v8 = vld [vmem:[%s9893_s3 + $0x1e0] sm:$0xff]  ;;  %v5947_v10 = vpack.c.bf16 %v183_v2, %v182_v1  ;;  %v5949_v14 = vpack.c.bf16 %v201_v7, %v200_v6 }
  0x12   :  { %5940 = vmatpush3.bf16.msra.mxu0 %v5939_v50  ;;  %v233_v9 = vld [vmem:[%s9893_s3 + $0x1e8] sm:$0xff]  ;;  %v184_v11 = vld [vmem:[%s9893_s3 + $0x60] sm:$0xff]  ;;  %v5979_v13 = vpack.c.bf16 %v215_v5, %v214_v3  ;;  %v45_v17 = vld [vmem:[%s9891_s1 + $0x18] sm:$0xff] }
  0x13   :  { %5972 = vmatpush3.bf16.msra.mxu1 %v5971_v51  ;;  %5942 = vmatprep.subr.bf16.mxu0 %v5941_v52  ;;  %v185_v12 = vld [vmem:[%s9893_s3 + $0x68] sm:$0xff]  ;;  %v216_v15 = vld [vmem:[%s9893_s3 + $0x160] sm:$0xff]  ;;  %v5981_v18 = vpack.c.bf16 %v233_v9, %v232_v8  ;;  %v202_v20 = vld [vmem:[%s9893_s3 + $0xf0] sm:$0xff] }
  0x14   :  { %5974 = vmatprep.subr.bf16.mxu1 %v5973_v56  ;;  %v43_v16 = vld [vmem:[%s9891_s1 + $0x8] sm:$0xff]  ;;  %v203_v21 = vld [vmem:[%s9893_s3 + $0xf8] sm:$0xff]  ;;  %v234_v22 = vld [vmem:[%s9893_s3 + $0x1f0] sm:$0xff]  ;;  %747 = vmatprep.mubr.f32.mxu1 %v45_v17  ;;  %v5951_v24 = vpack.c.bf16 %v185_v12, %v184_v11 }
  0x15   :  { %v217_v19 = vld [vmem:[%s9893_s3 + $0x168] sm:$0xff]  ;;  %657 = vmatprep.mubr.f32.mxu0 %v43_v16  ;;  %v235_v23 = vld [vmem:[%s9893_s3 + $0x1f8] sm:$0xff]  ;;  %v5953_v26 = vpack.c.bf16 %v203_v21, %v202_v20  ;;  %v186_v27 = vld [vmem:[%s9893_s3 + $0x70] sm:$0xff] }
  0x16   :  { %5944 = vmatpush3.bf16.msra.mxu0 %v5943_v62  ;;  %v5983_v25 = vpack.c.bf16 %v217_v19, %v216_v15  ;;  %v187_v28 = vld [vmem:[%s9893_s3 + $0x78] sm:$0xff]  ;;  %v218_v29 = vld [vmem:[%s9893_s3 + $0x170] sm:$0xff]  ;;  %v5985_v30 = vpack.c.bf16 %v235_v23, %v234_v22  ;;  %v252_v32 = vld [vmem:[%s9893_s3 + $0x280] sm:$0xff] }
  0x17   :  { %5976 = vmatpush3.bf16.msra.mxu1 %v5975_v63  ;;  %5946 = vmatprep.subr.bf16.mxu0 %v5945_v0  ;;  %v219_v31 = vld [vmem:[%s9893_s3 + $0x178] sm:$0xff]  ;;  %v253_v33 = vld [vmem:[%s9893_s3 + $0x288] sm:$0xff]  ;;  %v284_v34 = vld [vmem:[%s9893_s3 + $0x380] sm:$0xff]  ;;  %v5955_v36 = vpack.c.bf16 %v187_v28, %v186_v27 }
  0x18   :  { %5978 = vmatprep.subr.bf16.mxu1 %v5977_v4  ;;  %v285_v35 = vld [vmem:[%s9893_s3 + $0x388] sm:$0xff]  ;;  %v5987_v37 = vpack.c.bf16 %v219_v31, %v218_v29  ;;  %v5989_v38 = vpack.c.bf16 %v253_v33, %v252_v32  ;;  %v236_v39 = vld [vmem:[%s9893_s3 + $0x200] sm:$0xff]  ;;  %v254_v44 = vld [vmem:[%s9893_s3 + $0x290] sm:$0xff] }
  0x19   :  { %v237_v40 = vld [vmem:[%s9893_s3 + $0x208] sm:$0xff]  ;;  %v268_v41 = vld [vmem:[%s9893_s3 + $0x300] sm:$0xff]  ;;  %v6021_v42 = vpack.c.bf16 %v285_v35, %v284_v34  ;;  %v255_v45 = vld [vmem:[%s9893_s3 + $0x298] sm:$0xff] }
  0x1a   :  { %5948 = vmatpush3.bf16.msra.mxu0 %v5947_v10  ;;  %v269_v43 = vld [vmem:[%s9893_s3 + $0x308] sm:$0xff]  ;;  %v286_v46 = vld [vmem:[%s9893_s3 + $0x390] sm:$0xff]  ;;  %v287_v47 = vld [vmem:[%s9893_s3 + $0x398] sm:$0xff]  ;;  %v5991_v50 = vpack.c.bf16 %v237_v40, %v236_v39  ;;  %v5993_v52 = vpack.c.bf16 %v255_v45, %v254_v44 }
  0x1b   :  { %5980 = vmatpush3.bf16.msra.mxu1 %v5979_v13  ;;  %5950 = vmatprep.subr.bf16.mxu0 %v5949_v14  ;;  %v42_v48 = vld [vmem:[%s9891_s1] sm:$0xff]  ;;  %v44_v49 = vld [vmem:[%s9891_s1 + $0x10] sm:$0xff]  ;;  %v6023_v51 = vpack.c.bf16 %v269_v43, %v268_v41  ;;  %v239_v54 = vld [vmem:[%s9893_s3 + $0x218] sm:$0xff]  ;;  %v6025_v56 = vpack.c.bf16 %v287_v47, %v286_v46 }
  0x1c   :  { %5982 = vmatprep.subr.bf16.mxu1 %v5981_v18  ;;  %v238_v53 = vld [vmem:[%s9893_s3 + $0x210] sm:$0xff]  ;;  %v271_v57 = vld [vmem:[%s9893_s3 + $0x318] sm:$0xff]  ;;  %v256_v58 = vld [vmem:[%s9893_s3 + $0x2a0] sm:$0xff] }
  0x1d   :  { %v270_v55 = vld [vmem:[%s9893_s3 + $0x310] sm:$0xff]  ;;  %v257_v59 = vld [vmem:[%s9893_s3 + $0x2a8] sm:$0xff]  ;;  %v288_v60 = vld [vmem:[%s9893_s3 + $0x3a0] sm:$0xff]  ;;  %v5995_v63 = vpack.c.bf16 %v239_v54, %v238_v53 }
  0x1e   :  { %5952 = vmatpush3.bf16.msra.mxu0 %v5951_v24  ;;  %v289_v61 = vld [vmem:[%s9893_s3 + $0x3a8] sm:$0xff]  ;;  %v69_v62 = vld [vmem:[%s9891_s1 + $0xd8] sm:$0xff]  ;;  %v240_v0 = vld [vmem:[%s9893_s3 + $0x220] sm:$0xff]  ;;  %v6027_v3 = vpack.c.bf16 %v271_v57, %v270_v55  ;;  %v5997_v4 = vpack.c.bf16 %v257_v59, %v256_v58 }
  0x1f   :  { %5984 = vmatpush3.bf16.msra.mxu1 %v5983_v25  ;;  %5954 = vmatprep.subr.bf16.mxu0 %v5953_v26  ;;  %v71_v1 = vld [vmem:[%s9891_s1 + $0xe8] sm:$0xff]  ;;  %v68_v2 = vld [vmem:[%s9891_s1 + $0xd0] sm:$0xff]  ;;  %v272_v6 = vld [vmem:[%s9893_s3 + $0x320] sm:$0xff]  ;;  %v6029_v8 = vpack.c.bf16 %v289_v61, %v288_v60 }
  0x20   :  { %5986 = vmatprep.subr.bf16.mxu1 %v5985_v30  ;;  %v241_v5 = vld [vmem:[%s9893_s3 + $0x228] sm:$0xff]  ;;  %v70_v7 = vld [vmem:[%s9891_s1 + $0xe0] sm:$0xff]  ;;  %v258_v10 = vld [vmem:[%s9893_s3 + $0x2b0] sm:$0xff] }
  0x21   :  { %v273_v9 = vld [vmem:[%s9893_s3 + $0x328] sm:$0xff]  ;;  %v259_v11 = vld [vmem:[%s9893_s3 + $0x2b8] sm:$0xff]  ;;  %v290_v12 = vld [vmem:[%s9893_s3 + $0x3b0] sm:$0xff]  ;;  %v5999_v15 = vpack.c.bf16 %v241_v5, %v240_v0 }
  0x22   :  { %5956 = vmatpush3.bf16.msra.mxu0 %v5955_v36  ;;  %v291_v13 = vld [vmem:[%s9893_s3 + $0x3b8] sm:$0xff]  ;;  %v95_v14 = vld [vmem:[%s9891_s1 + $0x1a8] sm:$0xff]  ;;  %v242_v16 = vld [vmem:[%s9893_s3 + $0x230] sm:$0xff]  ;;  %v6031_v19 = vpack.c.bf16 %v273_v9, %v272_v6  ;;  %v6001_v20 = vpack.c.bf16 %v259_v11, %v258_v10 }
  0x23   :  { %5988 = vmatpush3.bf16.msra.mxu1 %v5987_v37  ;;  %5990 = vmatprep.subr.bf16.mxu0 %v5989_v38  ;;  %v97_v17 = vld [vmem:[%s9891_s1 + $0x1b8] sm:$0xff]  ;;  %v94_v18 = vld [vmem:[%s9891_s1 + $0x1a0] sm:$0xff]  ;;  %v274_v22 = vld [vmem:[%s9893_s3 + $0x330] sm:$0xff]  ;;  %v6033_v24 = vpack.c.bf16 %v291_v13, %v290_v12 }
  0x24   :  { %6022 = vmatprep.subr.bf16.mxu1 %v6021_v42  ;;  %v243_v21 = vld [vmem:[%s9893_s3 + $0x238] sm:$0xff]  ;;  %v96_v23 = vld [vmem:[%s9891_s1 + $0x1b0] sm:$0xff]  ;;  %v260_v26 = vld [vmem:[%s9893_s3 + $0x2c0] sm:$0xff] }
  0x25   :  { %658 = vmatmul.mubr.f32.vlgmr.msra.gmra.mrb[0].mxu0 %v42_v48  ;;  %v275_v25 = vld [vmem:[%s9893_s3 + $0x338] sm:$0xff]  ;;  %v261_v27 = vld [vmem:[%s9893_s3 + $0x2c8] sm:$0xff]  ;;  %v292_v28 = vld [vmem:[%s9893_s3 + $0x3c0] sm:$0xff]  ;;  %v6003_v31 = vpack.c.bf16 %v243_v21, %v242_v16 }
  0x26   :  { %748 = vmatmul.mubr.f32.vlgmr.msra.gmra.mrb[0].mxu1 %v44_v49  ;;  %5992 = vmatpush3.bf16.msra.mxu0 %v5991_v50  ;;  %v293_v29 = vld [vmem:[%s9893_s3 + $0x3c8] sm:$0xff]  ;;  %v121_v30 = vld [vmem:[%s9891_s1 + $0x278] sm:$0xff]  ;;  %v244_v32 = vld [vmem:[%s9893_s3 + $0x240] sm:$0xff]  ;;  %v6035_v35 = vpack.c.bf16 %v275_v25, %v274_v22  ;;  %v6005_v36 = vpack.c.bf16 %v261_v27, %v260_v26 }
  0x27   :  { %6024 = vmatpush3.bf16.msra.mxu1 %v6023_v51  ;;  %5994 = vmatprep.subr.bf16.mxu0 %v5993_v52  ;;  %v123_v33 = vld [vmem:[%s9891_s1 + $0x288] sm:$0xff]  ;;  %v120_v34 = vld [vmem:[%s9891_s1 + $0x270] sm:$0xff]  ;;  %v276_v38 = vld [vmem:[%s9893_s3 + $0x340] sm:$0xff]  ;;  %v6037_v40 = vpack.c.bf16 %v293_v29, %v292_v28 }
  0x28   :  { %6026 = vmatprep.subr.bf16.mxu1 %v6025_v56  ;;  %662 = vmatprep.mubr.f32.mxu0 %v69_v62  ;;  %v245_v37 = vld [vmem:[%s9893_s3 + $0x248] sm:$0xff]  ;;  %v122_v39 = vld [vmem:[%s9891_s1 + $0x280] sm:$0xff]  ;;  %v262_v42 = vld [vmem:[%s9893_s3 + $0x2d0] sm:$0xff] }
  0x29   :  { %752 = vmatprep.mubr.f32.mxu1 %v71_v1  ;;  %663 = vmatmul.mubr.f32.gmra.mrb[2].mxu0 %v68_v2  ;;  %v277_v41 = vld [vmem:[%s9893_s3 + $0x348] sm:$0xff]  ;;  %v263_v43 = vld [vmem:[%s9893_s3 + $0x2d8] sm:$0xff]  ;;  %v294_v44 = vld [vmem:[%s9893_s3 + $0x3d0] sm:$0xff]  ;;  %v6007_v47 = vpack.c.bf16 %v245_v37, %v244_v32 }
  0x2a   :  { %5996 = vmatpush3.bf16.msra.mxu0 %v5995_v63  ;;  %753 = vmatmul.mubr.f32.gmra.mrb[2].mxu1 %v70_v7  ;;  %v295_v45 = vld [vmem:[%s9893_s3 + $0x3d8] sm:$0xff]  ;;  %v147_v46 = vld [vmem:[%s9891_s1 + $0x348] sm:$0xff]  ;;  %v246_v48 = vld [vmem:[%s9893_s3 + $0x250] sm:$0xff]  ;;  %v6039_v51 = vpack.c.bf16 %v277_v41, %v276_v38  ;;  %v6009_v52 = vpack.c.bf16 %v263_v43, %v262_v42 }
  0x2b   :  { %6028 = vmatpush3.bf16.msra.mxu1 %v6027_v3  ;;  %5998 = vmatprep.subr.bf16.mxu0 %v5997_v4  ;;  %v149_v49 = vld [vmem:[%s9891_s1 + $0x358] sm:$0xff]  ;;  %v146_v50 = vld [vmem:[%s9891_s1 + $0x340] sm:$0xff]  ;;  %v278_v54 = vld [vmem:[%s9893_s3 + $0x350] sm:$0xff]  ;;  %v6041_v56 = vpack.c.bf16 %v295_v45, %v294_v44 }
  0x2c   :  { %6030 = vmatprep.subr.bf16.mxu1 %v6029_v8  ;;  %667 = vmatprep.mubr.f32.mxu0 %v95_v14  ;;  %v247_v53 = vld [vmem:[%s9893_s3 + $0x258] sm:$0xff]  ;;  %v148_v55 = vld [vmem:[%s9891_s1 + $0x350] sm:$0xff]  ;;  %v264_v58 = vld [vmem:[%s9893_s3 + $0x2e0] sm:$0xff] }
  0x2d   :  { %757 = vmatprep.mubr.f32.mxu1 %v97_v17  ;;  %668 = vmatmul.mubr.f32.gmra.mrb[4].mxu0 %v94_v18  ;;  %v279_v57 = vld [vmem:[%s9893_s3 + $0x358] sm:$0xff]  ;;  %v265_v59 = vld [vmem:[%s9893_s3 + $0x2e8] sm:$0xff]  ;;  %v296_v60 = vld [vmem:[%s9893_s3 + $0x3e0] sm:$0xff]  ;;  %v6011_v63 = vpack.c.bf16 %v247_v53, %v246_v48 }
  0x2e   :  { %6000 = vmatpush3.bf16.msra.mxu0 %v5999_v15  ;;  %758 = vmatmul.mubr.f32.gmra.mrb[4].mxu1 %v96_v23  ;;  %v297_v61 = vld [vmem:[%s9893_s3 + $0x3e8] sm:$0xff]  ;;  %v49_v0 = vld [vmem:[%s9891_s1 + $0x38] sm:$0xff]  ;;  %v6043_v1 = vpack.c.bf16 %v279_v57, %v278_v54  ;;  %v6013_v2 = vpack.c.bf16 %v265_v59, %v264_v58  ;;  %v248_v3 = vld [vmem:[%s9893_s3 + $0x260] sm:$0xff] }
  0x2f   :  { %6032 = vmatpush3.bf16.msra.mxu1 %v6031_v19  ;;  %6002 = vmatprep.subr.bf16.mxu0 %v6001_v20  ;;  %v47_v62 = vld [vmem:[%s9891_s1 + $0x28] sm:$0xff]  ;;  %v280_v5 = vld [vmem:[%s9893_s3 + $0x360] sm:$0xff]  ;;  %v6045_v6 = vpack.c.bf16 %v297_v61, %v296_v60  ;;  %v266_v8 = vld [vmem:[%s9893_s3 + $0x2f0] sm:$0xff] }
  0x30   :  { %6034 = vmatprep.subr.bf16.mxu1 %v6033_v24  ;;  %672 = vmatprep.mubr.f32.mxu0 %v121_v30  ;;  %v249_v4 = vld [vmem:[%s9893_s3 + $0x268] sm:$0xff]  ;;  %v267_v9 = vld [vmem:[%s9893_s3 + $0x2f8] sm:$0xff]  ;;  %v298_v10 = vld [vmem:[%s9893_s3 + $0x3f0] sm:$0xff] }
  0x31   :  { %762 = vmatprep.mubr.f32.mxu1 %v123_v33  ;;  %673 = vmatmul.mubr.f32.gmra.mrb[6].mxu0 %v120_v34  ;;  %v281_v7 = vld [vmem:[%s9893_s3 + $0x368] sm:$0xff]  ;;  %v299_v11 = vld [vmem:[%s9893_s3 + $0x3f8] sm:$0xff]  ;;  %v6015_v12 = vpack.c.bf16 %v249_v4, %v248_v3  ;;  %v6017_v14 = vpack.c.bf16 %v267_v9, %v266_v8  ;;  %v250_v15 = vld [vmem:[%s9893_s3 + $0x270] sm:$0xff] }
  0x32   :  { %6004 = vmatpush3.bf16.msra.mxu0 %v6003_v31  ;;  %763 = vmatmul.mubr.f32.gmra.mrb[6].mxu1 %v122_v39  ;;  %v6047_v13 = vpack.c.bf16 %v281_v7, %v280_v5  ;;  %v251_v16 = vld [vmem:[%s9893_s3 + $0x278] sm:$0xff]  ;;  %v282_v17 = vld [vmem:[%s9893_s3 + $0x370] sm:$0xff]  ;;  %v6049_v18 = vpack.c.bf16 %v299_v11, %v298_v10  ;;  %v316_v20 = vld [vmem:[%s9893_s3 + $0x480] sm:$0xff] }
  0x33   :  { %6036 = vmatpush3.bf16.msra.mxu1 %v6035_v35  ;;  %6006 = vmatprep.subr.bf16.mxu0 %v6005_v36  ;;  %v283_v19 = vld [vmem:[%s9893_s3 + $0x378] sm:$0xff]  ;;  %v317_v21 = vld [vmem:[%s9893_s3 + $0x488] sm:$0xff]  ;;  %v348_v22 = vld [vmem:[%s9893_s3 + $0x580] sm:$0xff]  ;;  %v6019_v24 = vpack.c.bf16 %v251_v16, %v250_v15 }
  0x34   :  { %6038 = vmatprep.subr.bf16.mxu1 %v6037_v40  ;;  %677 = vmatprep.mubr.f32.mxu0 %v147_v46  ;;  %v349_v23 = vld [vmem:[%s9893_s3 + $0x588] sm:$0xff]  ;;  %v6051_v25 = vpack.c.bf16 %v283_v19, %v282_v17  ;;  %v6053_v26 = vpack.c.bf16 %v317_v21, %v316_v20  ;;  %v300_v27 = vld [vmem:[%s9893_s3 + $0x400] sm:$0xff]  ;;  %v318_v32 = vld [vmem:[%s9893_s3 + $0x490] sm:$0xff] }
  0x35   :  { %767 = vmatprep.mubr.f32.mxu1 %v149_v49  ;;  %678 = vmatmul.mubr.f32.gmra.mrb[8].mxu0 %v146_v50  ;;  %v301_v28 = vld [vmem:[%s9893_s3 + $0x408] sm:$0xff]  ;;  %v6085_v29 = vpack.c.bf16 %v349_v23, %v348_v22  ;;  %v332_v30 = vld [vmem:[%s9893_s3 + $0x500] sm:$0xff]  ;;  %v319_v33 = vld [vmem:[%s9893_s3 + $0x498] sm:$0xff] }
  0x36   :  { %6008 = vmatpush3.bf16.msra.mxu0 %v6007_v47  ;;  %768 = vmatmul.mubr.f32.gmra.mrb[8].mxu1 %v148_v55  ;;  %v333_v31 = vld [vmem:[%s9893_s3 + $0x508] sm:$0xff]  ;;  %v350_v34 = vld [vmem:[%s9893_s3 + $0x590] sm:$0xff]  ;;  %v351_v35 = vld [vmem:[%s9893_s3 + $0x598] sm:$0xff]  ;;  %v6055_v38 = vpack.c.bf16 %v301_v28, %v300_v27  ;;  %v6057_v43 = vpack.c.bf16 %v319_v33, %v318_v32 }
  0x37   :  { %6040 = vmatpush3.bf16.msra.mxu1 %v6039_v51  ;;  %6010 = vmatprep.subr.bf16.mxu0 %v6009_v52  ;;  %v46_v36 = vld [vmem:[%s9891_s1 + $0x20] sm:$0xff]  ;;  %v48_v37 = vld [vmem:[%s9891_s1 + $0x30] sm:$0xff]  ;;  %v6087_v39 = vpack.c.bf16 %v333_v31, %v332_v30  ;;  %v73_v40 = vld [vmem:[%s9891_s1 + $0xf8] sm:$0xff]  ;;  %v6089_v44 = vpack.c.bf16 %v351_v35, %v350_v34 }
  0x38   :  { %6042 = vmatprep.subr.bf16.mxu1 %v6041_v56  ;;  %837 = vmatprep.mubr.f32.mxu0 %v47_v62  ;;  %v302_v41 = vld [vmem:[%s9893_s3 + $0x410] sm:$0xff]  ;;  %v303_v42 = vld [vmem:[%s9893_s3 + $0x418] sm:$0xff]  ;;  %v320_v47 = vld [vmem:[%s9893_s3 + $0x4a0] sm:$0xff] }
  0x39   :  { %927 = vmatprep.mubr.f32.mxu1 %v49_v0  ;;  %v334_v45 = vld [vmem:[%s9893_s3 + $0x510] sm:$0xff]  ;;  %v335_v46 = vld [vmem:[%s9893_s3 + $0x518] sm:$0xff]  ;;  %v321_v48 = vld [vmem:[%s9893_s3 + $0x4a8] sm:$0xff]  ;;  %v6059_v53 = vpack.c.bf16 %v303_v42, %v302_v41 }
  0x3a   :  { %6012 = vmatpush3.bf16.msra.mxu0 %v6011_v63  ;;  %v352_v49 = vld [vmem:[%s9893_s3 + $0x5a0] sm:$0xff]  ;;  %v353_v50 = vld [vmem:[%s9893_s3 + $0x5a8] sm:$0xff]  ;;  %v72_v51 = vld [vmem:[%s9891_s1 + $0xf0] sm:$0xff]  ;;  %v6091_v55 = vpack.c.bf16 %v335_v46, %v334_v45  ;;  %v6061_v59 = vpack.c.bf16 %v321_v48, %v320_v47 }
  0x3b   :  { %6044 = vmatpush3.bf16.msra.mxu1 %v6043_v1  ;;  %6014 = vmatprep.subr.bf16.mxu0 %v6013_v2  ;;  %v75_v52 = vld [vmem:[%s9891_s1 + $0x108] sm:$0xff]  ;;  %v74_v54 = vld [vmem:[%s9891_s1 + $0x100] sm:$0xff]  ;;  %v6093_v60 = vpack.c.bf16 %v353_v50, %v352_v49  ;;  %v322_v63 = vld [vmem:[%s9893_s3 + $0x4b0] sm:$0xff] }
  0x3c   :  { %6046 = vmatprep.subr.bf16.mxu1 %v6045_v6  ;;  %v99_v56 = vld [vmem:[%s9891_s1 + $0x1c8] sm:$0xff]  ;;  %v304_v57 = vld [vmem:[%s9893_s3 + $0x420] sm:$0xff]  ;;  %v323_v0 = vld [vmem:[%s9893_s3 + $0x4b8] sm:$0xff] }
  0x3d   :  { %v305_v58 = vld [vmem:[%s9893_s3 + $0x428] sm:$0xff]  ;;  %v336_v61 = vld [vmem:[%s9893_s3 + $0x520] sm:$0xff]  ;;  %v354_v1 = vld [vmem:[%s9893_s3 + $0x5b0] sm:$0xff] }
  0x3e   :  { %6016 = vmatpush3.bf16.msra.mxu0 %v6015_v12  ;;  %v337_v62 = vld [vmem:[%s9893_s3 + $0x528] sm:$0xff]  ;;  %v355_v2 = vld [vmem:[%s9893_s3 + $0x5b8] sm:$0xff]  ;;  %v98_v3 = vld [vmem:[%s9891_s1 + $0x1c0] sm:$0xff]  ;;  %v6063_v5 = vpack.c.bf16 %v305_v58, %v304_v57  ;;  %v6065_v12 = vpack.c.bf16 %v323_v0, %v322_v63 }
  0x3f   :  { %6048 = vmatpush3.bf16.msra.mxu1 %v6047_v13  ;;  %6018 = vmatprep.subr.bf16.mxu0 %v6017_v14  ;;  %v101_v4 = vld [vmem:[%s9891_s1 + $0x1d8] sm:$0xff]  ;;  %v100_v6 = vld [vmem:[%s9891_s1 + $0x1d0] sm:$0xff]  ;;  %v6095_v7 = vpack.c.bf16 %v337_v62, %v336_v61  ;;  %v6097_v13 = vpack.c.bf16 %v355_v2, %v354_v1  ;;  %v324_v16 = vld [vmem:[%s9893_s3 + $0x4c0] sm:$0xff] }
  0x40   :  { %6050 = vmatprep.subr.bf16.mxu1 %v6049_v18  ;;  %v125_v8 = vld [vmem:[%s9891_s1 + $0x298] sm:$0xff]  ;;  %v306_v9 = vld [vmem:[%s9893_s3 + $0x430] sm:$0xff]  ;;  %v325_v17 = vld [vmem:[%s9893_s3 + $0x4c8] sm:$0xff] }
  0x41   :  { %v307_v10 = vld [vmem:[%s9893_s3 + $0x438] sm:$0xff]  ;;  %v124_v11 = vld [vmem:[%s9891_s1 + $0x290] sm:$0xff]  ;;  %v356_v18 = vld [vmem:[%s9893_s3 + $0x5c0] sm:$0xff]  ;;  %v6069_v28 = vpack.c.bf16 %v325_v17, %v324_v16 }
  0x42   :  { %6020 = vmatpush3.bf16.msra.mxu0 %v6019_v24  ;;  %v338_v14 = vld [vmem:[%s9893_s3 + $0x530] sm:$0xff]  ;;  %v339_v15 = vld [vmem:[%s9893_s3 + $0x538] sm:$0xff]  ;;  %v357_v19 = vld [vmem:[%s9893_s3 + $0x5c8] sm:$0xff]  ;;  %v6067_v21 = vpack.c.bf16 %v307_v10, %v306_v9 }
  0x43   :  { %6052 = vmatpush3.bf16.msra.mxu1 %v6051_v25  ;;  %6054 = vmatprep.subr.bf16.mxu0 %v6053_v26  ;;  %v127_v20 = vld [vmem:[%s9891_s1 + $0x2a8] sm:$0xff]  ;;  %v126_v22 = vld [vmem:[%s9891_s1 + $0x2a0] sm:$0xff]  ;;  %v6099_v24 = vpack.c.bf16 %v339_v15, %v338_v14  ;;  %v326_v31 = vld [vmem:[%s9893_s3 + $0x4d0] sm:$0xff] }
  0x44   :  { %6086 = vmatprep.subr.bf16.mxu1 %v6085_v29  ;;  %v151_v23 = vld [vmem:[%s9891_s1 + $0x368] sm:$0xff]  ;;  %v308_v25 = vld [vmem:[%s9893_s3 + $0x440] sm:$0xff]  ;;  %v6101_v29 = vpack.c.bf16 %v357_v19, %v356_v18  ;;  %v327_v32 = vld [vmem:[%s9893_s3 + $0x4d8] sm:$0xff] }
  0x45   :  { %838 = vmatmul.mubr.f32.vlgmr.msra.gmra.mrb[10].mxu0 %v46_v36  ;;  %v309_v26 = vld [vmem:[%s9893_s3 + $0x448] sm:$0xff]  ;;  %v340_v27 = vld [vmem:[%s9893_s3 + $0x540] sm:$0xff]  ;;  %v358_v33 = vld [vmem:[%s9893_s3 + $0x5d0] sm:$0xff] }
  0x46   :  { %928 = vmatmul.mubr.f32.vlgmr.msra.gmra.mrb[10].mxu1 %v48_v37  ;;  %6056 = vmatpush3.bf16.msra.mxu0 %v6055_v38  ;;  %v341_v30 = vld [vmem:[%s9893_s3 + $0x548] sm:$0xff]  ;;  %v359_v34 = vld [vmem:[%s9893_s3 + $0x5d8] sm:$0xff]  ;;  %v150_v35 = vld [vmem:[%s9891_s1 + $0x360] sm:$0xff]  ;;  %v6071_v37 = vpack.c.bf16 %v309_v26, %v308_v25 }
  0x47   :  { %6088 = vmatpush3.bf16.msra.mxu1 %v6087_v39  ;;  %842 = vmatprep.mubr.f32.mxu0 %v73_v40  ;;  %v153_v36 = vld [vmem:[%s9891_s1 + $0x378] sm:$0xff]  ;;  %v152_v38 = vld [vmem:[%s9891_s1 + $0x370] sm:$0xff]  ;;  %v6103_v39 = vpack.c.bf16 %v341_v30, %v340_v27  ;;  %v6073_v40 = vpack.c.bf16 %v327_v32, %v326_v31  ;;  %v328_v46 = vld [vmem:[%s9893_s3 + $0x4e0] sm:$0xff] }
  0x48   :  { %6058 = vmatprep.subr.bf16.mxu0 %v6057_v43  ;;  %6090 = vmatprep.subr.bf16.mxu1 %v6089_v44  ;;  %v310_v41 = vld [vmem:[%s9893_s3 + $0x450] sm:$0xff]  ;;  %v311_v42 = vld [vmem:[%s9893_s3 + $0x458] sm:$0xff]  ;;  %v6105_v44 = vpack.c.bf16 %v359_v34, %v358_v33  ;;  %v329_v47 = vld [vmem:[%s9893_s3 + $0x4e8] sm:$0xff] }
  0x49   :  { %843 = vmatmul.mubr.f32.gmra.mrb[12].mxu0 %v72_v51  ;;  %932 = vmatprep.mubr.f32.mxu1 %v75_v52  ;;  %v342_v43 = vld [vmem:[%s9893_s3 + $0x550] sm:$0xff]  ;;  %v343_v45 = vld [vmem:[%s9893_s3 + $0x558] sm:$0xff]  ;;  %v360_v48 = vld [vmem:[%s9893_s3 + $0x5e0] sm:$0xff]  ;;  %v6075_v51 = vpack.c.bf16 %v311_v42, %v310_v41 }
  0x4a   :  { %6060 = vmatpush3.bf16.msra.mxu0 %v6059_v53  ;;  %933 = vmatmul.mubr.f32.gmra.mrb[12].mxu1 %v74_v54  ;;  %v361_v49 = vld [vmem:[%s9893_s3 + $0x5e8] sm:$0xff]  ;;  %v53_v52 = vld [vmem:[%s9891_s1 + $0x58] sm:$0xff]  ;;  %v6107_v53 = vpack.c.bf16 %v343_v45, %v342_v43  ;;  %v6077_v54 = vpack.c.bf16 %v329_v47, %v328_v46  ;;  %v344_v57 = vld [vmem:[%s9893_s3 + $0x560] sm:$0xff] }
  0x4b   :  { %6092 = vmatpush3.bf16.msra.mxu1 %v6091_v55  ;;  %847 = vmatprep.mubr.f32.mxu0 %v99_v56  ;;  %v51_v50 = vld [vmem:[%s9891_s1 + $0x48] sm:$0xff]  ;;  %v312_v55 = vld [vmem:[%s9893_s3 + $0x460] sm:$0xff]  ;;  %v6109_v58 = vpack.c.bf16 %v361_v49, %v360_v48  ;;  %v331_v61 = vld [vmem:[%s9893_s3 + $0x4f8] sm:$0xff] }
  0x4c   :  { %6062 = vmatprep.subr.bf16.mxu0 %v6061_v59  ;;  %6094 = vmatprep.subr.bf16.mxu1 %v6093_v60  ;;  %v313_v56 = vld [vmem:[%s9893_s3 + $0x468] sm:$0xff]  ;;  %v330_v60 = vld [vmem:[%s9893_s3 + $0x4f0] sm:$0xff]  ;;  %v363_v63 = vld [vmem:[%s9893_s3 + $0x5f8] sm:$0xff] }
  0x4d   :  { %848 = vmatmul.mubr.f32.gmra.mrb[14].mxu0 %v98_v3  ;;  %937 = vmatprep.mubr.f32.mxu1 %v101_v4  ;;  %v345_v59 = vld [vmem:[%s9893_s3 + $0x568] sm:$0xff]  ;;  %v362_v62 = vld [vmem:[%s9893_s3 + $0x5f0] sm:$0xff]  ;;  %v6079_v0 = vpack.c.bf16 %v313_v56, %v312_v55  ;;  %v6081_v2 = vpack.c.bf16 %v331_v61, %v330_v60  ;;  %v315_v4 = vld [vmem:[%s9893_s3 + $0x478] sm:$0xff] }
  0x4e   :  { %6064 = vmatpush3.bf16.msra.mxu0 %v6063_v5  ;;  %938 = vmatmul.mubr.f32.gmra.mrb[14].mxu1 %v100_v6  ;;  %v6111_v1 = vpack.c.bf16 %v345_v59, %v344_v57  ;;  %v314_v3 = vld [vmem:[%s9893_s3 + $0x470] sm:$0xff]  ;;  %v6113_v6 = vpack.c.bf16 %v363_v63, %v362_v62  ;;  %v381_v9 = vld [vmem:[%s9893_s3 + $0x688] sm:$0xff]  ;;  %v412_v10 = vld [vmem:[%s9893_s3 + $0x780] sm:$0xff] }
  0x4f   :  { %6096 = vmatpush3.bf16.msra.mxu1 %v6095_v7  ;;  %852 = vmatprep.mubr.f32.mxu0 %v125_v8  ;;  %v346_v5 = vld [vmem:[%s9893_s3 + $0x570] sm:$0xff]  ;;  %v347_v7 = vld [vmem:[%s9893_s3 + $0x578] sm:$0xff]  ;;  %v380_v8 = vld [vmem:[%s9893_s3 + $0x680] sm:$0xff] }
  0x50   :  { %6066 = vmatprep.subr.bf16.mxu0 %v6065_v12  ;;  %6098 = vmatprep.subr.bf16.mxu1 %v6097_v13  ;;  %v6083_v12 = vpack.c.bf16 %v315_v4, %v314_v3  ;;  %v6115_v13 = vpack.c.bf16 %v347_v7, %v346_v5  ;;  %v6117_v14 = vpack.c.bf16 %v381_v9, %v380_v8  ;;  %v364_v15 = vld [vmem:[%s9893_s3 + $0x600] sm:$0xff]  ;;  %v365_v16 = vld [vmem:[%s9893_s3 + $0x608] sm:$0xff]  ;;  %v52_v25 = vld [vmem:[%s9891_s1 + $0x50] sm:$0xff] }
  0x51   :  { %853 = vmatmul.mubr.f32.gmra.mrb[16].mxu0 %v124_v11  ;;  %942 = vmatprep.mubr.f32.mxu1 %v127_v20  ;;  %v413_v11 = vld [vmem:[%s9893_s3 + $0x788] sm:$0xff]  ;;  %v396_v18 = vld [vmem:[%s9893_s3 + $0x700] sm:$0xff]  ;;  %v382_v20 = vld [vmem:[%s9893_s3 + $0x690] sm:$0xff]  ;;  %v6119_v26 = vpack.c.bf16 %v365_v16, %v364_v15 }
  0x52   :  { %6068 = vmatpush3.bf16.msra.mxu0 %v6067_v21  ;;  %943 = vmatmul.mubr.f32.gmra.mrb[16].mxu1 %v126_v22  ;;  %v6149_v17 = vpack.c.bf16 %v413_v11, %v412_v10  ;;  %v397_v19 = vld [vmem:[%s9893_s3 + $0x708] sm:$0xff]  ;;  %v383_v21 = vld [vmem:[%s9893_s3 + $0x698] sm:$0xff]  ;;  %v414_v22 = vld [vmem:[%s9893_s3 + $0x790] sm:$0xff] }
  0x53   :  { %6100 = vmatpush3.bf16.msra.mxu1 %v6099_v24  ;;  %857 = vmatprep.mubr.f32.mxu0 %v151_v23  ;;  %v415_v23 = vld [vmem:[%s9893_s3 + $0x798] sm:$0xff]  ;;  %v50_v24 = vld [vmem:[%s9891_s1 + $0x40] sm:$0xff]  ;;  %v6151_v27 = vpack.c.bf16 %v397_v19, %v396_v18  ;;  %v6121_v31 = vpack.c.bf16 %v383_v21, %v382_v20  ;;  %v398_v33 = vld [vmem:[%s9893_s3 + $0x710] sm:$0xff] }
  0x54   :  { %6070 = vmatprep.subr.bf16.mxu0 %v6069_v28  ;;  %6102 = vmatprep.subr.bf16.mxu1 %v6101_v29  ;;  %v77_v28 = vld [vmem:[%s9891_s1 + $0x118] sm:$0xff]  ;;  %v366_v29 = vld [vmem:[%s9893_s3 + $0x610] sm:$0xff]  ;;  %v6153_v32 = vpack.c.bf16 %v415_v23, %v414_v22  ;;  %v78_v42 = vld [vmem:[%s9891_s1 + $0x120] sm:$0xff] }
  0x55   :  { %858 = vmatmul.mubr.f32.gmra.mrb[18].mxu0 %v150_v35  ;;  %947 = vmatprep.mubr.f32.mxu1 %v153_v36  ;;  %v367_v30 = vld [vmem:[%s9893_s3 + $0x618] sm:$0xff]  ;;  %v384_v35 = vld [vmem:[%s9893_s3 + $0x6a0] sm:$0xff]  ;;  %v385_v36 = vld [vmem:[%s9893_s3 + $0x6a8] sm:$0xff] }
  0x56   :  { %6072 = vmatpush3.bf16.msra.mxu0 %v6071_v37  ;;  %948 = vmatmul.mubr.f32.gmra.mrb[18].mxu1 %v152_v38  ;;  %v399_v34 = vld [vmem:[%s9893_s3 + $0x718] sm:$0xff]  ;;  %v416_v37 = vld [vmem:[%s9893_s3 + $0x7a0] sm:$0xff]  ;;  %v417_v38 = vld [vmem:[%s9893_s3 + $0x7a8] sm:$0xff]  ;;  %v6123_v41 = vpack.c.bf16 %v367_v30, %v366_v29  ;;  %v6125_v47 = vpack.c.bf16 %v385_v36, %v384_v35 }
  0x57   :  { %6104 = vmatpush3.bf16.msra.mxu1 %v6103_v39  ;;  %6074 = vmatprep.subr.bf16.mxu0 %v6073_v40  ;;  %v76_v39 = vld [vmem:[%s9891_s1 + $0x110] sm:$0xff]  ;;  %v79_v40 = vld [vmem:[%s9891_s1 + $0x128] sm:$0xff]  ;;  %v6155_v43 = vpack.c.bf16 %v399_v34, %v398_v33  ;;  %v368_v45 = vld [vmem:[%s9893_s3 + $0x620] sm:$0xff]  ;;  %v6157_v48 = vpack.c.bf16 %v417_v38, %v416_v37 }
  0x58   :  { %6106 = vmatprep.subr.bf16.mxu1 %v6105_v44  ;;  %1017 = vmatprep.mubr.f32.mxu0 %v51_v50  ;;  %v103_v44 = vld [vmem:[%s9891_s1 + $0x1e8] sm:$0xff]  ;;  %v400_v49 = vld [vmem:[%s9893_s3 + $0x720] sm:$0xff]  ;;  %v105_v56 = vld [vmem:[%s9891_s1 + $0x1f8] sm:$0xff] }
  0x59   :  { %1107 = vmatprep.mubr.f32.mxu1 %v53_v52  ;;  %v369_v46 = vld [vmem:[%s9893_s3 + $0x628] sm:$0xff]  ;;  %v387_v52 = vld [vmem:[%s9893_s3 + $0x6b8] sm:$0xff]  ;;  %v102_v55 = vld [vmem:[%s9891_s1 + $0x1e0] sm:$0xff] }
  0x5a   :  { %6076 = vmatpush3.bf16.msra.mxu0 %v6075_v51  ;;  %v401_v50 = vld [vmem:[%s9893_s3 + $0x728] sm:$0xff]  ;;  %v386_v51 = vld [vmem:[%s9893_s3 + $0x6b0] sm:$0xff]  ;;  %v6127_v57 = vpack.c.bf16 %v369_v46, %v368_v45  ;;  %v129_v60 = vld [vmem:[%s9891_s1 + $0x2b8] sm:$0xff] }
  0x5b   :  { %6108 = vmatpush3.bf16.msra.mxu1 %v6107_v53  ;;  %6078 = vmatprep.subr.bf16.mxu0 %v6077_v54  ;;  %v418_v53 = vld [vmem:[%s9893_s3 + $0x7b0] sm:$0xff]  ;;  %v419_v54 = vld [vmem:[%s9893_s3 + $0x7b8] sm:$0xff]  ;;  %v6159_v59 = vpack.c.bf16 %v401_v50, %v400_v49  ;;  %v388_v4 = vld [vmem:[%s9893_s3 + $0x6c0] sm:$0xff] }
  0x5c   :  { %6110 = vmatprep.subr.bf16.mxu1 %v6109_v58  ;;  %v104_v58 = vld [vmem:[%s9891_s1 + $0x1f0] sm:$0xff]  ;;  %v371_v62 = vld [vmem:[%s9893_s3 + $0x638] sm:$0xff]  ;;  %v389_v5 = vld [vmem:[%s9893_s3 + $0x6c8] sm:$0xff] }
  0x5d   :  { %v370_v61 = vld [vmem:[%s9893_s3 + $0x630] sm:$0xff]  ;;  %v403_v3 = vld [vmem:[%s9893_s3 + $0x738] sm:$0xff]  ;;  %v421_v7 = vld [vmem:[%s9893_s3 + $0x7c8] sm:$0xff]  ;;  %v6133_v16 = vpack.c.bf16 %v389_v5, %v388_v4 }
  0x5e   :  { %6080 = vmatpush3.bf16.msra.mxu0 %v6079_v0  ;;  %v128_v63 = vld [vmem:[%s9891_s1 + $0x2b0] sm:$0xff]  ;;  %v6129_v0 = vpack.c.bf16 %v387_v52, %v386_v51  ;;  %v131_v8 = vld [vmem:[%s9891_s1 + $0x2c8] sm:$0xff]  ;;  %v6131_v9 = vpack.c.bf16 %v371_v62, %v370_v61  ;;  %v130_v10 = vld [vmem:[%s9891_s1 + $0x2c0] sm:$0xff] }
  0x5f   :  { %6112 = vmatpush3.bf16.msra.mxu1 %v6111_v1  ;;  %6082 = vmatprep.subr.bf16.mxu0 %v6081_v2  ;;  %v6161_v1 = vpack.c.bf16 %v419_v54, %v418_v53  ;;  %v402_v2 = vld [vmem:[%s9893_s3 + $0x730] sm:$0xff]  ;;  %v155_v11 = vld [vmem:[%s9891_s1 + $0x388] sm:$0xff]  ;;  %v404_v15 = vld [vmem:[%s9893_s3 + $0x740] sm:$0xff] }
  0x60   :  { %6114 = vmatprep.subr.bf16.mxu1 %v6113_v6  ;;  %v420_v6 = vld [vmem:[%s9893_s3 + $0x7c0] sm:$0xff]  ;;  %v405_v18 = vld [vmem:[%s9893_s3 + $0x748] sm:$0xff]  ;;  %v390_v19 = vld [vmem:[%s9893_s3 + $0x6d0] sm:$0xff] }
  0x61   :  { %v391_v20 = vld [vmem:[%s9893_s3 + $0x6d8] sm:$0xff]  ;;  %v422_v21 = vld [vmem:[%s9893_s3 + $0x7d0] sm:$0xff]  ;;  %v154_v23 = vld [vmem:[%s9891_s1 + $0x380] sm:$0xff] }
  0x62   :  { %6084 = vmatpush3.bf16.msra.mxu0 %v6083_v12  ;;  %v6163_v12 = vpack.c.bf16 %v403_v3, %v402_v2  ;;  %v423_v22 = vld [vmem:[%s9893_s3 + $0x7d8] sm:$0xff]  ;;  %v374_v29 = vld [vmem:[%s9893_s3 + $0x650] sm:$0xff]  ;;  %v392_v34 = vld [vmem:[%s9893_s3 + $0x6e0] sm:$0xff] }
  0x63   :  { %6116 = vmatpush3.bf16.msra.mxu1 %v6115_v13  ;;  %6118 = vmatprep.subr.bf16.mxu0 %v6117_v14  ;;  %v372_v13 = vld [vmem:[%s9893_s3 + $0x640] sm:$0xff]  ;;  %v373_v14 = vld [vmem:[%s9893_s3 + $0x648] sm:$0xff]  ;;  %v375_v30 = vld [vmem:[%s9893_s3 + $0x658] sm:$0xff] }
  0x64   :  { %6150 = vmatprep.subr.bf16.mxu1 %v6149_v17  ;;  %v6165_v17 = vpack.c.bf16 %v421_v7, %v420_v6  ;;  %v407_v33 = vld [vmem:[%s9893_s3 + $0x758] sm:$0xff]  ;;  %v393_v35 = vld [vmem:[%s9893_s3 + $0x6e8] sm:$0xff]  ;;  %v424_v36 = vld [vmem:[%s9893_s3 + $0x7e0] sm:$0xff] }
  0x65   :  { %1018 = vmatmul.mubr.f32.vlgmr.msra.gmra.mrb[20].mxu0 %v50_v24  ;;  %v157_v24 = vld [vmem:[%s9891_s1 + $0x398] sm:$0xff]  ;;  %v425_v37 = vld [vmem:[%s9893_s3 + $0x7e8] sm:$0xff]  ;;  %v408_v45 = vld [vmem:[%s9893_s3 + $0x760] sm:$0xff] }
  0x66   :  { %1108 = vmatmul.mubr.f32.vlgmr.msra.gmra.mrb[20].mxu1 %v52_v25  ;;  %6120 = vmatpush3.bf16.msra.mxu0 %v6119_v26  ;;  %v6135_v25 = vpack.c.bf16 %v373_v14, %v372_v13  ;;  %v156_v26 = vld [vmem:[%s9891_s1 + $0x390] sm:$0xff]  ;;  %v55_v38 = vld [vmem:[%s9891_s1 + $0x68] sm:$0xff]  ;;  %v6173_v46 = vpack.c.bf16 %v425_v37, %v424_v36  ;;  %v395_v49 = vld [vmem:[%s9893_s3 + $0x6f8] sm:$0xff] }
  0x67   :  { %6152 = vmatpush3.bf16.msra.mxu1 %v6151_v27  ;;  %1022 = vmatprep.mubr.f32.mxu0 %v77_v28  ;;  %v6167_v27 = vpack.c.bf16 %v405_v18, %v404_v15  ;;  %v6137_v28 = vpack.c.bf16 %v391_v20, %v390_v19  ;;  %v426_v50 = vld [vmem:[%s9893_s3 + $0x7f0] sm:$0xff]  ;;  %v427_v51 = vld [vmem:[%s9893_s3 + $0x7f8] sm:$0xff]  ;;  %v445_v61 = vld [vmem:[%s9893_s3 + $0x888] sm:$0xff] }
  0x68   :  { %6122 = vmatprep.subr.bf16.mxu0 %v6121_v31  ;;  %6154 = vmatprep.subr.bf16.mxu1 %v6153_v32  ;;  %v406_v31 = vld [vmem:[%s9893_s3 + $0x750] sm:$0xff]  ;;  %v6169_v32 = vpack.c.bf16 %v423_v22, %v422_v21  ;;  %v476_v62 = vld [vmem:[%s9893_s3 + $0x980] sm:$0xff]  ;;  %v429_v4 = vld [vmem:[%s9893_s3 + $0x808] sm:$0xff] }
  0x69   :  { %1023 = vmatmul.mubr.f32.gmra.mrb[22].mxu0 %v76_v39  ;;  %1112 = vmatprep.mubr.f32.mxu1 %v79_v40  ;;  %v6139_v39 = vpack.c.bf16 %v375_v30, %v374_v29  ;;  %v57_v40 = vld [vmem:[%s9891_s1 + $0x78] sm:$0xff]  ;;  %v428_v3 = vld [vmem:[%s9893_s3 + $0x800] sm:$0xff]  ;;  %v461_v7 = vld [vmem:[%s9893_s3 + $0x908] sm:$0xff] }
  0x6a   :  { %6124 = vmatpush3.bf16.msra.mxu0 %v6123_v41  ;;  %1113 = vmatmul.mubr.f32.gmra.mrb[22].mxu1 %v78_v42  ;;  %v6171_v41 = vpack.c.bf16 %v407_v33, %v406_v31  ;;  %v6141_v42 = vpack.c.bf16 %v393_v35, %v392_v34  ;;  %v460_v6 = vld [vmem:[%s9893_s3 + $0x900] sm:$0xff]  ;;  %v56_v13 = vld [vmem:[%s9891_s1 + $0x70] sm:$0xff]  ;;  %v6183_v14 = vpack.c.bf16 %v429_v4, %v428_v3  ;;  %v431_v18 = vld [vmem:[%s9893_s3 + $0x818] sm:$0xff] }
  0x6b   :  { %6156 = vmatpush3.bf16.msra.mxu1 %v6155_v43  ;;  %1027 = vmatprep.mubr.f32.mxu0 %v103_v44  ;;  %v376_v43 = vld [vmem:[%s9893_s3 + $0x660] sm:$0xff]  ;;  %v377_v44 = vld [vmem:[%s9893_s3 + $0x668] sm:$0xff]  ;;  %v6215_v15 = vpack.c.bf16 %v461_v7, %v460_v6  ;;  %v462_v21 = vld [vmem:[%s9893_s3 + $0x910] sm:$0xff] }
  0x6c   :  { %6126 = vmatprep.subr.bf16.mxu0 %v6125_v47  ;;  %6158 = vmatprep.subr.bf16.mxu1 %v6157_v48  ;;  %v409_v47 = vld [vmem:[%s9893_s3 + $0x768] sm:$0xff]  ;;  %v394_v48 = vld [vmem:[%s9893_s3 + $0x6f0] sm:$0xff]  ;;  %v6143_v52 = vpack.c.bf16 %v377_v44, %v376_v43  ;;  %v463_v22 = vld [vmem:[%s9893_s3 + $0x918] sm:$0xff] }
  0x6d   :  { %1028 = vmatmul.mubr.f32.gmra.mrb[24].mxu0 %v102_v55  ;;  %1117 = vmatprep.mubr.f32.mxu1 %v105_v56  ;;  %v6175_v53 = vpack.c.bf16 %v409_v47, %v408_v45  ;;  %v6145_v54 = vpack.c.bf16 %v395_v49, %v394_v48  ;;  %v378_v55 = vld [vmem:[%s9893_s3 + $0x670] sm:$0xff]  ;;  %v379_v56 = vld [vmem:[%s9893_s3 + $0x678] sm:$0xff]  ;;  %v82_v30 = vld [vmem:[%s9891_s1 + $0x140] sm:$0xff]  ;;  %v6219_v31 = vpack.c.bf16 %v463_v22, %v462_v21 }
  0x6e   :  { %6128 = vmatpush3.bf16.msra.mxu0 %v6127_v57  ;;  %1118 = vmatmul.mubr.f32.gmra.mrb[24].mxu1 %v104_v58  ;;  %v410_v57 = vld [vmem:[%s9893_s3 + $0x770] sm:$0xff]  ;;  %v6177_v58 = vpack.c.bf16 %v427_v51, %v426_v50  ;;  %v432_v33 = vld [vmem:[%s9893_s3 + $0x820] sm:$0xff]  ;;  %v433_v34 = vld [vmem:[%s9893_s3 + $0x828] sm:$0xff] }
  0x6f   :  { %6160 = vmatpush3.bf16.msra.mxu1 %v6159_v59  ;;  %1032 = vmatprep.mubr.f32.mxu0 %v129_v60  ;;  %v411_v59 = vld [vmem:[%s9893_s3 + $0x778] sm:$0xff]  ;;  %v444_v60 = vld [vmem:[%s9893_s3 + $0x880] sm:$0xff]  ;;  %v6191_v45 = vpack.c.bf16 %v433_v34, %v432_v33  ;;  %v434_v49 = vld [vmem:[%s9893_s3 + $0x830] sm:$0xff] }
  0x70   :  { %6130 = vmatprep.subr.bf16.mxu0 %v6129_v0  ;;  %6162 = vmatprep.subr.bf16.mxu1 %v6161_v1  ;;  %v6147_v0 = vpack.c.bf16 %v379_v56, %v378_v55  ;;  %v6179_v1 = vpack.c.bf16 %v411_v59, %v410_v57  ;;  %v6181_v2 = vpack.c.bf16 %v445_v61, %v444_v60  ;;  %v464_v37 = vld [vmem:[%s9893_s3 + $0x920] sm:$0xff]  ;;  %v109_v44 = vld [vmem:[%s9891_s1 + $0x218] sm:$0xff]  ;;  %v132_v51 = vld [vmem:[%s9891_s1 + $0x2d0] sm:$0xff] }
  0x71   :  { %1033 = vmatmul.mubr.f32.gmra.mrb[26].mxu0 %v128_v63  ;;  %1122 = vmatprep.mubr.f32.mxu1 %v131_v8  ;;  %v477_v63 = vld [vmem:[%s9893_s3 + $0x988] sm:$0xff]  ;;  %v446_v8 = vld [vmem:[%s9893_s3 + $0x890] sm:$0xff]  ;;  %v106_v43 = vld [vmem:[%s9891_s1 + $0x200] sm:$0xff] }
  0x72   :  { %6132 = vmatpush3.bf16.msra.mxu0 %v6131_v9  ;;  %1123 = vmatmul.mubr.f32.gmra.mrb[26].mxu1 %v130_v10  ;;  %v6213_v5 = vpack.c.bf16 %v477_v63, %v476_v62  ;;  %v447_v9 = vld [vmem:[%s9893_s3 + $0x898] sm:$0xff]  ;;  %v478_v10 = vld [vmem:[%s9893_s3 + $0x990] sm:$0xff]  ;;  %v452_v56 = vld [vmem:[%s9893_s3 + $0x8c0] sm:$0xff] }
  0x73   :  { %6164 = vmatpush3.bf16.msra.mxu1 %v6163_v12  ;;  %1037 = vmatprep.mubr.f32.mxu0 %v155_v11  ;;  %v479_v11 = vld [vmem:[%s9893_s3 + $0x998] sm:$0xff]  ;;  %v54_v12 = vld [vmem:[%s9891_s1 + $0x60] sm:$0xff]  ;;  %v6185_v19 = vpack.c.bf16 %v447_v9, %v446_v8  ;;  %v453_v57 = vld [vmem:[%s9893_s3 + $0x8c8] sm:$0xff] }
  0x74   :  { %6134 = vmatprep.subr.bf16.mxu0 %v6133_v16  ;;  %6166 = vmatprep.subr.bf16.mxu1 %v6165_v17  ;;  %v81_v16 = vld [vmem:[%s9891_s1 + $0x138] sm:$0xff]  ;;  %v430_v17 = vld [vmem:[%s9893_s3 + $0x810] sm:$0xff]  ;;  %v6217_v20 = vpack.c.bf16 %v479_v11, %v478_v10  ;;  %v485_v59 = vld [vmem:[%s9893_s3 + $0x9c8] sm:$0xff]  ;;  %v6197_v4 = vpack.c.bf16 %v453_v57, %v452_v56 }
  0x75   :  { %1038 = vmatmul.mubr.f32.gmra.mrb[28].mxu0 %v154_v23  ;;  %1127 = vmatprep.mubr.f32.mxu1 %v157_v24  ;;  %v448_v23 = vld [vmem:[%s9893_s3 + $0x8a0] sm:$0xff]  ;;  %v449_v24 = vld [vmem:[%s9893_s3 + $0x8a8] sm:$0xff]  ;;  %v6187_v29 = vpack.c.bf16 %v431_v18, %v430_v17  ;;  %v133_v48 = vld [vmem:[%s9891_s1 + $0x2d8] sm:$0xff] }
  0x76   :  { %6136 = vmatpush3.bf16.msra.mxu0 %v6135_v25  ;;  %1128 = vmatmul.mubr.f32.gmra.mrb[28].mxu1 %v156_v26  ;;  %v480_v25 = vld [vmem:[%s9893_s3 + $0x9a0] sm:$0xff]  ;;  %v481_v26 = vld [vmem:[%s9893_s3 + $0x9a8] sm:$0xff]  ;;  %v6189_v35 = vpack.c.bf16 %v449_v24, %v448_v23  ;;  %v435_v50 = vld [vmem:[%s9893_s3 + $0x838] sm:$0xff] }
  0x77   :  { %6168 = vmatpush3.bf16.msra.mxu1 %v6167_v27  ;;  %6138 = vmatprep.subr.bf16.mxu0 %v6137_v28  ;;  %v80_v27 = vld [vmem:[%s9891_s1 + $0x130] sm:$0xff]  ;;  %v83_v28 = vld [vmem:[%s9891_s1 + $0x148] sm:$0xff]  ;;  %v6221_v36 = vpack.c.bf16 %v481_v26, %v480_v25  ;;  %v467_v55 = vld [vmem:[%s9893_s3 + $0x938] sm:$0xff]  ;;  %v6195_v61 = vpack.c.bf16 %v435_v50, %v434_v49 }
  0x78   :  { %6170 = vmatprep.subr.bf16.mxu1 %v6169_v32  ;;  %1197 = vmatprep.mubr.f32.mxu0 %v55_v38  ;;  %v107_v32 = vld [vmem:[%s9891_s1 + $0x208] sm:$0xff]  ;;  %v134_v62 = vld [vmem:[%s9891_s1 + $0x2e0] sm:$0xff]  ;;  %v454_v7 = vld [vmem:[%s9893_s3 + $0x8d0] sm:$0xff] }
  0x79   :  { %1287 = vmatprep.mubr.f32.mxu1 %v57_v40  ;;  %v465_v38 = vld [vmem:[%s9893_s3 + $0x928] sm:$0xff]  ;;  %v451_v40 = vld [vmem:[%s9893_s3 + $0x8b8] sm:$0xff]  ;;  %v468_v3 = vld [vmem:[%s9893_s3 + $0x940] sm:$0xff] }
  0x7a   :  { %6140 = vmatpush3.bf16.msra.mxu0 %v6139_v39  ;;  %v450_v39 = vld [vmem:[%s9893_s3 + $0x8b0] sm:$0xff]  ;;  %v6223_v47 = vpack.c.bf16 %v465_v38, %v464_v37  ;;  %v135_v60 = vld [vmem:[%s9891_s1 + $0x2e8] sm:$0xff]  ;;  %v455_v8 = vld [vmem:[%s9893_s3 + $0x8d8] sm:$0xff] }
  0x7b   :  { %6172 = vmatpush3.bf16.msra.mxu1 %v6171_v41  ;;  %6142 = vmatprep.subr.bf16.mxu0 %v6141_v42  ;;  %v482_v41 = vld [vmem:[%s9893_s3 + $0x9b0] sm:$0xff]  ;;  %v483_v42 = vld [vmem:[%s9893_s3 + $0x9b8] sm:$0xff]  ;;  %v159_v63 = vld [vmem:[%s9891_s1 + $0x3a8] sm:$0xff] }
  0x7c   :  { %6174 = vmatprep.subr.bf16.mxu1 %v6173_v46  ;;  %v108_v46 = vld [vmem:[%s9891_s1 + $0x210] sm:$0xff]  ;;  %v469_v6 = vld [vmem:[%s9893_s3 + $0x948] sm:$0xff]  ;;  %v487_v10 = vld [vmem:[%s9893_s3 + $0x9d8] sm:$0xff] }
  0x7d   :  { %v486_v9 = vld [vmem:[%s9893_s3 + $0x9d0] sm:$0xff]  ;;  %v158_v11 = vld [vmem:[%s9891_s1 + $0x3a0] sm:$0xff]  ;;  %v439_v18 = vld [vmem:[%s9893_s3 + $0x858] sm:$0xff] }
  0x7e   :  { %6144 = vmatpush3.bf16.msra.mxu0 %v6143_v52  ;;  %v6193_v52 = vpack.c.bf16 %v451_v40, %v450_v39  ;;  %v438_v17 = vld [vmem:[%s9893_s3 + $0x850] sm:$0xff]  ;;  %v471_v21 = vld [vmem:[%s9893_s3 + $0x958] sm:$0xff]  ;;  %v456_v22 = vld [vmem:[%s9893_s3 + $0x8e0] sm:$0xff] }
  0x7f   :  { %6176 = vmatpush3.bf16.msra.mxu1 %v6175_v53  ;;  %6146 = vmatprep.subr.bf16.mxu0 %v6145_v54  ;;  %v6225_v53 = vpack.c.bf16 %v483_v42, %v482_v41  ;;  %v466_v54 = vld [vmem:[%s9893_s3 + $0x930] sm:$0xff]  ;;  %v457_v23 = vld [vmem:[%s9893_s3 + $0x8e8] sm:$0xff]  ;;  %v488_v24 = vld [vmem:[%s9893_s3 + $0x9e0] sm:$0xff] }
  0x80   :  { %6178 = vmatprep.subr.bf16.mxu1 %v6177_v58  ;;  %v484_v58 = vld [vmem:[%s9893_s3 + $0x9c0] sm:$0xff]  ;;  %v489_v25 = vld [vmem:[%s9893_s3 + $0x9e8] sm:$0xff]  ;;  %v459_v37 = vld [vmem:[%s9893_s3 + $0x8f8] sm:$0xff] }
  0x81   :  { %v59_v26 = vld [vmem:[%s9891_s1 + $0x88] sm:$0xff]  ;;  %v472_v33 = vld [vmem:[%s9893_s3 + $0x960] sm:$0xff]  ;;  %v6237_v34 = vpack.c.bf16 %v489_v25, %v488_v24  ;;  %v490_v38 = vld [vmem:[%s9893_s3 + $0x9f0] sm:$0xff] }
  0x82   :  { %6148 = vmatpush3.bf16.msra.mxu0 %v6147_v0  ;;  %v6227_v0 = vpack.c.bf16 %v467_v55, %v466_v54  ;;  %v491_v39 = vld [vmem:[%s9893_s3 + $0x9f8] sm:$0xff]  ;;  %v509_v49 = vld [vmem:[%s9893_s3 + $0xa88] sm:$0xff]  ;;  %v540_v50 = vld [vmem:[%s9893_s3 + $0xb80] sm:$0xff] }
  0x83   :  { %6180 = vmatpush3.bf16.msra.mxu1 %v6179_v1  ;;  %6182 = vmatprep.subr.bf16.mxu0 %v6181_v2  ;;  %v436_v1 = vld [vmem:[%s9893_s3 + $0x840] sm:$0xff]  ;;  %v437_v2 = vld [vmem:[%s9893_s3 + $0x848] sm:$0xff] }
  0x84   :  { %6214 = vmatprep.subr.bf16.mxu1 %v6213_v5  ;;  %v6229_v5 = vpack.c.bf16 %v485_v59, %v484_v58  ;;  %v492_v55 = vld [vmem:[%s9893_s3 + $0xa00] sm:$0xff]  ;;  %v493_v56 = vld [vmem:[%s9893_s3 + $0xa08] sm:$0xff] }
  0x85   :  { %1198 = vmatmul.mubr.f32.vlgmr.msra.gmra.mrb[30].mxu0 %v54_v12  ;;  %v161_v12 = vld [vmem:[%s9891_s1 + $0x3b8] sm:$0xff]  ;;  %v524_v58 = vld [vmem:[%s9893_s3 + $0xb00] sm:$0xff]  ;;  %v525_v59 = vld [vmem:[%s9893_s3 + $0xb08] sm:$0xff] }
  0x86   :  { %1288 = vmatmul.mubr.f32.vlgmr.msra.gmra.mrb[30].mxu1 %v56_v13  ;;  %6184 = vmatpush3.bf16.msra.mxu0 %v6183_v14  ;;  %v6199_v13 = vpack.c.bf16 %v437_v2, %v436_v1  ;;  %v160_v14 = vld [vmem:[%s9891_s1 + $0x3b0] sm:$0xff]  ;;  %v6247_v2 = vpack.c.bf16 %v493_v56, %v492_v55  ;;  %v528_v25 = vld [vmem:[%s9893_s3 + $0xb20] sm:$0xff] }
  0x87   :  { %6216 = vmatpush3.bf16.msra.mxu1 %v6215_v15  ;;  %1202 = vmatprep.mubr.f32.mxu0 %v81_v16  ;;  %v6231_v15 = vpack.c.bf16 %v469_v6, %v468_v3  ;;  %v6201_v16 = vpack.c.bf16 %v455_v8, %v454_v7  ;;  %v60_v1 = vld [vmem:[%s9891_s1 + $0x90] sm:$0xff]  ;;  %v6279_v3 = vpack.c.bf16 %v525_v59, %v524_v58  ;;  %v495_v6 = vld [vmem:[%s9893_s3 + $0xa18] sm:$0xff]  ;;  %v532_v55 = vld [vmem:[%s9893_s3 + $0xb40] sm:$0xff] }
  0x88   :  { %6186 = vmatprep.subr.bf16.mxu0 %v6185_v19  ;;  %6218 = vmatprep.subr.bf16.mxu1 %v6217_v20  ;;  %v470_v19 = vld [vmem:[%s9893_s3 + $0x950] sm:$0xff]  ;;  %v6233_v20 = vpack.c.bf16 %v487_v10, %v486_v9  ;;  %v527_v10 = vld [vmem:[%s9893_s3 + $0xb18] sm:$0xff]  ;;  %v533_v58 = vld [vmem:[%s9893_s3 + $0xb48] sm:$0xff] }
  0x89   :  { %1203 = vmatmul.mubr.f32.gmra.mrb[32].mxu0 %v80_v27  ;;  %1292 = vmatprep.mubr.f32.mxu1 %v83_v28  ;;  %v6203_v27 = vpack.c.bf16 %v439_v18, %v438_v17  ;;  %v61_v28 = vld [vmem:[%s9891_s1 + $0x98] sm:$0xff]  ;;  %v526_v9 = vld [vmem:[%s9893_s3 + $0xb10] sm:$0xff]  ;;  %v86_v18 = vld [vmem:[%s9891_s1 + $0x160] sm:$0xff] }
  0x8a   :  { %6188 = vmatpush3.bf16.msra.mxu0 %v6187_v29  ;;  %1293 = vmatmul.mubr.f32.gmra.mrb[32].mxu1 %v82_v30  ;;  %v6235_v29 = vpack.c.bf16 %v471_v21, %v470_v19  ;;  %v6205_v30 = vpack.c.bf16 %v457_v23, %v456_v22  ;;  %v6283_v19 = vpack.c.bf16 %v527_v10, %v526_v9  ;;  %v496_v21 = vld [vmem:[%s9893_s3 + $0xa20] sm:$0xff]  ;;  %v497_v22 = vld [vmem:[%s9893_s3 + $0xa28] sm:$0xff]  ;;  %v518_v59 = vld [vmem:[%s9893_s3 + $0xad0] sm:$0xff] }
  0x8b   :  { %6220 = vmatpush3.bf16.msra.mxu1 %v6219_v31  ;;  %1207 = vmatprep.mubr.f32.mxu0 %v107_v32  ;;  %v440_v31 = vld [vmem:[%s9893_s3 + $0x860] sm:$0xff]  ;;  %v441_v32 = vld [vmem:[%s9893_s3 + $0x868] sm:$0xff]  ;;  %v535_v9 = vld [vmem:[%s9893_s3 + $0xb58] sm:$0xff] }
  0x8c   :  { %6190 = vmatprep.subr.bf16.mxu0 %v6189_v35  ;;  %6222 = vmatprep.subr.bf16.mxu1 %v6221_v36  ;;  %v473_v35 = vld [vmem:[%s9893_s3 + $0x968] sm:$0xff]  ;;  %v458_v36 = vld [vmem:[%s9893_s3 + $0x8f0] sm:$0xff]  ;;  %v6207_v40 = vpack.c.bf16 %v441_v32, %v440_v31  ;;  %v110_v31 = vld [vmem:[%s9891_s1 + $0x220] sm:$0xff] }
  0x8d   :  { %1208 = vmatmul.mubr.f32.gmra.mrb[34].mxu0 %v106_v43  ;;  %1297 = vmatprep.mubr.f32.mxu1 %v109_v44  ;;  %v6239_v41 = vpack.c.bf16 %v473_v35, %v472_v33  ;;  %v6209_v42 = vpack.c.bf16 %v459_v37, %v458_v36  ;;  %v442_v43 = vld [vmem:[%s9893_s3 + $0x870] sm:$0xff]  ;;  %v443_v44 = vld [vmem:[%s9893_s3 + $0x878] sm:$0xff]  ;;  %v6255_v33 = vpack.c.bf16 %v497_v22, %v496_v21  ;;  %v520_v10 = vld [vmem:[%s9893_s3 + $0xae0] sm:$0xff] }
  0x8e   :  { %6192 = vmatpush3.bf16.msra.mxu0 %v6191_v45  ;;  %1298 = vmatmul.mubr.f32.gmra.mrb[34].mxu1 %v108_v46  ;;  %v474_v45 = vld [vmem:[%s9893_s3 + $0x970] sm:$0xff]  ;;  %v6241_v46 = vpack.c.bf16 %v491_v39, %v490_v38  ;;  %v113_v32 = vld [vmem:[%s9891_s1 + $0x238] sm:$0xff]  ;;  %v536_v21 = vld [vmem:[%s9893_s3 + $0xb60] sm:$0xff] }
  0x8f   :  { %6224 = vmatpush3.bf16.msra.mxu1 %v6223_v47  ;;  %1212 = vmatprep.mubr.f32.mxu0 %v133_v48  ;;  %v475_v47 = vld [vmem:[%s9893_s3 + $0x978] sm:$0xff]  ;;  %v508_v48 = vld [vmem:[%s9893_s3 + $0xa80] sm:$0xff]  ;;  %v498_v37 = vld [vmem:[%s9893_s3 + $0xa30] sm:$0xff] }
  0x90   :  { %6194 = vmatprep.subr.bf16.mxu0 %v6193_v52  ;;  %6226 = vmatprep.subr.bf16.mxu1 %v6225_v53  ;;  %v6211_v52 = vpack.c.bf16 %v443_v44, %v442_v43  ;;  %v6243_v53 = vpack.c.bf16 %v475_v47, %v474_v45  ;;  %v6245_v54 = vpack.c.bf16 %v509_v49, %v508_v48  ;;  %v137_v36 = vld [vmem:[%s9891_s1 + $0x2f8] sm:$0xff]  ;;  %v136_v39 = vld [vmem:[%s9891_s1 + $0x2f0] sm:$0xff]  ;;  %v516_v44 = vld [vmem:[%s9893_s3 + $0xac0] sm:$0xff] }
  0x91   :  { %1213 = vmatmul.mubr.f32.gmra.mrb[36].mxu0 %v132_v51  ;;  %1302 = vmatprep.mubr.f32.mxu1 %v135_v60  ;;  %v541_v51 = vld [vmem:[%s9893_s3 + $0xb88] sm:$0xff]  ;;  %v510_v60 = vld [vmem:[%s9893_s3 + $0xa90] sm:$0xff]  ;;  %v499_v38 = vld [vmem:[%s9893_s3 + $0xa38] sm:$0xff] }
  0x92   :  { %6196 = vmatpush3.bf16.msra.mxu0 %v6195_v61  ;;  %1303 = vmatmul.mubr.f32.gmra.mrb[36].mxu1 %v134_v62  ;;  %v6277_v57 = vpack.c.bf16 %v541_v51, %v540_v50  ;;  %v511_v61 = vld [vmem:[%s9893_s3 + $0xa98] sm:$0xff]  ;;  %v542_v62 = vld [vmem:[%s9893_s3 + $0xb90] sm:$0xff]  ;;  %v517_v45 = vld [vmem:[%s9893_s3 + $0xac8] sm:$0xff]  ;;  %v6259_v49 = vpack.c.bf16 %v499_v38, %v498_v37 }
  0x93   :  { %6228 = vmatpush3.bf16.msra.mxu1 %v6227_v0  ;;  %1217 = vmatprep.mubr.f32.mxu0 %v159_v63  ;;  %v543_v63 = vld [vmem:[%s9893_s3 + $0xb98] sm:$0xff]  ;;  %v58_v0 = vld [vmem:[%s9891_s1 + $0x80] sm:$0xff]  ;;  %v6249_v7 = vpack.c.bf16 %v511_v61, %v510_v60  ;;  %v549_v47 = vld [vmem:[%s9893_s3 + $0xbc8] sm:$0xff]  ;;  %v6261_v56 = vpack.c.bf16 %v517_v45, %v516_v44 }
  0x94   :  { %6198 = vmatprep.subr.bf16.mxu0 %v6197_v4  ;;  %6230 = vmatprep.subr.bf16.mxu1 %v6229_v5  ;;  %v85_v4 = vld [vmem:[%s9891_s1 + $0x158] sm:$0xff]  ;;  %v494_v5 = vld [vmem:[%s9893_s3 + $0xa10] sm:$0xff]  ;;  %v6281_v8 = vpack.c.bf16 %v543_v63, %v542_v62  ;;  %v139_v48 = vld [vmem:[%s9891_s1 + $0x308] sm:$0xff] }
  0x95   :  { %1218 = vmatmul.mubr.f32.gmra.mrb[38].mxu0 %v158_v11  ;;  %1307 = vmatprep.mubr.f32.mxu1 %v161_v12  ;;  %v512_v11 = vld [vmem:[%s9893_s3 + $0xaa0] sm:$0xff]  ;;  %v513_v12 = vld [vmem:[%s9893_s3 + $0xaa8] sm:$0xff]  ;;  %v6251_v17 = vpack.c.bf16 %v495_v6, %v494_v5  ;;  %v531_v43 = vld [vmem:[%s9893_s3 + $0xb38] sm:$0xff] }
  0x96   :  { %6200 = vmatpush3.bf16.msra.mxu0 %v6199_v13  ;;  %1308 = vmatmul.mubr.f32.gmra.mrb[38].mxu1 %v160_v14  ;;  %v544_v13 = vld [vmem:[%s9893_s3 + $0xba0] sm:$0xff]  ;;  %v545_v14 = vld [vmem:[%s9893_s3 + $0xba8] sm:$0xff]  ;;  %v6253_v23 = vpack.c.bf16 %v513_v12, %v512_v11  ;;  %v519_v60 = vld [vmem:[%s9893_s3 + $0xad8] sm:$0xff] }
  0x97   :  { %6232 = vmatpush3.bf16.msra.mxu1 %v6231_v15  ;;  %6202 = vmatprep.subr.bf16.mxu0 %v6201_v16  ;;  %v84_v15 = vld [vmem:[%s9891_s1 + $0x150] sm:$0xff]  ;;  %v87_v16 = vld [vmem:[%s9891_s1 + $0x168] sm:$0xff]  ;;  %v6285_v24 = vpack.c.bf16 %v545_v14, %v544_v13  ;;  %v138_v50 = vld [vmem:[%s9891_s1 + $0x300] sm:$0xff] }
  0x98   :  { %6234 = vmatprep.subr.bf16.mxu1 %v6233_v20  ;;  %1377 = vmatprep.mubr.f32.mxu0 %v59_v26  ;;  %v111_v20 = vld [vmem:[%s9891_s1 + $0x228] sm:$0xff]  ;;  %v550_v61 = vld [vmem:[%s9893_s3 + $0xbd0] sm:$0xff]  ;;  %v551_v62 = vld [vmem:[%s9893_s3 + $0xbd8] sm:$0xff] }
  0x99   :  { %1467 = vmatprep.mubr.f32.mxu1 %v61_v28  ;;  %v529_v26 = vld [vmem:[%s9893_s3 + $0xb28] sm:$0xff]  ;;  %v515_v28 = vld [vmem:[%s9893_s3 + $0xab8] sm:$0xff]  ;;  %v162_v63 = vld [vmem:[%s9891_s1 + $0x3c0] sm:$0xff] }
  0x9a   :  { %6204 = vmatpush3.bf16.msra.mxu0 %v6203_v27  ;;  %v514_v27 = vld [vmem:[%s9893_s3 + $0xab0] sm:$0xff]  ;;  %v6287_v35 = vpack.c.bf16 %v529_v26, %v528_v25  ;;  %v163_v51 = vld [vmem:[%s9891_s1 + $0x3c8] sm:$0xff]  ;;  %v503_v6 = vld [vmem:[%s9893_s3 + $0xa58] sm:$0xff] }
  0x9b   :  { %6236 = vmatpush3.bf16.msra.mxu1 %v6235_v29  ;;  %6206 = vmatprep.subr.bf16.mxu0 %v6205_v30  ;;  %v546_v29 = vld [vmem:[%s9893_s3 + $0xbb0] sm:$0xff]  ;;  %v547_v30 = vld [vmem:[%s9893_s3 + $0xbb8] sm:$0xff]  ;;  %v521_v11 = vld [vmem:[%s9893_s3 + $0xae8] sm:$0xff] }
  0x9c   :  { %6238 = vmatprep.subr.bf16.mxu1 %v6237_v34  ;;  %v112_v34 = vld [vmem:[%s9891_s1 + $0x230] sm:$0xff]  ;;  %v552_v12 = vld [vmem:[%s9893_s3 + $0xbe0] sm:$0xff]  ;;  %v553_v13 = vld [vmem:[%s9893_s3 + $0xbe8] sm:$0xff] }
  0x9d   :  { %v502_v5 = vld [vmem:[%s9893_s3 + $0xa50] sm:$0xff]  ;;  %v63_v14 = vld [vmem:[%s9891_s1 + $0xa8] sm:$0xff]  ;;  %v6301_v22 = vpack.c.bf16 %v553_v13, %v552_v12  ;;  %v523_v25 = vld [vmem:[%s9893_s3 + $0xaf8] sm:$0xff] }
  0x9e   :  { %6208 = vmatpush3.bf16.msra.mxu0 %v6207_v40  ;;  %v6257_v40 = vpack.c.bf16 %v515_v28, %v514_v27  ;;  %v554_v26 = vld [vmem:[%s9893_s3 + $0xbf0] sm:$0xff]  ;;  %v555_v27 = vld [vmem:[%s9893_s3 + $0xbf8] sm:$0xff]  ;;  %v1865_v37 = vld [vmem:[%s9894_s4 + $0x88] sm:$0xff] }
  0x9f   :  { %6240 = vmatpush3.bf16.msra.mxu1 %v6239_v41  ;;  %6210 = vmatprep.subr.bf16.mxu0 %v6209_v42  ;;  %v6289_v41 = vpack.c.bf16 %v547_v30, %v546_v29  ;;  %v530_v42 = vld [vmem:[%s9893_s3 + $0xb30] sm:$0xff]  ;;  %v1849_v44 = vld [vmem:[%s9894_s4 + $0x8] sm:$0xff] }
  0xa0   :  { %6242 = vmatprep.subr.bf16.mxu1 %v6241_v46  ;;  %v548_v46 = vld [vmem:[%s9893_s3 + $0xbc0] sm:$0xff]  ;;  %v1866_v45 = vld [vmem:[%s9894_s4 + $0x90] sm:$0xff] }
  0xa1   :  { %v116_v13 = vld [vmem:[%s9891_s1 + $0x250] sm:$0xff] }
  0xa2   :  { %6212 = vmatpush3.bf16.msra.mxu0 %v6211_v52  ;;  %v6291_v52 = vpack.c.bf16 %v531_v43, %v530_v42  ;;  %v1848_v43 = vld [vmem:[%s9894_s4] sm:$0xff] }
  0xa3   :  { %6244 = vmatpush3.bf16.msra.mxu1 %v6243_v53  ;;  %6246 = vmatprep.subr.bf16.mxu0 %v6245_v54  ;;  %v500_v53 = vld [vmem:[%s9893_s3 + $0xa40] sm:$0xff]  ;;  %v501_v54 = vld [vmem:[%s9893_s3 + $0xa48] sm:$0xff] }
  0xa4   :  { %6278 = vmatprep.subr.bf16.mxu1 %v6277_v57  ;;  %v6293_v57 = vpack.c.bf16 %v549_v47, %v548_v46  ;;  %v1867_v46 = vld [vmem:[%s9894_s4 + $0x98] sm:$0xff]  ;;  %v62_v47 = vld [vmem:[%s9891_s1 + $0xa0] sm:$0xff] }
  0xa5   :  { %1378 = vmatmul.mubr.f32.vlgmr.msra.gmra.mrb[40].mxu0 %v58_v0  ;;  %v165_v0 = vld [vmem:[%s9891_s1 + $0x3d8] sm:$0xff] }
  0xa6   :  { %1468 = vmatmul.mubr.f32.vlgmr.msra.gmra.mrb[40].mxu1 %v60_v1  ;;  %6248 = vmatpush3.bf16.msra.mxu0 %v6247_v2  ;;  %v6263_v1 = vpack.c.bf16 %v501_v54, %v500_v53  ;;  %v164_v2 = vld [vmem:[%s9891_s1 + $0x3d0] sm:$0xff]  ;;  %v559_v53 = vld [vmem:[%s9893_s3 + $0xc18] sm:$0xff] }
  0xa7   :  { %6280 = vmatpush3.bf16.msra.mxu1 %v6279_v3  ;;  %1382 = vmatprep.mubr.f32.mxu0 %v85_v4  ;;  %v6295_v3 = vpack.c.bf16 %v533_v58, %v532_v55  ;;  %v6265_v4 = vpack.c.bf16 %v519_v60, %v518_v59  ;;  %v89_v54 = vld [vmem:[%s9891_s1 + $0x178] sm:$0xff]  ;;  %v6337_v55 = vpack.c.bf16 %v1867_v46, %v1866_v45  ;;  %v1868_v58 = vld [vmem:[%s9894_s4 + $0xa0] sm:$0xff]  ;;  %v1869_v59 = vld [vmem:[%s9894_s4 + $0xa8] sm:$0xff] }
  0xa8   :  { %6250 = vmatprep.subr.bf16.mxu0 %v6249_v7  ;;  %6282 = vmatprep.subr.bf16.mxu1 %v6281_v8  ;;  %v534_v7 = vld [vmem:[%s9893_s3 + $0xb50] sm:$0xff]  ;;  %v6297_v8 = vpack.c.bf16 %v551_v62, %v550_v61  ;;  %v91_v61 = vld [vmem:[%s9891_s1 + $0x188] sm:$0xff]  ;;  %v1876_v45 = vld [vmem:[%s9894_s4 + $0xe0] sm:$0xff] }
  0xa9   :  { %1383 = vmatmul.mubr.f32.gmra.mrb[42].mxu0 %v84_v15  ;;  %1472 = vmatprep.mubr.f32.mxu1 %v87_v16  ;;  %v6267_v15 = vpack.c.bf16 %v503_v6, %v502_v5  ;;  %v65_v16 = vld [vmem:[%s9891_s1 + $0xb8] sm:$0xff]  ;;  %v88_v60 = vld [vmem:[%s9891_s1 + $0x170] sm:$0xff]  ;;  %v1852_v5 = vld [vmem:[%s9894_s4 + $0x20] sm:$0xff] }
  0xaa   :  { %6252 = vmatpush3.bf16.msra.mxu0 %v6251_v17  ;;  %1473 = vmatmul.mubr.f32.gmra.mrb[42].mxu1 %v86_v18  ;;  %v6299_v17 = vpack.c.bf16 %v535_v9, %v534_v7  ;;  %v6269_v18 = vpack.c.bf16 %v521_v11, %v520_v10  ;;  %v1853_v6 = vld [vmem:[%s9894_s4 + $0x28] sm:$0xff]  ;;  %v1870_v7 = vld [vmem:[%s9894_s4 + $0xb0] sm:$0xff]  ;;  %v114_v9 = vld [vmem:[%s9891_s1 + $0x240] sm:$0xff] }
  0xab   :  { %6284 = vmatpush3.bf16.msra.mxu1 %v6283_v19  ;;  %1387 = vmatprep.mubr.f32.mxu0 %v111_v20  ;;  %v504_v19 = vld [vmem:[%s9893_s3 + $0xa60] sm:$0xff]  ;;  %v505_v20 = vld [vmem:[%s9893_s3 + $0xa68] sm:$0xff]  ;;  %v117_v10 = vld [vmem:[%s9891_s1 + $0x258] sm:$0xff]  ;;  %v6343_v12 = vpack.c.bf16 %v1853_v6, %v1852_v5 }
  0xac   :  { %6254 = vmatprep.subr.bf16.mxu0 %v6253_v23  ;;  %6286 = vmatprep.subr.bf16.mxu1 %v6285_v24  ;;  %v537_v23 = vld [vmem:[%s9893_s3 + $0xb68] sm:$0xff]  ;;  %v522_v24 = vld [vmem:[%s9893_s3 + $0xaf0] sm:$0xff]  ;;  %v6271_v28 = vpack.c.bf16 %v505_v20, %v504_v19  ;;  %v1855_v19 = vld [vmem:[%s9894_s4 + $0x38] sm:$0xff] }
  0xad   :  { %1388 = vmatmul.mubr.f32.gmra.mrb[44].mxu0 %v110_v31  ;;  %1477 = vmatprep.mubr.f32.mxu1 %v113_v32  ;;  %v6303_v29 = vpack.c.bf16 %v537_v23, %v536_v21  ;;  %v6273_v30 = vpack.c.bf16 %v523_v25, %v522_v24  ;;  %v506_v31 = vld [vmem:[%s9893_s3 + $0xa70] sm:$0xff]  ;;  %v507_v32 = vld [vmem:[%s9893_s3 + $0xa78] sm:$0xff]  ;;  %v1872_v20 = vld [vmem:[%s9894_s4 + $0xc0] sm:$0xff] }
  0xae   :  { %6256 = vmatpush3.bf16.msra.mxu0 %v6255_v33  ;;  %1478 = vmatmul.mubr.f32.gmra.mrb[44].mxu1 %v112_v34  ;;  %v6305_v33 = vpack.c.bf16 %v555_v27, %v554_v26  ;;  %v538_v34 = vld [vmem:[%s9893_s3 + $0xb70] sm:$0xff]  ;;  %v6275_v38 = vpack.c.bf16 %v507_v32, %v506_v31  ;;  %v1873_v21 = vld [vmem:[%s9894_s4 + $0xc8] sm:$0xff]  ;;  %v142_v26 = vld [vmem:[%s9891_s1 + $0x320] sm:$0xff] }
  0xaf   :  { %6288 = vmatpush3.bf16.msra.mxu1 %v6287_v35  ;;  %1392 = vmatprep.mubr.f32.mxu0 %v137_v36  ;;  %v539_v35 = vld [vmem:[%s9893_s3 + $0xb78] sm:$0xff]  ;;  %v1864_v36 = vld [vmem:[%s9894_s4 + $0x80] sm:$0xff]  ;;  %v143_v23 = vld [vmem:[%s9891_s1 + $0x328] sm:$0xff] }
  0xb0   :  { %6258 = vmatprep.subr.bf16.mxu0 %v6257_v40  ;;  %6290 = vmatprep.subr.bf16.mxu1 %v6289_v41  ;;  %v556_v40 = vld [vmem:[%s9893_s3 + $0xc00] sm:$0xff]  ;;  %v557_v41 = vld [vmem:[%s9893_s3 + $0xc08] sm:$0xff]  ;;  %v6333_v42 = vpack.c.bf16 %v1865_v37, %v1864_v36  ;;  %v169_v36 = vld [vmem:[%s9891_s1 + $0x3f8] sm:$0xff] }
  0xb1   :  { %1393 = vmatmul.mubr.f32.gmra.mrb[46].mxu0 %v136_v39  ;;  %1482 = vmatprep.mubr.f32.mxu1 %v139_v48  ;;  %v6307_v39 = vpack.c.bf16 %v539_v35, %v538_v34  ;;  %v6310_v48 = vpack.c.bf16 %v557_v41, %v556_v40  ;;  %v564_v27 = vld [vmem:[%s9893_s3 + $0xc40] sm:$0xff]  ;;  %v1857_v32 = vld [vmem:[%s9894_s4 + $0x48] sm:$0xff]  ;;  %v1875_v34 = vld [vmem:[%s9894_s4 + $0xd8] sm:$0xff] }
  0xb2   :  { %6260 = vmatpush3.bf16.msra.mxu0 %v6259_v49  ;;  %1483 = vmatmul.mubr.f32.gmra.mrb[46].mxu1 %v138_v50  ;;  %v64_v49 = vld [vmem:[%s9891_s1 + $0xb0] sm:$0xff]  ;;  %v6754_v50 = vmov 0.0|0.0   ;;  %v1856_v31 = vld [vmem:[%s9894_s4 + $0x40] sm:$0xff]  ;;  %v567_v41 = vld [vmem:[%s9893_s3 + $0xc58] sm:$0xff] }
  0xb3   :  { %6292 = vmatpush3.bf16.msra.mxu1 %v6291_v52  ;;  %1397 = vmatprep.mubr.f32.mxu0 %v163_v51  ;;  %v6335_v51 = vpack.c.bf16 %v1849_v44, %v1848_v43  ;;  %v558_v52 = vld [vmem:[%s9893_s3 + $0xc10] sm:$0xff]  ;;  %v166_v35 = vld [vmem:[%s9891_s1 + $0x3e0] sm:$0xff]  ;;  %v1859_v44 = vld [vmem:[%s9894_s4 + $0x58] sm:$0xff] }
  0xb4   :  { %6262 = vmatprep.subr.bf16.mxu0 %v6261_v56  ;;  %6294 = vmatprep.subr.bf16.mxu1 %v6293_v57  ;;  %v1850_v56 = vld [vmem:[%s9894_s4 + $0x10] sm:$0xff]  ;;  %v1851_v57 = vld [vmem:[%s9894_s4 + $0x18] sm:$0xff]  ;;  %v6313_v62 = vpack.c.bf16 %v559_v53, %v558_v52  ;;  %v1877_v46 = vld [vmem:[%s9894_s4 + $0xe8] sm:$0xff] }
  0xb5   :  { %1398 = vmatmul.mubr.f32.gmra.mrb[48].mxu0 %v162_v63  ;;  %1487 = vmatprep.mubr.f32.mxu1 %v165_v0  ;;  %v6339_v63 = vpack.c.bf16 %v1851_v57, %v1850_v56  ;;  %v90_v0 = vld [vmem:[%s9891_s1 + $0x180] sm:$0xff]  ;;  %v566_v40 = vld [vmem:[%s9893_s3 + $0xc50] sm:$0xff]  ;;  %v569_v53 = vld [vmem:[%s9893_s3 + $0xc68] sm:$0xff] }
  0xb6   :  { %6264 = vmatpush3.bf16.msra.mxu0 %v6263_v1  ;;  %1488 = vmatmul.mubr.f32.gmra.mrb[48].mxu1 %v164_v2  ;;  %v560_v1 = vld [vmem:[%s9893_s3 + $0xc20] sm:$0xff]  ;;  %v561_v2 = vld [vmem:[%s9893_s3 + $0xc28] sm:$0xff]  ;;  %v1858_v43 = vld [vmem:[%s9894_s4 + $0x50] sm:$0xff] }
  0xb7   :  { %6296 = vmatpush3.bf16.msra.mxu1 %v6295_v3  ;;  %6266 = vmatprep.subr.bf16.mxu0 %v6265_v4  ;;  %v115_v3 = vld [vmem:[%s9891_s1 + $0x248] sm:$0xff]  ;;  %v6341_v4 = vpack.c.bf16 %v1869_v59, %v1868_v58  ;;  %v6316_v11 = vpack.c.bf16 %v561_v2, %v560_v1  ;;  %v568_v52 = vld [vmem:[%s9893_s3 + $0xc60] sm:$0xff]  ;;  %v1878_v57 = vld [vmem:[%s9894_s4 + $0xf0] sm:$0xff] }
  0xb8   :  { %6298 = vmatprep.subr.bf16.mxu1 %v6297_v8  ;;  %1557 = vmatprep.mubr.f32.mxu0 %v63_v14  ;;  %v1871_v8 = vld [vmem:[%s9894_s4 + $0xb8] sm:$0xff]  ;;  %v562_v14 = vld [vmem:[%s9893_s3 + $0xc30] sm:$0xff]  ;;  %v1861_v56 = vld [vmem:[%s9894_s4 + $0x68] sm:$0xff]  ;;  %v6328_v59 = vpack.c.bf16 %v569_v53, %v568_v52 }
  0xb9   :  { %1647 = vmatprep.mubr.f32.mxu1 %v65_v16  ;;  %v141_v16 = vld [vmem:[%s9891_s1 + $0x318] sm:$0xff]  ;;  %v1896_v2 = vld [vmem:[%s9894_s4 + $0x180] sm:$0xff] }
  0xba   :  { %6268 = vmatpush3.bf16.msra.mxu0 %v6267_v15  ;;  %v563_v15 = vld [vmem:[%s9893_s3 + $0xc38] sm:$0xff] }
  0xbb   :  { %6300 = vmatpush3.bf16.msra.mxu1 %v6299_v17  ;;  %6270 = vmatprep.subr.bf16.mxu0 %v6269_v18  ;;  %v6345_v17 = vpack.c.bf16 %v1871_v8, %v1870_v7  ;;  %v1854_v18 = vld [vmem:[%s9894_s4 + $0x30] sm:$0xff]  ;;  %v6319_v24 = vpack.c.bf16 %v563_v15, %v562_v14  ;;  %v1879_v58 = vld [vmem:[%s9894_s4 + $0xf8] sm:$0xff]  ;;  %v1880_v7 = vld [vmem:[%s9894_s4 + $0x100] sm:$0xff] }
  0xbc   :  { %6302 = vmatprep.subr.bf16.mxu1 %v6301_v22  ;;  %v140_v22 = vld [vmem:[%s9891_s1 + $0x310] sm:$0xff]  ;;  %v6347_v25 = vpack.c.bf16 %v1855_v19, %v1854_v18  ;;  %v1863_v1 = vld [vmem:[%s9894_s4 + $0x78] sm:$0xff]  ;;  %v1881_v8 = vld [vmem:[%s9894_s4 + $0x108] sm:$0xff] }
  0xbd   :  { %v1912_v14 = vld [vmem:[%s9894_s4 + $0x200] sm:$0xff]  ;;  %v1913_v15 = vld [vmem:[%s9894_s4 + $0x208] sm:$0xff]  ;;  %v6367_v18 = vpack.c.bf16 %v1881_v8, %v1880_v7  ;;  %v1930_v19 = vld [vmem:[%s9894_s4 + $0x290] sm:$0xff] }
  0xbe   :  { %6272 = vmatpush3.bf16.msra.mxu0 %v6271_v28  ;;  %v565_v28 = vld [vmem:[%s9893_s3 + $0xc48] sm:$0xff]  ;;  %v1935_v52 = vld [vmem:[%s9894_s4 + $0x2b8] sm:$0xff]  ;;  %v1888_v8 = vld [vmem:[%s9894_s4 + $0x140] sm:$0xff] }
  0xbf   :  { %6304 = vmatpush3.bf16.msra.mxu1 %v6303_v29  ;;  %6274 = vmatprep.subr.bf16.mxu0 %v6273_v30  ;;  %v167_v29 = vld [vmem:[%s9891_s1 + $0x3e8] sm:$0xff]  ;;  %v6349_v30 = vpack.c.bf16 %v1873_v21, %v1872_v20  ;;  %v6322_v37 = vpack.c.bf16 %v565_v28, %v564_v27  ;;  %v1931_v20 = vld [vmem:[%s9894_s4 + $0x298] sm:$0xff]  ;;  %v66_v21 = vld [vmem:[%s9891_s1 + $0xc0] sm:$0xff] }
  0xc0   :  { %6306 = vmatprep.subr.bf16.mxu1 %v6305_v33  ;;  %v1874_v33 = vld [vmem:[%s9894_s4 + $0xd0] sm:$0xff]  ;;  %v1900_v27 = vld [vmem:[%s9894_s4 + $0x1a0] sm:$0xff]  ;;  %v1901_v28 = vld [vmem:[%s9894_s4 + $0x1a8] sm:$0xff] }
  0xc1   :  { %v1798_v53 = vld [vmem:[%s9892_s2 + $0x118] sm:$0xff] }
  0xc2   :  { %6276 = vmatpush3.bf16.msra.mxu0 %v6275_v38  ;;  %v6351_v38 = vpack.c.bf16 %v1857_v32, %v1856_v31  ;;  %v1914_v31 = vld [vmem:[%s9894_s4 + $0x210] sm:$0xff]  ;;  %v1915_v32 = vld [vmem:[%s9894_s4 + $0x218] sm:$0xff] }
  0xc3   :  { %6308 = vmatpush3.bf16.msra.mxu1 %v6307_v39  ;;  %6309 = vmatprep.subr.bf16.mxu0 %v6754_v50  ;;  %v168_v39 = vld [vmem:[%s9891_s1 + $0x3f0] sm:$0xff] }
  0xc4   :  { %6334 = vmatprep.subr.bf16.mxu1 %v6333_v42  ;;  %v6353_v42 = vpack.c.bf16 %v1875_v34, %v1874_v33  ;;  %v1932_v34 = vld [vmem:[%s9894_s4 + $0x2a0] sm:$0xff] }
  0xc5   :  { %1558 = vmatmul.mubr.f32.vlgmr.msra.gmra.mrb[50].mxu0 %v62_v47  ;;  %v1764_v47 = vld [vmem:[%s9892_s2 + $0x8] sm:$0xff] }
  0xc6   :  { %1648 = vmatmul.mubr.f32.vlgmr.msra.gmra.mrb[50].mxu1 %v64_v49  ;;  %6311 = vmatpush1.bf16.msra.mxu0 %v6310_v48  ;;  %v6325_v48 = vpack.c.bf16 %v567_v41, %v566_v40  ;;  %v67_v49 = vld [vmem:[%s9891_s1 + $0xc8] sm:$0xff]  ;;  %v6403_v41 = vpack.c.bf16 %v1915_v32, %v1914_v31  ;;  %v1922_v32 = vld [vmem:[%s9894_s4 + $0x250] sm:$0xff] }
  0xc7   :  { %6336 = vmatpush3.bf16.msra.mxu1 %v6335_v51  ;;  %1562 = vmatprep.mubr.f32.mxu0 %v89_v54  ;;  %v6355_v51 = vpack.c.bf16 %v1859_v44, %v1858_v43  ;;  %v6357_v54 = vpack.c.bf16 %v1877_v46, %v1876_v45  ;;  %v1885_v40 = vld [vmem:[%s9894_s4 + $0x128] sm:$0xff]  ;;  %v1902_v43 = vld [vmem:[%s9894_s4 + $0x1b0] sm:$0xff]  ;;  %v1903_v44 = vld [vmem:[%s9894_s4 + $0x1b8] sm:$0xff] }
  0xc8   :  { %6312 = vmatprep.subr.bf16.mxu0 %v6754_v50  ;;  %6338 = vmatprep.subr.bf16.mxu1 %v6337_v55  ;;  %v1860_v55 = vld [vmem:[%s9894_s4 + $0x60] sm:$0xff] }
  0xc9   :  { %1563 = vmatmul.mubr.f32.gmra.mrb[52].mxu0 %v88_v60  ;;  %1652 = vmatprep.mubr.f32.mxu1 %v91_v61  ;;  %v6359_v60 = vpack.c.bf16 %v1861_v56, %v1860_v55  ;;  %v570_v61 = vld [vmem:[%s9893_s3 + $0xc70] sm:$0xff]  ;;  %v1916_v46 = vld [vmem:[%s9894_s4 + $0x220] sm:$0xff]  ;;  %v6377_v55 = vpack.c.bf16 %v1903_v44, %v1902_v43 }
  0xca   :  { %6314 = vmatpush1.bf16.msra.mxu0 %v6313_v62  ;;  %1653 = vmatmul.mubr.f32.gmra.mrb[52].mxu1 %v90_v0  ;;  %v571_v62 = vld [vmem:[%s9893_s3 + $0xc78] sm:$0xff]  ;;  %v1862_v0 = vld [vmem:[%s9894_s4 + $0x70] sm:$0xff] }
  0xcb   :  { %6340 = vmatpush3.bf16.msra.mxu1 %v6339_v63  ;;  %1567 = vmatprep.mubr.f32.mxu0 %v115_v3  ;;  %v6361_v63 = vpack.c.bf16 %v1879_v58, %v1878_v57  ;;  %v1897_v3 = vld [vmem:[%s9894_s4 + $0x188] sm:$0xff]  ;;  %v6363_v5 = vpack.c.bf16 %v1863_v1, %v1862_v0  ;;  %v1886_v56 = vld [vmem:[%s9894_s4 + $0x130] sm:$0xff]  ;;  %v1887_v57 = vld [vmem:[%s9894_s4 + $0x138] sm:$0xff] }
  0xcc   :  { %6315 = vmatprep.subr.bf16.mxu0 %v6754_v50  ;;  %6342 = vmatprep.subr.bf16.mxu1 %v6341_v4  ;;  %v6331_v4 = vpack.c.bf16 %v571_v62, %v570_v61  ;;  %v6365_v6 = vpack.c.bf16 %v1897_v3, %v1896_v2  ;;  %v1905_v61 = vld [vmem:[%s9894_s4 + $0x1c8] sm:$0xff]  ;;  %v1919_v0 = vld [vmem:[%s9894_s4 + $0x238] sm:$0xff]  ;;  %v1797_v1 = vld [vmem:[%s9892_s2 + $0x110] sm:$0xff]  ;;  %v6379_v2 = vpack.c.bf16 %v1887_v57, %v1886_v56 }
  0xcd   :  { %1568 = vmatmul.mubr.f32.gmra.mrb[54].mxu0 %v114_v9  ;;  %1657 = vmatprep.mubr.f32.mxu1 %v117_v10  ;;  %v1928_v9 = vld [vmem:[%s9894_s4 + $0x280] sm:$0xff]  ;;  %v1929_v10 = vld [vmem:[%s9894_s4 + $0x288] sm:$0xff]  ;;  %v1942_v56 = vld [vmem:[%s9894_s4 + $0x2f0] sm:$0xff] }
  0xce   :  { %6317 = vmatpush1.bf16.msra.mxu0 %v6316_v11  ;;  %1658 = vmatmul.mubr.f32.gmra.mrb[54].mxu1 %v116_v13  ;;  %v1898_v11 = vld [vmem:[%s9894_s4 + $0x190] sm:$0xff]  ;;  %v1763_v13 = vld [vmem:[%s9892_s2] sm:$0xff]  ;;  %v1943_v57 = vld [vmem:[%s9894_s4 + $0x2f8] sm:$0xff] }
  0xcf   :  { %6344 = vmatpush3.bf16.msra.mxu1 %v6343_v12  ;;  %1572 = vmatprep.mubr.f32.mxu0 %v141_v16  ;;  %v1899_v12 = vld [vmem:[%s9894_s4 + $0x198] sm:$0xff]  ;;  %v6755_v16 = vmov 0.0   ;;  %v1936_v3 = vld [vmem:[%s9894_s4 + $0x2c0] sm:$0xff] }
  0xd0   :  { %6318 = vmatprep.subr.bf16.mxu0 %v6754_v50  ;;  %6346 = vmatprep.subr.bf16.mxu1 %v6345_v17  ;;  %v572_v17 = vld [vmem:[%s9893_s3 + $0xc80] sm:$0x7f] }
  0xd1   :  { %1573 = vmatmul.mubr.f32.gmra.mrb[56].mxu0 %v140_v22  ;;  %1662 = vmatprep.mubr.f32.mxu1 %v143_v23  ;;  %v6397_v22 = vpack.c.bf16 %v1929_v10, %v1928_v9  ;;  %v6369_v23 = vpack.c.bf16 %v1899_v12, %v1898_v11  ;;  %v1889_v9 = vld [vmem:[%s9894_s4 + $0x148] sm:$0xff]  ;;  %v1906_v12 = vld [vmem:[%s9894_s4 + $0x1d0] sm:$0xff] }
  0xd2   :  { %6320 = vmatpush1.bf16.msra.mxu0 %v6319_v24  ;;  %1663 = vmatmul.mubr.f32.gmra.mrb[56].mxu1 %v142_v26  ;;  %v1882_v24 = vld [vmem:[%s9894_s4 + $0x110] sm:$0xff]  ;;  %v6399_v26 = vpack.c.bf16 %v1913_v15, %v1912_v14  ;;  %v171_v11 = vld [vmem:[%s9891_s1 + $0x408] sm:$0xff]  ;;  %v1920_v15 = vld [vmem:[%s9894_s4 + $0x240] sm:$0xff] }
  0xd3   :  { %6348 = vmatpush3.bf16.msra.mxu1 %v6347_v25  ;;  %1577 = vmatprep.mubr.f32.mxu0 %v167_v29  ;;  %v1883_v25 = vld [vmem:[%s9894_s4 + $0x118] sm:$0xff] }
  0xd4   :  { %6321 = vmatprep.subr.bf16.mxu0 %v6754_v50  ;;  %6350 = vmatprep.subr.bf16.mxu1 %v6349_v30  ;;  %v93_v29 = vld [vmem:[%s9891_s1 + $0x198] sm:$0xff]  ;;  %v6401_v30 = vpack.c.bf16 %v1931_v20, %v1930_v19  ;;  %v6371_v33 = vpack.c.bf16 %v1883_v25, %v1882_v24  ;;  %v6383_v19 = vpack.c.bf16 %v1889_v9, %v1888_v8  ;;  %v1938_v20 = vld [vmem:[%s9894_s4 + $0x2d0] sm:$0xff] }
  0xd5   :  { %1578 = vmatmul.mubr.f32.gmra.mrb[58].mxu0 %v166_v35  ;;  %1667 = vmatprep.mubr.f32.mxu1 %v169_v36  ;;  %v1933_v35 = vld [vmem:[%s9894_s4 + $0x2a8] sm:$0xff]  ;;  %v1781_v36 = vld [vmem:[%s9892_s2 + $0x90] sm:$0xff] }
  0xd6   :  { %6323 = vmatpush1.bf16.msra.mxu0 %v6322_v37  ;;  %1668 = vmatmul.mubr.f32.gmra.mrb[58].mxu1 %v168_v39  ;;  %v92_v37 = vld [vmem:[%s9891_s1 + $0x190] sm:$0xff]  ;;  %v1884_v39 = vld [vmem:[%s9894_s4 + $0x120] sm:$0xff]  ;;  %v6405_v45 = vpack.c.bf16 %v1933_v35, %v1932_v34 }
  0xd7   :  { %6352 = vmatpush3.bf16.msra.mxu1 %v6351_v38  ;;  %6324 = vmatprep.subr.bf16.mxu0 %v6754_v50  ;;  %v6373_v38 = vpack.c.bf16 %v1901_v28, %v1900_v27  ;;  %v1890_v25 = vld [vmem:[%s9894_s4 + $0x150] sm:$0xff]  ;;  %v1908_v28 = vld [vmem:[%s9894_s4 + $0x1e0] sm:$0xff] }
  0xd8   :  { %6354 = vmatprep.subr.bf16.mxu1 %v6353_v42  ;;  %2194 = vmatprep.mubr.f32.mxu1 %v1764_v47  ;;  %v119_v42 = vld [vmem:[%s9891_s1 + $0x268] sm:$0xff]  ;;  %v1831_v34 = vld [vmem:[%s9892_s2 + $0x220] sm:$0xff] }
  0xd9   :  { %4488 = vmatprep.mubr.msk.f32.mxu0 %vm573_vm0, %v67_v49  ;;  %v1917_v47 = vld [vmem:[%s9894_s4 + $0x228] sm:$0xff]  ;;  %v6375_v49 = vpack.c.bf16 %v1885_v40, %v1884_v39 }
  0xda   :  { %6326 = vmatpush1.bf16.msra.mxu0 %v6325_v48  ;;  %v1780_v48 = vld [vmem:[%s9892_s2 + $0x88] sm:$0xff]  ;;  %v6407_v58 = vpack.c.bf16 %v1917_v47, %v1916_v46  ;;  %v1910_v46 = vld [vmem:[%s9894_s4 + $0x1f0] sm:$0xff]  ;;  %v1911_v47 = vld [vmem:[%s9894_s4 + $0x1f8] sm:$0xff] }
  0xdb   :  { %6356 = vmatpush3.bf16.msra.mxu1 %v6355_v51  ;;  %6327 = vmatprep.subr.bf16.mxu0 %v6754_v50  ;;  %v1934_v51 = vld [vmem:[%s9894_s4 + $0x2b0] sm:$0xff] }
  0xdc   :  { %6358 = vmatprep.subr.bf16.mxu1 %v6357_v54  ;;  %v118_v54 = vld [vmem:[%s9891_s1 + $0x260] sm:$0xff]  ;;  %v6409_v62 = vpack.c.bf16 %v1935_v52, %v1934_v51 }
  0xdd   :  { %v1924_v52 = vld [vmem:[%s9894_s4 + $0x260] sm:$0xff] }
  0xde   :  { %6329 = vmatpush1.bf16.msra.mxu0 %v6328_v59  ;;  %v145_v59 = vld [vmem:[%s9891_s1 + $0x338] sm:$0xff] }
  0xdf   :  { %6360 = vmatpush3.bf16.msra.mxu1 %v6359_v60  ;;  %6330 = vmatprep.subr.bf16.mxu0 %v6754_v50  ;;  %v1904_v60 = vld [vmem:[%s9894_s4 + $0x1c0] sm:$0xff] }
  0xe0   :  { %6362 = vmatprep.subr.bf16.mxu1 %v6361_v63  ;;  %v1918_v63 = vld [vmem:[%s9894_s4 + $0x230] sm:$0xff]  ;;  %v6381_v7 = vpack.c.bf16 %v1905_v61, %v1904_v60  ;;  %v1895_v60 = vld [vmem:[%s9894_s4 + $0x178] sm:$0xff] }
  0xe1   :  { %v6411_v10 = vpack.c.bf16 %v1919_v0, %v1918_v63  ;;  %v1960_v0 = vld [vmem:[%s9894_s4 + $0x380] sm:$0xff] }
  0xe2   :  { %6332 = vmatpush1.bf16.msra.mxu0 %v6331_v4  ;;  %v1937_v4 = vld [vmem:[%s9894_s4 + $0x2c8] sm:$0xff] }
  0xe3   :  { %6364 = vmatpush3.bf16.msra.mxu1 %v6363_v5  ;;  %1705 = vmatprep.subr.mxu0 %v6755_v16  ;;  %v1815_v5 = vld [vmem:[%s9892_s2 + $0x1a0] sm:$0xff]  ;;  %v6413_v14 = vpack.c.bf16 %v1937_v4, %v1936_v3  ;;  %v6425_v4 = vpack.c.bf16 %v1943_v57, %v1942_v56  ;;  %v1997_v56 = vld [vmem:[%s9894_s4 + $0x4a8] sm:$0xff] }
  0xe4   :  { %6366 = vmatprep.subr.bf16.mxu1 %v6365_v6  ;;  %v144_v6 = vld [vmem:[%s9891_s1 + $0x330] sm:$0xff] }
  0xe6   :  { %2195 = vmatmul.mubr.f32.vlgmr.msra.gmra.mrb[60].mxu1 %v1763_v13  ;;  %4487 = vmatpush1.msk.msra.mxu0 %vm589_vm1, %v572_v17  ;;  %v1907_v13 = vld [vmem:[%s9894_s4 + $0x1d8] sm:$0xff]  ;;  %v1921_v17 = vld [vmem:[%s9894_s4 + $0x248] sm:$0xff] }
  0xe7   :  { %6368 = vmatpush3.bf16.msra.mxu1 %v6367_v18  ;;  %1738 = vmatmul.mubr.f32.vlgmr.msra.gmra.mrb[60].mxu0 %v66_v21  ;;  %v1814_v18 = vld [vmem:[%s9892_s2 + $0x198] sm:$0xff]  ;;  %v6385_v24 = vpack.c.bf16 %v1907_v13, %v1906_v12  ;;  %v6415_v27 = vpack.c.bf16 %v1921_v17, %v1920_v15  ;;  %v1945_v15 = vld [vmem:[%s9894_s4 + $0x308] sm:$0xff] }
  0xe8   :  { %6398 = vmatprep.subr.bf16.mxu0 %v6397_v22  ;;  %6370 = vmatprep.subr.bf16.mxu1 %v6369_v23  ;;  %v1939_v21 = vld [vmem:[%s9894_s4 + $0x2d8] sm:$0xff]  ;;  %v1832_v22 = vld [vmem:[%s9892_s2 + $0x228] sm:$0xff]  ;;  %v170_v23 = vld [vmem:[%s9891_s1 + $0x400] sm:$0xff] }
  0xe9   :  { %6400 = vmatpush3.bf16.msra.mxu0 %v6399_v26  ;;  %4489 = vmatprep.mubr.msk.f32.mxu0 %vm573_vm0, %v93_v29  ;;  %v1891_v26 = vld [vmem:[%s9894_s4 + $0x158] sm:$0xff]  ;;  %v1909_v29 = vld [vmem:[%s9894_s4 + $0x1e8] sm:$0xff]  ;;  %v6417_v31 = vpack.c.bf16 %v1939_v21, %v1938_v20  ;;  %v1962_v20 = vld [vmem:[%s9894_s4 + $0x390] sm:$0xff] }
  0xea   :  { %6402 = vmatprep.subr.bf16.mxu0 %v6401_v30  ;;  %2199 = vmatprep.mubr.f32.mxu1 %v1781_v36  ;;  %v1768_v30 = vld [vmem:[%s9892_s2 + $0x28] sm:$0xff]  ;;  %v6387_v35 = vpack.c.bf16 %v1891_v26, %v1890_v25  ;;  %v1940_v36 = vld [vmem:[%s9894_s4 + $0x2e0] sm:$0xff]  ;;  %v6389_v40 = vpack.c.bf16 %v1909_v29, %v1908_v28  ;;  %v1963_v21 = vld [vmem:[%s9894_s4 + $0x398] sm:$0xff] }
  0xeb   :  { %6372 = vmatpush3.bf16.msra.mxu1 %v6371_v33  ;;  %1743 = vmatmul.mubr.f32.gmra.mrb[62].mxu0 %v92_v37  ;;  %v1923_v33 = vld [vmem:[%s9894_s4 + $0x258] sm:$0xff]  ;;  %v1941_v37 = vld [vmem:[%s9894_s4 + $0x2e8] sm:$0xff]  ;;  %v1976_v25 = vld [vmem:[%s9894_s4 + $0x400] sm:$0xff] }
  0xec   :  { %6374 = vmatprep.subr.bf16.mxu1 %v6373_v38  ;;  %4490 = vmatprep.mubr.msk.f32.mxu0 %vm573_vm0, %v119_v42  ;;  %v1766_v38 = vld [vmem:[%s9892_s2 + $0x18] sm:$0xff]  ;;  %v1893_v42 = vld [vmem:[%s9894_s4 + $0x168] sm:$0xff]  ;;  %v6421_v51 = vpack.c.bf16 %v1941_v37, %v1940_v36  ;;  %v1765_v29 = vld [vmem:[%s9892_s2 + $0x10] sm:$0xff] }
  0xed   :  { %6404 = vmatpush3.bf16.msra.mxu0 %v6403_v41  ;;  %2200 = vmatmul.mubr.f32.gmra.mrb[62].mxu1 %v1780_v48  ;;  %v1892_v41 = vld [vmem:[%s9894_s4 + $0x160] sm:$0xff]  ;;  %v1977_v26 = vld [vmem:[%s9894_s4 + $0x408] sm:$0xff]  ;;  %v1946_v36 = vld [vmem:[%s9894_s4 + $0x310] sm:$0xff] }
  0xee   :  { %6406 = vmatprep.subr.bf16.mxu0 %v6405_v45  ;;  %2204 = vmatprep.mubr.f32.mxu1 %v1798_v53  ;;  %v6419_v45 = vpack.c.bf16 %v1923_v33, %v1922_v32  ;;  %v1925_v53 = vld [vmem:[%s9894_s4 + $0x268] sm:$0xff]  ;;  %v1995_v32 = vld [vmem:[%s9894_s4 + $0x498] sm:$0xff] }
  0xef   :  { %6376 = vmatpush3.bf16.msra.mxu1 %v6375_v49  ;;  %1748 = vmatmul.mubr.f32.gmra.mrb[64].mxu0 %v118_v54  ;;  %v6423_v63 = vpack.c.bf16 %v1925_v53, %v1924_v52  ;;  %v1947_v37 = vld [vmem:[%s9894_s4 + $0x318] sm:$0xff] }
  0xf0   :  { %6378 = vmatprep.subr.bf16.mxu1 %v6377_v55  ;;  %4491 = vmatprep.mubr.msk.f32.mxu0 %vm573_vm0, %v145_v59  ;;  %v6391_v55 = vpack.c.bf16 %v1893_v42, %v1892_v41  ;;  %v1894_v59 = vld [vmem:[%s9894_s4 + $0x170] sm:$0xff]  ;;  %v1964_v42 = vld [vmem:[%s9894_s4 + $0x3a0] sm:$0xff]  ;;  %v1782_v53 = vld [vmem:[%s9892_s2 + $0x98] sm:$0xff] }
  0xf1   :  { %6408 = vmatpush3.bf16.msra.mxu0 %v6407_v58  ;;  %2205 = vmatmul.mubr.f32.gmra.mrb[64].mxu1 %v1797_v1  ;;  %v6393_v58 = vpack.c.bf16 %v1911_v47, %v1910_v46  ;;  %v1961_v1 = vld [vmem:[%s9894_s4 + $0x388] sm:$0xff]  ;;  %v6395_v9 = vpack.c.bf16 %v1895_v60, %v1894_v59  ;;  %v1785_v46 = vld [vmem:[%s9892_s2 + $0xb0] sm:$0xff]  ;;  %v1948_v60 = vld [vmem:[%s9894_s4 + $0x320] sm:$0xff] }
  0xf2   :  { %6410 = vmatprep.subr.bf16.mxu0 %v6409_v62  ;;  %2209 = vmatprep.mubr.f32.mxu1 %v1815_v5  ;;  %v1926_v5 = vld [vmem:[%s9894_s4 + $0x270] sm:$0xff]  ;;  %v6429_v13 = vpack.c.bf16 %v1961_v1, %v1960_v0  ;;  %v1784_v0 = vld [vmem:[%s9892_s2 + $0xa8] sm:$0xff] }
  0xf3   :  { %6380 = vmatpush3.bf16.msra.mxu1 %v6379_v2  ;;  %1753 = vmatmul.mubr.f32.gmra.mrb[66].mxu0 %v144_v6  ;;  %v1927_v6 = vld [vmem:[%s9894_s4 + $0x278] sm:$0xff] }
  0xf4   :  { %6382 = vmatprep.subr.bf16.mxu1 %v6381_v7  ;;  %4492 = vmatprep.mubr.msk.f32.mxu0 %vm573_vm0, %v171_v11  ;;  %v1993_v11 = vld [vmem:[%s9894_s4 + $0x488] sm:$0xff] }
  0xf5   :  { %6412 = vmatpush3.bf16.msra.mxu0 %v6411_v10  ;;  %2210 = vmatmul.mubr.f32.gmra.mrb[66].mxu1 %v1814_v18  ;;  %v1992_v10 = vld [vmem:[%s9894_s4 + $0x480] sm:$0xff]  ;;  %v6427_v18 = vpack.c.bf16 %v1927_v6, %v1926_v5 }
  0xf6   :  { %6414 = vmatprep.subr.bf16.mxu0 %v6413_v14  ;;  %2214 = vmatprep.mubr.f32.mxu1 %v1832_v22  ;;  %v1944_v14 = vld [vmem:[%s9894_s4 + $0x300] sm:$0xff] }
  0xf7   :  { %6384 = vmatpush3.bf16.msra.mxu1 %v6383_v19  ;;  %1758 = vmatmul.mubr.f32.gmra.mrb[68].mxu0 %v170_v23 }
  0xf8   :  { %v4618_v39 = vpop.f32.mrb[0].mxu0  ;;  %6386 = vmatprep.subr.bf16.mxu1 %v6385_v24  ;;  %2374 = vmatprep.mubr.f32.mxu0 %v1768_v30  ;;  %v6461_v24 = vpack.c.bf16 %v1993_v11, %v1992_v10  ;;  %v6431_v30 = vpack.c.bf16 %v1945_v15, %v1944_v14  ;;  %v1981_v10 = vld [vmem:[%s9894_s4 + $0x428] sm:$0xff]  ;;  %v1998_v15 = vld [vmem:[%s9894_s4 + $0x4b0] sm:$0xff] }
  0xf9   :  { %v4665_v43 = vpop.f32.mrb[0].mxu1  ;;  %6416 = vmatpush3.bf16.msra.mxu0 %v6415_v27  ;;  %v4619_v44 = vpop.f32.mrb[1].mxu0  ;;  %2215 = vmatmul.mubr.f32.gmra.mrb[68].mxu1 %v1831_v34  ;;  %v1783_v34 = vld [vmem:[%s9892_s2 + $0xa0] sm:$0xff] }
  0xfa   :  { %v4620_v48 = vadd.f32 %v4619_v44, %v4618_v39  ;;  %v4666_v49 = vpop.f32.mrb[1].mxu1  ;;  %6418 = vmatprep.subr.bf16.mxu0 %v6417_v31  ;;  %2284 = vmatprep.mubr.f32.mxu1 %v1766_v38  ;;  %v1994_v31 = vld [vmem:[%s9894_s4 + $0x490] sm:$0xff]  ;;  %v1767_v39 = vld [vmem:[%s9892_s2 + $0x20] sm:$0xff] }
  0xfb   :  { %v4667_v54 = vadd.f32 %v4666_v49, %v4665_v43  ;;  %6388 = vmatpush3.bf16.msra.mxu1 %v6387_v35  ;;  %v6433_v35 = vpack.c.bf16 %v1963_v21, %v1962_v20  ;;  %v1965_v43 = vld [vmem:[%s9894_s4 + $0x3a8] sm:$0xff]  ;;  %v6465_v47 = vpack.c.bf16 %v1995_v32, %v1994_v31  ;;  %v1979_v49 = vld [vmem:[%s9894_s4 + $0x418] sm:$0xff]  ;;  %v1817_v20 = vld [vmem:[%s9892_s2 + $0x1b0] sm:$0xff] }
  0xfc   :  { %6390 = vmatprep.subr.bf16.mxu1 %v6389_v40  ;;  %v4621_v61 = vpop.f32.mrb[2].mxu0  ;;  %v6463_v40 = vpack.c.bf16 %v1977_v26, %v1976_v25  ;;  %v6437_v59 = vpack.c.bf16 %v1965_v43, %v1964_v42  ;;  %v1982_v31 = vld [vmem:[%s9894_s4 + $0x430] sm:$0xff]  ;;  %v1983_v32 = vld [vmem:[%s9894_s4 + $0x438] sm:$0xff] }
  0xfd   :  { %v8751_v62 = vadd.f32 %v4667_v54, %v4620_v48  ;;  %6420 = vmatpush3.bf16.msra.mxu0 %v6419_v45  ;;  %v4668_v2 = vpop.f32.mrb[2].mxu1  ;;  %v4622_v3 = vpop.f32.mrb[3].mxu0  ;;  %v1978_v48 = vld [vmem:[%s9894_s4 + $0x410] sm:$0xff]  ;;  %v6435_v54 = vpack.c.bf16 %v1947_v37, %v1946_v36  ;;  %v2001_v36 = vld [vmem:[%s9894_s4 + $0x4c8] sm:$0xff]  ;;  %v1834_v37 = vld [vmem:[%s9892_s2 + $0x238] sm:$0xff]  ;;  %v6475_v43 = vpack.c.bf16 %v1983_v32, %v1982_v31 }
  0xfe   :  { %6422 = vmatprep.subr.bf16.mxu0 %v6421_v51  ;;  %v4623_v7 = vadd.f32 %v4622_v3, %v4621_v61  ;;  %v4669_v8 = vpop.f32.mrb[3].mxu1  ;;  %v1949_v61 = vld [vmem:[%s9894_s4 + $0x328] sm:$0xff]  ;;  %v6467_v1 = vpack.c.bf16 %v1979_v49, %v1978_v48  ;;  %v1966_v3 = vld [vmem:[%s9894_s4 + $0x3b0] sm:$0xff]  ;;  %v1818_v42 = vld [vmem:[%s9892_s2 + $0x1b8] sm:$0xff] }
  0xff   :  { %6392 = vmatpush3.bf16.msra.mxu1 %v6391_v55  ;;  %v4670_v12 = vadd.f32 %v4669_v8, %v4668_v2  ;;  %v1996_v55 = vld [vmem:[%s9894_s4 + $0x4a0] sm:$0xff]  ;;  %v6439_v14 = vpack.c.bf16 %v1949_v61, %v1948_v60  ;;  %v1985_v49 = vld [vmem:[%s9894_s4 + $0x448] sm:$0xff]  ;;  %v1958_v32 = vld [vmem:[%s9894_s4 + $0x370] sm:$0xff] }
 0x100   :  { %6394 = vmatprep.subr.bf16.mxu1 %v6393_v58  ;;  %v4624_v17 = vpop.f32.mrb[4].mxu0  ;;  %v1800_v58 = vld [vmem:[%s9892_s2 + $0x128] sm:$0xff]  ;;  %v6469_v8 = vpack.c.bf16 %v1997_v56, %v1996_v55  ;;  %v1984_v48 = vld [vmem:[%s9894_s4 + $0x440] sm:$0xff]  ;;  %v1954_v56 = vld [vmem:[%s9894_s4 + $0x350] sm:$0xff] }
 0x101   :  { %6424 = vmatpush3.bf16.msra.mxu0 %v6423_v63  ;;  %v8777_v19 = vadd.f32 %v4670_v12, %v4623_v7  ;;  %v4671_v22 = vpop.f32.mrb[4].mxu1  ;;  %v4625_v23 = vpop.f32.mrb[5].mxu0  ;;  %v1802_v7 = vld [vmem:[%s9892_s2 + $0x138] sm:$0xff]  ;;  %v6479_v60 = vpack.c.bf16 %v1985_v49, %v1984_v48  ;;  %v1972_v61 = vld [vmem:[%s9894_s4 + $0x3e0] sm:$0xff]  ;;  %v2057_v48 = vld [vmem:[%s9894_s4 + $0x688] sm:$0xff] }
 0x102   :  { %6426 = vmatprep.subr.bf16.mxu0 %v6425_v4  ;;  %v4626_v27 = vadd.f32 %v4625_v23, %v4624_v17  ;;  %v4672_v28 = vpop.f32.mrb[5].mxu1  ;;  %v1967_v4 = vld [vmem:[%s9894_s4 + $0x3b8] sm:$0xff] }
 0x103   :  { %6396 = vmatpush3.bf16.msra.mxu1 %v6395_v9  ;;  %v4673_v33 = vadd.f32 %v4672_v28, %v4671_v22  ;;  %v1980_v9 = vld [vmem:[%s9894_s4 + $0x420] sm:$0xff]  ;;  %v1999_v17 = vld [vmem:[%s9894_s4 + $0x4b8] sm:$0xff]  ;;  %v6441_v21 = vpack.c.bf16 %v1967_v4, %v1966_v3  ;;  %v1950_v22 = vld [vmem:[%s9894_s4 + $0x330] sm:$0xff] }
 0x104   :  { %6430 = vmatprep.subr.bf16.mxu1 %v6429_v13  ;;  %v4627_v38 = vpop.f32.mrb[6].mxu0  ;;  %v1799_v13 = vld [vmem:[%s9892_s2 + $0x120] sm:$0xff]  ;;  %v1951_v23 = vld [vmem:[%s9894_s4 + $0x338] sm:$0xff]  ;;  %v6471_v25 = vpack.c.bf16 %v1981_v10, %v1980_v9  ;;  %v1969_v28 = vld [vmem:[%s9894_s4 + $0x3c8] sm:$0xff] }
 0x105   :  { %6428 = vmatpush3.bf16.msra.mxu0 %v6427_v18  ;;  %v8812_v41 = vadd.f32 %v4673_v33, %v4626_v27  ;;  %v4674_v44 = vpop.f32.mrb[6].mxu1  ;;  %v4628_v45 = vpop.f32.mrb[7].mxu0  ;;  %v1968_v27 = vld [vmem:[%s9894_s4 + $0x3c0] sm:$0xff]  ;;  %v1816_v33 = vld [vmem:[%s9892_s2 + $0x1a8] sm:$0xff]  ;;  %v1987_v3 = vld [vmem:[%s9894_s4 + $0x458] sm:$0xff] }
 0x106   :  { %2285 = vmatmul.mubr.f32.vlgmr.msra.gmra.mrb[70].mxu1 %v1765_v29  ;;  %6462 = vmatprep.subr.bf16.mxu0 %v6461_v24  ;;  %v4629_v51 = vadd.f32 %v4628_v45, %v4627_v38  ;;  %v4675_v52 = vpop.f32.mrb[7].mxu1  ;;  %v1801_v24 = vld [vmem:[%s9892_s2 + $0x130] sm:$0xff]  ;;  %v1819_v29 = vld [vmem:[%s9892_s2 + $0x1c0] sm:$0xff]  ;;  %v6445_v38 = vpack.c.bf16 %v1969_v28, %v1968_v27  ;;  %v1971_v45 = vld [vmem:[%s9894_s4 + $0x3d8] sm:$0xff] }
 0x107   :  { %6432 = vmatpush3.bf16.msra.mxu1 %v6431_v30  ;;  %2289 = vmatprep.mubr.f32.mxu1 %v1783_v34  ;;  %v4676_v57 = vadd.f32 %v4675_v52, %v4674_v44  ;;  %v6473_v30 = vpack.c.bf16 %v1999_v17, %v1998_v15  ;;  %v6443_v34 = vpack.c.bf16 %v1951_v23, %v1950_v22  ;;  %v1970_v44 = vld [vmem:[%s9894_s4 + $0x3d0] sm:$0xff]  ;;  %v1772_v4 = vld [vmem:[%s9892_s2 + $0x48] sm:$0xff]  ;;  %v1956_v10 = vld [vmem:[%s9894_s4 + $0x360] sm:$0xff] }
 0x108   :  { %2375 = vmatmul.mubr.f32.vlgmr.msra.gmra.mrb[70].mxu0 %v1767_v39  ;;  %6434 = vmatprep.subr.bf16.mxu1 %v6433_v35  ;;  %v4630_v63 = vpop.f32.mrb[8].mxu0  ;;  %v2000_v35 = vld [vmem:[%s9894_s4 + $0x4c0] sm:$0xff]  ;;  %v6449_v55 = vpack.c.bf16 %v1971_v45, %v1970_v44  ;;  %v1974_v15 = vld [vmem:[%s9894_s4 + $0x3f0] sm:$0xff]  ;;  %v1975_v17 = vld [vmem:[%s9894_s4 + $0x3f8] sm:$0xff] }
 0x109   :  { %6464 = vmatpush3.bf16.msra.mxu0 %v6463_v40  ;;  %2379 = vmatprep.mubr.f32.mxu0 %v1785_v46  ;;  %v8850_v2 = vadd.f32 %v4676_v57, %v4629_v51  ;;  %v4677_v5 = vpop.f32.mrb[8].mxu1  ;;  %v4631_v6 = vpop.f32.mrb[9].mxu0  ;;  %v1952_v39 = vld [vmem:[%s9894_s4 + $0x340] sm:$0xff]  ;;  %v1953_v40 = vld [vmem:[%s9894_s4 + $0x348] sm:$0xff]  ;;  %v1833_v51 = vld [vmem:[%s9892_s2 + $0x230] sm:$0xff]  ;;  %v6457_v31 = vpack.c.bf16 %v1975_v17, %v1974_v15 }
 0x10a   :  { %2290 = vmatmul.mubr.f32.gmra.mrb[72].mxu1 %v1782_v53  ;;  %6466 = vmatprep.subr.bf16.mxu0 %v6465_v47  ;;  %v4632_v11 = vadd.f32 %v4631_v6, %v4630_v63  ;;  %v4678_v12 = vpop.f32.mrb[9].mxu1  ;;  %v1836_v46 = vld [vmem:[%s9892_s2 + $0x248] sm:$0xff]  ;;  %v6477_v47 = vpack.c.bf16 %v2001_v36, %v2000_v35  ;;  %v6447_v52 = vpack.c.bf16 %v1953_v40, %v1952_v39  ;;  %v2002_v53 = vld [vmem:[%s9894_s4 + $0x4d0] sm:$0xff]  ;;  %v1955_v57 = vld [vmem:[%s9894_s4 + $0x358] sm:$0xff] }
 0x10b   :  { %6436 = vmatpush3.bf16.msra.mxu1 %v6435_v54  ;;  %2294 = vmatprep.mubr.f32.mxu1 %v1800_v58  ;;  %v4679_v18 = vadd.f32 %v4678_v12, %v4677_v5  ;;  %v2003_v54 = vld [vmem:[%s9894_s4 + $0x4d8] sm:$0xff]  ;;  %v1973_v63 = vld [vmem:[%s9894_s4 + $0x3e8] sm:$0xff]  ;;  %v6451_v5 = vpack.c.bf16 %v1955_v57, %v1954_v56  ;;  %v2004_v6 = vld [vmem:[%s9894_s4 + $0x4e0] sm:$0xff] }
 0x10c   :  { %2380 = vmatmul.mubr.f32.gmra.mrb[72].mxu0 %v1784_v0  ;;  %6438 = vmatprep.subr.bf16.mxu1 %v6437_v59  ;;  %v1770_v58 = vld [vmem:[%s9892_s2 + $0x38] sm:$0xff]  ;;  %v1835_v59 = vld [vmem:[%s9892_s2 + $0x240] sm:$0xff]  ;;  %v6481_v0 = vpack.c.bf16 %v2003_v54, %v2002_v53  ;;  %v6453_v9 = vpack.c.bf16 %v1973_v63, %v1972_v61  ;;  %v1989_v23 = vld [vmem:[%s9894_s4 + $0x468] sm:$0xff] }
 0x10d   :  { %6468 = vmatpush3.bf16.msra.mxu0 %v6467_v1  ;;  %2384 = vmatprep.mubr.f32.mxu0 %v1802_v7  ;;  %v8888_v26 = vadd.f32 %v4679_v18, %v4632_v11  ;;  %v1986_v1 = vld [vmem:[%s9894_s4 + $0x450] sm:$0xff]  ;;  %v2005_v7 = vld [vmem:[%s9894_s4 + $0x4e8] sm:$0xff]  ;;  %v1988_v22 = vld [vmem:[%s9894_s4 + $0x460] sm:$0xff] }
 0x10e   :  { %2295 = vmatmul.mubr.f32.gmra.mrb[74].mxu1 %v1799_v13  ;;  %6470 = vmatprep.subr.bf16.mxu0 %v6469_v8  ;;  %v1957_v11 = vld [vmem:[%s9894_s4 + $0x368] sm:$0xff]  ;;  %v2006_v27 = vld [vmem:[%s9894_s4 + $0x4f0] sm:$0xff]  ;;  %v2007_v28 = vld [vmem:[%s9894_s4 + $0x4f8] sm:$0xff]  ;;  %v6487_v36 = vpack.c.bf16 %v1989_v23, %v1988_v22 }
 0x10f   :  { %6440 = vmatpush3.bf16.msra.mxu1 %v6439_v14  ;;  %2299 = vmatprep.mubr.f32.mxu1 %v1817_v20  ;;  %v6483_v14 = vpack.c.bf16 %v1987_v3, %v1986_v1  ;;  %v1991_v44 = vld [vmem:[%s9894_s4 + $0x478] sm:$0xff]  ;;  %v2008_v53 = vld [vmem:[%s9894_s4 + $0x500] sm:$0xff]  ;;  %v2009_v54 = vld [vmem:[%s9894_s4 + $0x508] sm:$0xff] }
 0x110   :  { %2385 = vmatmul.mubr.f32.gmra.mrb[74].mxu0 %v1801_v24  ;;  %6442 = vmatprep.subr.bf16.mxu1 %v6441_v21  ;;  %v6485_v21 = vpack.c.bf16 %v2005_v7, %v2004_v6  ;;  %v1769_v63 = vld [vmem:[%s9892_s2 + $0x30] sm:$0xff]  ;;  %v2040_v1 = vld [vmem:[%s9894_s4 + $0x600] sm:$0xff]  ;;  %v2041_v3 = vld [vmem:[%s9894_s4 + $0x608] sm:$0xff] }
 0x111   :  { %6472 = vmatpush3.bf16.msra.mxu0 %v6471_v25  ;;  %2389 = vmatprep.mubr.f32.mxu0 %v1819_v29  ;;  %v6455_v25 = vpack.c.bf16 %v1957_v11, %v1956_v10  ;;  %v1771_v6 = vld [vmem:[%s9892_s2 + $0x40] sm:$0xff]  ;;  %v2058_v7 = vld [vmem:[%s9894_s4 + $0x690] sm:$0xff] }
 0x112   :  { %2300 = vmatmul.mubr.f32.gmra.mrb[76].mxu1 %v1816_v33  ;;  %6474 = vmatprep.subr.bf16.mxu0 %v6473_v30  ;;  %v1959_v33 = vld [vmem:[%s9894_s4 + $0x378] sm:$0xff]  ;;  %v1787_v11 = vld [vmem:[%s9892_s2 + $0xc0] sm:$0xff] }
 0x113   :  { %6444 = vmatpush3.bf16.msra.mxu1 %v6443_v34  ;;  %2304 = vmatprep.mubr.f32.mxu1 %v1834_v37  ;;  %v2024_v37 = vld [vmem:[%s9894_s4 + $0x580] sm:$0xff] }
 0x114   :  { %2390 = vmatmul.mubr.f32.gmra.mrb[76].mxu0 %v1818_v42  ;;  %6446 = vmatprep.subr.bf16.mxu1 %v6445_v38  ;;  %v6489_v42 = vpack.c.bf16 %v2007_v28, %v2006_v27  ;;  %v2042_v28 = vld [vmem:[%s9894_s4 + $0x610] sm:$0xff] }
 0x115   :  { %6476 = vmatpush3.bf16.msra.mxu0 %v6475_v43  ;;  %2394 = vmatprep.mubr.f32.mxu0 %v1836_v46  ;;  %v1990_v43 = vld [vmem:[%s9894_s4 + $0x470] sm:$0xff]  ;;  %v6459_v46 = vpack.c.bf16 %v1959_v33, %v1958_v32  ;;  %v2060_v32 = vld [vmem:[%s9894_s4 + $0x6a0] sm:$0xff]  ;;  %v2061_v33 = vld [vmem:[%s9894_s4 + $0x6a8] sm:$0xff] }
 0x116   :  { %2305 = vmatmul.mubr.f32.gmra.mrb[78].mxu1 %v1833_v51  ;;  %6478 = vmatprep.subr.bf16.mxu0 %v6477_v47  ;;  %v2056_v47 = vld [vmem:[%s9894_s4 + $0x680] sm:$0xff]  ;;  %v6491_v57 = vpack.c.bf16 %v1991_v44, %v1990_v43 }
 0x117   :  { %6448 = vmatpush3.bf16.msra.mxu1 %v6447_v52  ;;  %2464 = vmatprep.mubr.f32.mxu1 %v1770_v58  ;;  %v2026_v58 = vld [vmem:[%s9894_s4 + $0x590] sm:$0xff] }
 0x118   :  { %2395 = vmatmul.mubr.f32.gmra.mrb[78].mxu0 %v1835_v59  ;;  %v4712_v8 = vpop.f32.mrb[10].mxu0  ;;  %6450 = vmatprep.subr.bf16.mxu1 %v6449_v55 }
 0x119   :  { %v4759_v12 = vpop.f32.mrb[10].mxu1  ;;  %6480 = vmatpush3.bf16.msra.mxu0 %v6479_v60  ;;  %v4713_v13 = vpop.f32.mrb[11].mxu0  ;;  %2554 = vmatprep.mubr.f32.mxu0 %v1772_v4 }
 0x11a   :  { %v4714_v18 = vadd.f32 %v4713_v13, %v4712_v8  ;;  %v4760_v20 = vpop.f32.mrb[11].mxu1  ;;  %6482 = vmatprep.subr.bf16.mxu0 %v6481_v0  ;;  %v6525_v0 = vpack.c.bf16 %v2057_v48, %v2056_v47  ;;  %v2059_v8 = vld [vmem:[%s9894_s4 + $0x698] sm:$0xff]  ;;  %v2010_v13 = vld [vmem:[%s9894_s4 + $0x510] sm:$0xff] }
 0x11b   :  { %v4761_v24 = vadd.f32 %v4760_v20, %v4759_v12  ;;  %6452 = vmatpush3.bf16.msra.mxu1 %v6451_v5  ;;  %v6495_v5 = vpack.c.bf16 %v2009_v54, %v2008_v53  ;;  %v2028_v20 = vld [vmem:[%s9894_s4 + $0x5a0] sm:$0xff]  ;;  %v6529_v27 = vpack.c.bf16 %v2059_v8, %v2058_v7 }
 0x11c   :  { %v840_v29 = vadd.f32 %v4714_v18, %v8751_v62  ;;  %v4715_v30 = vpop.f32.mrb[12].mxu0  ;;  %6454 = vmatprep.subr.bf16.mxu1 %v6453_v9  ;;  %v2025_v62 = vld [vmem:[%s9894_s4 + $0x588] sm:$0xff]  ;;  %v6527_v18 = vpack.c.bf16 %v2041_v3, %v2040_v1 }
 0x11d   :  { %6484 = vmatpush3.bf16.msra.mxu0 %v6483_v14  ;;  %v4716_v34 = vpop.f32.mrb[13].mxu0  ;;  %v4762_v35 = vpop.f32.mrb[12].mxu1  ;;  %v6493_v52 = vpack.c.bf16 %v2025_v62, %v2024_v37  ;;  %v2011_v14 = vld [vmem:[%s9894_s4 + $0x518] sm:$0xff] }
 0x11e   :  { %v9020_v38 = vadd.f32 %v4761_v24, %v840_v29  ;;  %v4717_v39 = vadd.f32 %v4716_v34, %v4715_v30  ;;  %v4763_v40 = vpop.f32.mrb[13].mxu1  ;;  %6486 = vmatprep.subr.bf16.mxu0 %v6485_v21  ;;  %v2029_v21 = vld [vmem:[%s9894_s4 + $0x5a8] sm:$0xff]  ;;  %v2043_v29 = vld [vmem:[%s9894_s4 + $0x618] sm:$0xff] }
 0x11f   :  { %6456 = vmatpush3.bf16.msra.mxu1 %v6455_v25  ;;  %v4764_v45 = vadd.f32 %v4763_v40, %v4762_v35  ;;  %v1789_v25 = vld [vmem:[%s9892_s2 + $0xd0] sm:$0xff] }
 0x120   :  { %v845_v49 = vadd.f32 %v4717_v39, %v8777_v19  ;;  %v4718_v51 = vpop.f32.mrb[14].mxu0  ;;  %6458 = vmatprep.subr.bf16.mxu1 %v6457_v31  ;;  %v2027_v19 = vld [vmem:[%s9894_s4 + $0x598] sm:$0xff]  ;;  %v6499_v31 = vpack.c.bf16 %v2011_v14, %v2010_v13 }
 0x121   :  { %6488 = vmatpush3.bf16.msra.mxu0 %v6487_v36  ;;  %v4719_v55 = vpop.f32.mrb[15].mxu0  ;;  %v4765_v56 = vpop.f32.mrb[14].mxu1  ;;  %v6497_v12 = vpack.c.bf16 %v2027_v19, %v2026_v58 }
 0x122   :  { %v9047_v59 = vadd.f32 %v4764_v45, %v845_v49  ;;  %v4720_v60 = vadd.f32 %v4719_v55, %v4718_v51  ;;  %v4766_v61 = vpop.f32.mrb[15].mxu1  ;;  %6490 = vmatprep.subr.bf16.mxu0 %v6489_v42 }
 0x123   :  { %6460 = vmatpush3.bf16.msra.mxu1 %v6459_v46  ;;  %v4767_v4 = vadd.f32 %v4766_v61, %v4765_v56 }
 0x124   :  { %v850_v9 = vadd.f32 %v4720_v60, %v8812_v41  ;;  %v4721_v10 = vpop.f32.mrb[16].mxu0  ;;  %6494 = vmatprep.subr.bf16.mxu1 %v6493_v52  ;;  %v1786_v41 = vld [vmem:[%s9892_s2 + $0xb8] sm:$0xff] }
 0x125   :  { %6492 = vmatpush3.bf16.msra.mxu0 %v6491_v57  ;;  %v4722_v15 = vpop.f32.mrb[17].mxu0  ;;  %v4768_v17 = vpop.f32.mrb[16].mxu1 }
 0x126   :  { %v9086_v22 = vadd.f32 %v4767_v4, %v850_v9  ;;  %v4723_v23 = vadd.f32 %v4722_v15, %v4721_v10  ;;  %2465 = vmatmul.mubr.f32.vlgmr.msra.gmra.mrb[80].mxu1 %v1769_v63  ;;  %v4769_v24 = vpop.f32.mrb[17].mxu1  ;;  %6526 = vmatprep.subr.bf16.mxu0 %v6525_v0 }
 0x127   :  { %6496 = vmatpush3.bf16.msra.mxu1 %v6495_v5  ;;  %v4770_v30 = vadd.f32 %v4769_v24, %v4768_v17  ;;  %2469 = vmatprep.mubr.f32.mxu1 %v1787_v11 }
 0x128   :  { %17 = vsyncpa [#allocation3], 0  ;;  %v855_v34 = vadd.f32 %v4723_v23, %v8850_v2  ;;  %2555 = vmatmul.mubr.f32.vlgmr.msra.gmra.mrb[80].mxu0 %v1771_v6  ;;  %v4724_v35 = vpop.f32.mrb[18].mxu0  ;;  %6498 = vmatprep.subr.bf16.mxu1 %v6497_v12  ;;  %v1804_v36 = vld [vmem:[%s9892_s2 + $0x148] sm:$0xff]  ;;  %v6501_v37 = vpack.c.bf16 %v2029_v21, %v2028_v20  ;;  %v2012_v62 = vld [vmem:[%s9894_s4 + $0x520] sm:$0xff]  ;;  %v6531_v43 = vpack.c.bf16 %v2043_v29, %v2042_v28  ;;  %vm2126_vm2 = vcmask 1045504  }
 0x129   :  { %v2013_v39 = vld [vmem:[%s9894_s4 + $0x528] sm:$0xff]  ;;  %6528 = vmatpush3.bf16.msra.mxu0 %v6527_v18  ;;  %v4725_v40 = vpop.f32.mrb[19].mxu0  ;;  %v4771_v42 = vpop.f32.mrb[18].mxu1  ;;  %2559 = vmatprep.mubr.f32.mxu0 %v1789_v25  ;;  %v2030_v44 = vld [vmem:[%s9894_s4 + $0x5b0] sm:$0xff]  ;;  %v2031_v45 = vld [vmem:[%s9894_s4 + $0x5b8] sm:$0xff]  ;;  %v6533_v51 = vpack.c.bf16 %v2061_v33, %v2060_v32  ;;  %vm6756_vm3 = vmmov 1  }
 0x12a   :  { %v1788_v2 = vld [vmem:[%s9892_s2 + $0xc8] sm:$0xff]  ;;  %v9122_v46 = vadd.f32 %v4770_v30, %v855_v34  ;;  %v4726_v47 = vadd.f32 %v4725_v40, %v4724_v35  ;;  %2470 = vmatmul.mubr.f32.gmra.mrb[82].mxu1 %v1786_v41  ;;  %v4772_v48 = vpop.f32.mrb[19].mxu1  ;;  %6530 = vmatprep.subr.bf16.mxu0 %v6529_v27  ;;  %v1806_v49 = vld [vmem:[%s9892_s2 + $0x158] sm:$0xff]  ;;  %v2044_v52 = vld [vmem:[%s9894_s4 + $0x620] sm:$0xff]  ;;  %v6503_v56 = vpack.c.bf16 %v2013_v39, %v2012_v62  ;;  %vm6757_vm5 = vmmov 0   ;;  %s6760_s20 = smov [#allocation2]  }
 0x12b   :  { %v2045_v53 = vld [vmem:[%s9894_s4 + $0x628] sm:$0xff]  ;;  %6500 = vmatpush3.bf16.msra.mxu1 %v6499_v31  ;;  %v4773_v54 = vadd.f32 %v4772_v48, %v4771_v42  ;;  %2474 = vmatprep.mubr.f32.mxu1 %v1804_v36  ;;  %v1803_v55 = vld [vmem:[%s9892_s2 + $0x140] sm:$0xff]  ;;  %v2062_v57 = vld [vmem:[%s9894_s4 + $0x6b0] sm:$0xff]  ;;  %v6505_v61 = vpack.c.bf16 %v2031_v45, %v2030_v44  ;;  %vm2110_vm6 = vcmask 375808   ;;  %vm2951_vm7 = vcmask 261120   ;;  %s4479_s21 = sshll.u32 %s6760_s20, 4  ;;  %s4480_s21 = int_to_ptr.vmem [resolvable:$true] %s4479_s21 }
 0x12c   :  { %v2063_v58 = vld [vmem:[%s9894_s4 + $0x6b8] sm:$0xff]  ;;  %v860_v19 = vadd.f32 %v4726_v47, %v8888_v26  ;;  %2560 = vmatmul.mubr.f32.gmra.mrb[82].mxu0 %v1788_v2  ;;  %6502 = vmatprep.subr.bf16.mxu1 %v6501_v37  ;;  %v1821_v60 = vld [vmem:[%s9892_s2 + $0x1d0] sm:$0xff]  ;;  %v6535_v1 = vpack.c.bf16 %v2045_v53, %v2044_v52  ;;  %v2032_v3 = vld [vmem:[%s9894_s4 + $0x5c0] sm:$0xff]  ;;  %vm3182_vm8 = vcmask 326656   ;;  %s6730_s22 = scalar_lea.vmem %s4480_s21, 128  ;;  %p6735_p1 = scmp.lt.s32.totalorder %s4480_s21, %s4480_s21 }
 0x12d   :  { %v2014_v63 = vld [vmem:[%s9894_s4 + $0x530] sm:$0xff]  ;;  %v2015_v0 = vld [vmem:[%s9894_s4 + $0x538] sm:$0xff]  ;;  %6532 = vmatpush3.bf16.msra.mxu0 %v6531_v43  ;;  %2564 = vmatprep.mubr.f32.mxu0 %v1806_v49  ;;  %v2033_v4 = vld [vmem:[%s9894_s4 + $0x5c8] sm:$0xff]  ;;  %v6537_v7 = vpack.c.bf16 %v2063_v58, %v2062_v57  ;;  %p6731_p0 = scmp.ne.s32.totalorder %s4480_s21, %s6730_s22  ;;  %p6736_p2 = scmp.lt.s32.totalorder %s6730_s22, %s6730_s22 }
 0x12e   :  { %v1805_v26 = vld [vmem:[%s9892_s2 + $0x150] sm:$0xff]  ;;  %v9161_v5 = vadd.f32 %v4773_v54, %v860_v19  ;;  %2475 = vmatmul.mubr.f32.gmra.mrb[84].mxu1 %v1803_v55  ;;  %6534 = vmatprep.subr.bf16.mxu0 %v6533_v51  ;;  %v1823_v6 = vld [vmem:[%s9892_s2 + $0x1e0] sm:$0xff]  ;;  %v2047_v9 = vld [vmem:[%s9894_s4 + $0x638] sm:$0xff]  ;;  %v6507_v11 = vpack.c.bf16 %v2015_v0, %v2014_v63  ;;  %v6509_v15 = vpack.c.bf16 %v2033_v4, %v2032_v3 }
 0x12f   :  { %v2046_v8 = vld [vmem:[%s9894_s4 + $0x630] sm:$0xff]  ;;  %6504 = vmatpush3.bf16.msra.mxu1 %v6503_v56  ;;  %2479 = vmatprep.mubr.f32.mxu1 %v1821_v60  ;;  %v1820_v10 = vld [vmem:[%s9892_s2 + $0x1c8] sm:$0xff]  ;;  %v2064_v12 = vld [vmem:[%s9894_s4 + $0x6c0] sm:$0xff]  ;;  %p6737_p3 = por %p6736_p2, %p6735_p1 }
 0x130   :  { %v2065_v13 = vld [vmem:[%s9894_s4 + $0x6c8] sm:$0xff]  ;;  %2565 = vmatmul.mubr.f32.gmra.mrb[84].mxu0 %v1805_v26  ;;  %6506 = vmatprep.subr.bf16.mxu1 %v6505_v61  ;;  %v1838_v14 = vld [vmem:[%s9892_s2 + $0x258] sm:$0xff]  ;;  %v2016_v17 = vld [vmem:[%s9894_s4 + $0x540] sm:$0xff]  ;;  %v6539_v20 = vpack.c.bf16 %v2047_v9, %v2046_v8 }
 0x131   :  { %v2017_v18 = vld [vmem:[%s9894_s4 + $0x548] sm:$0xff]  ;;  %6536 = vmatpush3.bf16.msra.mxu0 %v6535_v1  ;;  %2569 = vmatprep.mubr.f32.mxu0 %v1823_v6  ;;  %v1822_v41 = vld [vmem:[%s9892_s2 + $0x1d8] sm:$0xff]  ;;  %v2034_v21 = vld [vmem:[%s9894_s4 + $0x5d0] sm:$0xff]  ;;  %v6541_v25 = vpack.c.bf16 %v2065_v13, %v2064_v12  ;;  %p6738_p4 = pnand %p6737_p3, %p6731_p0 }
 0x132   :  { %v2035_v23 = vld [vmem:[%s9894_s4 + $0x5d8] sm:$0xff]  ;;  %2480 = vmatmul.mubr.f32.gmra.mrb[86].mxu1 %v1820_v10  ;;  %6538 = vmatprep.subr.bf16.mxu0 %v6537_v7  ;;  %v1840_v24 = vld [vmem:[%s9892_s2 + $0x268] sm:$0xff]  ;;  %v2048_v27 = vld [vmem:[%s9894_s4 + $0x640] sm:$0xff]  ;;  %v6511_v30 = vpack.c.bf16 %v2017_v18, %v2016_v17 }
 0x133   :  { %v2049_v28 = vld [vmem:[%s9894_s4 + $0x648] sm:$0xff]  ;;  %6508 = vmatpush3.bf16.msra.mxu1 %v6507_v11  ;;  %2484 = vmatprep.mubr.f32.mxu1 %v1838_v14  ;;  %v1837_v29 = vld [vmem:[%s9892_s2 + $0x250] sm:$0xff]  ;;  %v2067_v32 = vld [vmem:[%s9894_s4 + $0x6d8] sm:$0xff]  ;;  %v6513_v33 = vpack.c.bf16 %v2035_v23, %v2034_v21 }
 0x134   :  { %v2066_v31 = vld [vmem:[%s9894_s4 + $0x6d0] sm:$0xff]  ;;  %2570 = vmatmul.mubr.f32.gmra.mrb[86].mxu0 %v1822_v41  ;;  %6510 = vmatprep.subr.bf16.mxu1 %v6509_v15  ;;  %v2019_v35 = vld [vmem:[%s9894_s4 + $0x558] sm:$0xff]  ;;  %v1839_v37 = vld [vmem:[%s9892_s2 + $0x260] sm:$0xff]  ;;  %v6543_v62 = vpack.c.bf16 %v2049_v28, %v2048_v27 }
 0x135   :  { %v2018_v34 = vld [vmem:[%s9894_s4 + $0x550] sm:$0xff]  ;;  %v1774_v36 = vld [vmem:[%s9892_s2 + $0x58] sm:$0xff]  ;;  %6540 = vmatpush3.bf16.msra.mxu0 %v6539_v20  ;;  %2574 = vmatprep.mubr.f32.mxu0 %v1840_v24  ;;  %v2036_v39 = vld [vmem:[%s9894_s4 + $0x5e0] sm:$0xff]  ;;  %v6545_v42 = vpack.c.bf16 %v2067_v32, %v2066_v31 }
 0x136   :  { %v2037_v40 = vld [vmem:[%s9894_s4 + $0x5e8] sm:$0xff]  ;;  %2485 = vmatmul.mubr.f32.gmra.mrb[88].mxu1 %v1837_v29  ;;  %6542 = vmatprep.subr.bf16.mxu0 %v6541_v25  ;;  %v2050_v2 = vld [vmem:[%s9894_s4 + $0x650] sm:$0xff]  ;;  %v2051_v43 = vld [vmem:[%s9894_s4 + $0x658] sm:$0xff]  ;;  %v6515_v45 = vpack.c.bf16 %v2019_v35, %v2018_v34 }
 0x137   :  { %v1776_v44 = vld [vmem:[%s9892_s2 + $0x68] sm:$0xff]  ;;  %6512 = vmatpush3.bf16.msra.mxu1 %v6511_v30  ;;  %v2068_v47 = vld [vmem:[%s9894_s4 + $0x6e0] sm:$0xff]  ;;  %2644 = vmatprep.mubr.f32.mxu1 %v1774_v36  ;;  %v6517_v51 = vpack.c.bf16 %v2037_v40, %v2036_v39  ;;  %v6547_v56 = vpack.c.bf16 %v2051_v43, %v2050_v2  ;;  %v2038_v57 = vld [vmem:[%s9894_s4 + $0x5f0] sm:$0xff] }
 0x138   :  { %v2069_v48 = vld [vmem:[%s9894_s4 + $0x6e8] sm:$0xff]  ;;  %2575 = vmatmul.mubr.f32.gmra.mrb[88].mxu0 %v1839_v37  ;;  %v4806_v49 = vpop.f32.mrb[20].mxu0  ;;  %6514 = vmatprep.subr.bf16.mxu1 %v6513_v33  ;;  %v2020_v52 = vld [vmem:[%s9894_s4 + $0x560] sm:$0xff]  ;;  %v2039_v58 = vld [vmem:[%s9894_s4 + $0x5f8] sm:$0xff] }
 0x139   :  { %v2021_v53 = vld [vmem:[%s9894_s4 + $0x568] sm:$0xff]  ;;  %v4853_v54 = vpop.f32.mrb[20].mxu1  ;;  %6544 = vmatpush3.bf16.msra.mxu0 %v6543_v62  ;;  %v4807_v55 = vpop.f32.mrb[21].mxu0  ;;  %2734 = vmatprep.mubr.f32.mxu0 %v1776_v44  ;;  %v6549_v61 = vpack.c.bf16 %v2069_v48, %v2068_v47  ;;  %v2052_v63 = vld [vmem:[%s9894_s4 + $0x660] sm:$0xff]  ;;  %v2070_v3 = vld [vmem:[%s9894_s4 + $0x6f0] sm:$0xff]  ;;  %v6521_v8 = vpack.c.bf16 %v2039_v58, %v2038_v57 }
 0x13a   :  { %v4808_v19 = vadd.f32 %v4807_v55, %v4806_v49  ;;  %v4854_v60 = vpop.f32.mrb[21].mxu1  ;;  %6546 = vmatprep.subr.bf16.mxu0 %v6545_v42  ;;  %v2053_v0 = vld [vmem:[%s9894_s4 + $0x668] sm:$0xff]  ;;  %v6519_v1 = vpack.c.bf16 %v2021_v53, %v2020_v52  ;;  %v2071_v4 = vld [vmem:[%s9894_s4 + $0x6f8] sm:$0xff]  ;;  %v2022_v9 = vld [vmem:[%s9894_s4 + $0x570] sm:$0xff] }
 0x13b   :  { %v4855_v26 = vadd.f32 %v4854_v60, %v4853_v54  ;;  %6516 = vmatpush3.bf16.msra.mxu1 %v6515_v45  ;;  %v2023_v10 = vld [vmem:[%s9894_s4 + $0x578] sm:$0xff]  ;;  %v6551_v13 = vpack.c.bf16 %v2053_v0, %v2052_v63  ;;  %v2088_v14 = vld [vmem:[%s9894_s4 + $0x780] sm:$0xff]  ;;  %v6553_v41 = vpack.c.bf16 %v2071_v4, %v2070_v3  ;;  %v2054_v20 = vld [vmem:[%s9894_s4 + $0x670] sm:$0xff] }
 0x13c   :  { %v1020_v6 = vadd.f32 %v4808_v19, %v9020_v38  ;;  %v4809_v7 = vpop.f32.mrb[22].mxu0  ;;  %6518 = vmatprep.subr.bf16.mxu1 %v6517_v51  ;;  %v2089_v38 = vld [vmem:[%s9894_s4 + $0x788] sm:$0xff]  ;;  %v2055_v21 = vld [vmem:[%s9894_s4 + $0x678] sm:$0xff]  ;;  %v6523_v24 = vpack.c.bf16 %v2023_v10, %v2022_v9  ;;  %v2072_v29 = vld [vmem:[%s9894_s4 + $0x700] sm:$0xff] }
 0x13d   :  { %6548 = vmatpush3.bf16.msra.mxu0 %v6547_v56  ;;  %v4810_v11 = vpop.f32.mrb[23].mxu0  ;;  %v4856_v12 = vpop.f32.mrb[22].mxu1  ;;  %v6557_v28 = vpack.c.bf16 %v2089_v38, %v2088_v14  ;;  %v2073_v30 = vld [vmem:[%s9894_s4 + $0x708] sm:$0xff]  ;;  %v6555_v33 = vpack.c.bf16 %v2055_v21, %v2054_v20  ;;  %v2090_v34 = vld [vmem:[%s9894_s4 + $0x790] sm:$0xff]  ;;  %v2104_v62 = vld [vmem:[%s9894_s4 + $0x800] sm:$0xff] }
 0x13e   :  { %v9287_v15 = vadd.f32 %v4855_v26, %v1020_v6  ;;  %v4811_v17 = vadd.f32 %v4810_v11, %v4809_v7  ;;  %v4857_v18 = vpop.f32.mrb[23].mxu1  ;;  %6550 = vmatprep.subr.bf16.mxu0 %v6549_v61  ;;  %v2105_v39 = vld [vmem:[%s9894_s4 + $0x808] sm:$0xff]  ;;  %v1773_v42 = vld [vmem:[%s9892_s2 + $0x50] sm:$0xff]  ;;  %v6559_v2 = vpack.c.bf16 %v2073_v30, %v2072_v29  ;;  %v1791_v45 = vld [vmem:[%s9892_s2 + $0xe0] sm:$0xff] }
 0x13f   :  { %6520 = vmatpush3.bf16.msra.mxu1 %v6519_v1  ;;  %v4858_v23 = vadd.f32 %v4857_v18, %v4856_v12  ;;  %v2074_v48 = vld [vmem:[%s9894_s4 + $0x710] sm:$0xff]  ;;  %v2075_v49 = vld [vmem:[%s9894_s4 + $0x718] sm:$0xff]  ;;  %v2092_v53 = vld [vmem:[%s9894_s4 + $0x7a0] sm:$0xff]  ;;  %v6590_v55 = vpack.c.bf16 %v2105_v39, %v2104_v62 }
 0x140   :  { %v1025_v25 = vadd.f32 %v4811_v17, %v9047_v59  ;;  %v4812_v27 = vpop.f32.mrb[24].mxu0  ;;  %6522 = vmatprep.subr.bf16.mxu1 %v6521_v8  ;;  %v2091_v59 = vld [vmem:[%s9894_s4 + $0x798] sm:$0xff]  ;;  %v2093_v54 = vld [vmem:[%s9894_s4 + $0x7a8] sm:$0xff]  ;;  %v1793_v19 = vld [vmem:[%s9892_s2 + $0xf0] sm:$0xff]  ;;  %v6563_v26 = vpack.c.bf16 %v2075_v49, %v2074_v48 }
 0x141   :  { %6552 = vmatpush3.bf16.msra.mxu0 %v6551_v13  ;;  %v4813_v31 = vpop.f32.mrb[25].mxu0  ;;  %v4859_v32 = vpop.f32.mrb[24].mxu1  ;;  %v6561_v47 = vpack.c.bf16 %v2091_v59, %v2090_v34  ;;  %v2106_v60 = vld [vmem:[%s9894_s4 + $0x810] sm:$0xff]  ;;  %v2107_v61 = vld [vmem:[%s9894_s4 + $0x818] sm:$0xff]  ;;  %v1808_v4 = vld [vmem:[%s9892_s2 + $0x168] sm:$0xff]  ;;  %v6565_v6 = vpack.c.bf16 %v2093_v54, %v2092_v53 }
 0x142   :  { %v9308_v35 = vadd.f32 %v4858_v23, %v1025_v25  ;;  %v4814_v36 = vadd.f32 %v4813_v31, %v4812_v27  ;;  %v4860_v37 = vpop.f32.mrb[25].mxu1  ;;  %6554 = vmatprep.subr.bf16.mxu0 %v6553_v41  ;;  %v1790_v0 = vld [vmem:[%s9892_s2 + $0xd8] sm:$0xff]  ;;  %v2076_v7 = vld [vmem:[%s9894_s4 + $0x720] sm:$0xff]  ;;  %v2077_v8 = vld [vmem:[%s9894_s4 + $0x728] sm:$0xff]  ;;  %v6593_v13 = vpack.c.bf16 %v2107_v61, %v2106_v60 }
 0x143   :  { %6524 = vmatpush3.bf16.msra.mxu1 %v6523_v24  ;;  %v4861_v40 = vadd.f32 %v4860_v37, %v4859_v32  ;;  %v2094_v11 = vld [vmem:[%s9894_s4 + $0x7b0] sm:$0xff]  ;;  %v2095_v12 = vld [vmem:[%s9894_s4 + $0x7b8] sm:$0xff]  ;;  %v2108_v41 = vld [vmem:[%s9894_s4 + $0x820] sm:$0xff]  ;;  %v6567_v24 = vpack.c.bf16 %v2077_v8, %v2076_v7 }
 0x144   :  { %v1030_v43 = vadd.f32 %v4814_v36, %v9086_v22  ;;  %v4815_v44 = vpop.f32.mrb[26].mxu0  ;;  %6558 = vmatprep.subr.bf16.mxu1 %v6557_v28  ;;  %v1775_v22 = vld [vmem:[%s9892_s2 + $0x60] sm:$0xff]  ;;  %v1810_v18 = vld [vmem:[%s9892_s2 + $0x178] sm:$0xff]  ;;  %v2109_v20 = vld [vmem:[%s9894_s4 + $0x828] sm:$0x3f]  ;;  %v6569_v28 = vpack.c.bf16 %v2095_v12, %v2094_v11 }
 0x145   :  { %6556 = vmatpush3.bf16.msra.mxu0 %v6555_v33  ;;  %v4816_v51 = vpop.f32.mrb[27].mxu0  ;;  %v4862_v52 = vpop.f32.mrb[26].mxu1  ;;  %v1807_v23 = vld [vmem:[%s9892_s2 + $0x160] sm:$0xff]  ;;  %v1825_v27 = vld [vmem:[%s9892_s2 + $0x1f0] sm:$0xff]  ;;  %v2079_v30 = vld [vmem:[%s9894_s4 + $0x738] sm:$0xff]  ;;  %v6596_v33 = vpack.c.bf16 %v2109_v20, %v2108_v41 }
 0x146   :  { %v9338_v56 = vadd.f32 %v4861_v40, %v1030_v43  ;;  %v4817_v57 = vadd.f32 %v4816_v51, %v4815_v44  ;;  %2645 = vmatmul.mubr.f32.vlgmr.msra.gmra.mrb[90].mxu1 %v1773_v42  ;;  %v4863_v58 = vpop.f32.mrb[27].mxu1  ;;  %6589 = vmatprep.subr.bf16.mxu0 %v6754_v50  ;;  %v2078_v29 = vld [vmem:[%s9894_s4 + $0x730] sm:$0xff]  ;;  %v2096_v31 = vld [vmem:[%s9894_s4 + $0x7c0] sm:$0xff]  ;;  %v2097_v32 = vld [vmem:[%s9894_s4 + $0x7c8] sm:$0xff] }
 0x147   :  { %6560 = vmatpush3.bf16.msra.mxu1 %v6559_v2  ;;  %v4864_v63 = vadd.f32 %v4863_v58, %v4862_v52  ;;  %2649 = vmatprep.mubr.f32.mxu1 %v1791_v45  ;;  %v1827_v59 = vld [vmem:[%s9892_s2 + $0x200] sm:$0xff]  ;;  %vm6597_vm4 = vmpackc.low %vm2126_vm2, %vm6756_vm3  ;;  %v1824_v36 = vld [vmem:[%s9892_s2 + $0x1e8] sm:$0xff]  ;;  %v6571_v37 = vpack.c.bf16 %v2079_v30, %v2078_v29  ;;  %v6573_v39 = vpack.c.bf16 %v2097_v32, %v2096_v31 }
 0x148   :  { %v1035_v1 = vadd.f32 %v4817_v57, %v9122_v46  ;;  %2735 = vmatmul.mubr.f32.vlgmr.msra.gmra.mrb[90].mxu0 %v1775_v22  ;;  %v4818_v3 = vpop.f32.mrb[28].mxu0  ;;  %6562 = vmatprep.subr.bf16.mxu1 %v6561_v47  ;;  %v1792_v46 = vld [vmem:[%s9892_s2 + $0xe8] sm:$0xff]  ;;  %v1842_v62 = vld [vmem:[%s9892_s2 + $0x278] sm:$0xff]  ;;  %v2080_v40 = vld [vmem:[%s9894_s4 + $0x740] sm:$0xff] }
 0x149   :  { %v4819_v9 = vpop.f32.mrb[29].mxu0  ;;  %v4865_v10 = vpop.f32.mrb[28].mxu1  ;;  %2739 = vmatprep.mubr.f32.mxu0 %v1793_v19  ;;  %6591 = vmatpush3.bf16.msra.mxu0 %v6590_v55  ;;  %v2081_v42 = vld [vmem:[%s9894_s4 + $0x748] sm:$0xff]  ;;  %v1826_v2 = vld [vmem:[%s9892_s2 + $0x1f8] sm:$0xff]  ;;  %v2098_v43 = vld [vmem:[%s9894_s4 + $0x7d0] sm:$0xff] }
 0x14a   :  { %v9372_v14 = vadd.f32 %v4864_v63, %v1035_v1  ;;  %v4820_v38 = vadd.f32 %v4819_v9, %v4818_v3  ;;  %2650 = vmatmul.mubr.f32.gmra.mrb[92].mxu1 %v1790_v0  ;;  %v4866_v17 = vpop.f32.mrb[29].mxu1  ;;  %6592 = vmatprep.subr.bf16.mxu0 %v6754_v50  ;;  %v2099_v44 = vld [vmem:[%s9894_s4 + $0x7d8] sm:$0xff]  ;;  %v1844_v45 = vld [vmem:[%s9892_s2 + $0x288] sm:$0xff]  ;;  %v1841_v47 = vld [vmem:[%s9892_s2 + $0x270] sm:$0xff]  ;;  %v6575_v48 = vpack.c.bf16 %v2081_v42, %v2080_v40 }
 0x14b   :  { %6564 = vmatpush3.bf16.msra.mxu1 %v6563_v26  ;;  %v4867_v21 = vadd.f32 %v4866_v17, %v4865_v10  ;;  %2654 = vmatprep.mubr.f32.mxu1 %v1808_v4  ;;  %v6577_v49 = vpack.c.bf16 %v2099_v44, %v2098_v43  ;;  %v2082_v51 = vld [vmem:[%s9894_s4 + $0x750] sm:$0xff]  ;;  %v2083_v52 = vld [vmem:[%s9894_s4 + $0x758] sm:$0xff]  ;;  %v1843_v53 = vld [vmem:[%s9892_s2 + $0x280] sm:$0xff] }
 0x14c   :  { %v1040_v25 = vadd.f32 %v4820_v38, %v9161_v5  ;;  %2740 = vmatmul.mubr.f32.gmra.mrb[92].mxu0 %v1792_v46  ;;  %6566 = vmatprep.subr.bf16.mxu1 %v6565_v6  ;;  %v1809_v5 = vld [vmem:[%s9892_s2 + $0x170] sm:$0xff]  ;;  %v1778_v22 = vld [vmem:[%s9892_s2 + $0x78] sm:$0xff]  ;;  %v2100_v54 = vld [vmem:[%s9894_s4 + $0x7e0] sm:$0xff]  ;;  %v6579_v19 = vpack.c.bf16 %v2083_v52, %v2082_v51 }
 0x14d   :  { %2744 = vmatprep.mubr.f32.mxu0 %v1810_v18  ;;  %6594 = vmatpush3.bf16.msra.mxu0 %v6593_v13  ;;  %v2101_v55 = vld [vmem:[%s9894_s4 + $0x7e8] sm:$0xff]  ;;  %v2940_v57 = vld [vmem:[%s9895_s5] sm:$0xff]  ;;  %v2102_v3 = vld [vmem:[%s9894_s4 + $0x7f0] sm:$0xff] }
 0x14e   :  { %v9406_v34 = vadd.f32 %v4867_v21, %v1040_v25  ;;  %2655 = vmatmul.mubr.f32.gmra.mrb[94].mxu1 %v1807_v23  ;;  %6595 = vmatprep.subr.bf16.mxu0 %v6754_v50  ;;  %v2941_v58 = vld [vmem:[%s9895_s5 + $0x8] sm:$0xff]  ;;  %v6581_v61 = vpack.c.bf16 %v2101_v55, %v2100_v54  ;;  %v2084_v63 = vld [vmem:[%s9894_s4 + $0x760] sm:$0xff]  ;;  %v2103_v4 = vld [vmem:[%s9894_s4 + $0x7f8] sm:$0xff] }
 0x14f   :  { %6568 = vmatpush3.bf16.msra.mxu1 %v6567_v24  ;;  %2659 = vmatprep.mubr.f32.mxu1 %v1825_v27  ;;  %v2085_v0 = vld [vmem:[%s9894_s4 + $0x768] sm:$0xff]  ;;  %v1779_v6 = vld [vmem:[%s9892_s2 + $0x80] sm:$0xff]  ;;  %v6600_v7 = vpack.c.bf16 %v2941_v58, %v2940_v57  ;;  %v2942_v10 = vld [vmem:[%s9895_s5 + $0x10] sm:$0xff]  ;;  %v6585_v17 = vpack.c.bf16 %v2103_v4, %v2102_v3 }
 0x150   :  { %2745 = vmatmul.mubr.f32.gmra.mrb[94].mxu0 %v1809_v5  ;;  %6570 = vmatprep.subr.bf16.mxu1 %v6569_v28  ;;  %v2943_v46 = vld [vmem:[%s9895_s5 + $0x18] sm:$0xff]  ;;  %v6583_v12 = vpack.c.bf16 %v2085_v0, %v2084_v63  ;;  %v2086_v18 = vld [vmem:[%s9894_s4 + $0x770] sm:$0xff]  ;;  %v1795_v42 = vld [vmem:[%s9892_s2 + $0x100] sm:$0xff] }
 0x151   :  { %2749 = vmatprep.mubr.f32.mxu0 %v1827_v59  ;;  %6598 = vmatpush3.bf16.msk.msra.mxu0 %vm6597_vm4, %v6596_v33  ;;  %v2087_v41 = vld [vmem:[%s9894_s4 + $0x778] sm:$0xff]  ;;  %v6603_v23 = vpack.c.bf16 %v2943_v46, %v2942_v10  ;;  %v1813_v33 = vld [vmem:[%s9892_s2 + $0x190] sm:$0xff]  ;;  %v1847_v55 = vld [vmem:[%s9892_s2 + $0x2a0] sm:$0xff] }
 0x152   :  { %2660 = vmatmul.mubr.f32.gmra.mrb[96].mxu1 %v1824_v36  ;;  %6599 = vmatprep.subr.bf16.mxu0 %v6754_v50  ;;  %v6587_v29 = vpack.c.bf16 %v2087_v41, %v2086_v18  ;;  %v1830_v44 = vld [vmem:[%s9892_s2 + $0x218] sm:$0xff]  ;;  %v1829_v63 = vld [vmem:[%s9892_s2 + $0x210] sm:$0xff] }
 0x153   :  { %6572 = vmatpush3.bf16.msra.mxu1 %v6571_v37  ;;  %2664 = vmatprep.mubr.f32.mxu1 %v1842_v62  ;;  %v1777_v62 = vld [vmem:[%s9892_s2 + $0x70] sm:$0xff] }
 0x154   :  { %2750 = vmatmul.mubr.f32.gmra.mrb[96].mxu0 %v1826_v2  ;;  %6574 = vmatprep.subr.bf16.mxu1 %v6573_v39 }
 0x155   :  { %2754 = vmatprep.mubr.f32.mxu0 %v1844_v45 }
 0x156   :  { %2665 = vmatmul.mubr.f32.gmra.mrb[98].mxu1 %v1841_v47 }
 0x157   :  { %6576 = vmatpush3.bf16.msra.mxu1 %v6575_v48  ;;  %2824 = vmatprep.mubr.f32.mxu1 %v1778_v22  ;;  %v1812_v22 = vld [vmem:[%s9892_s2 + $0x188] sm:$0xff] }
 0x158   :  { %2755 = vmatmul.mubr.f32.gmra.mrb[98].mxu0 %v1843_v53  ;;  %v4900_v60 = vpop.f32.mrb[30].mxu0  ;;  %6578 = vmatprep.subr.bf16.mxu1 %v6577_v49  ;;  %v1794_v49 = vld [vmem:[%s9892_s2 + $0xf8] sm:$0xff] }
 0x159   :  { %v4947_v26 = vpop.f32.mrb[30].mxu1  ;;  %v4901_v1 = vpop.f32.mrb[31].mxu0  ;;  %5669 = vmatprep.mubr.msk.f32.mxu0 %vm6757_vm5, %v6755_v16 }
 0x15a   :  { %v4902_v8 = vadd.f32 %v4901_v1, %v4900_v60  ;;  %v4948_v9 = vpop.f32.mrb[31].mxu1  ;;  %v1811_v60 = vld [vmem:[%s9892_s2 + $0x180] sm:$0xff]  ;;  %v1845_v1 = vld [vmem:[%s9892_s2 + $0x290] sm:$0xff] }
 0x15b   :  { %v4949_v11 = vadd.f32 %v4948_v9, %v4947_v26  ;;  %6580 = vmatpush3.bf16.msra.mxu1 %v6579_v19  ;;  %v1828_v26 = vld [vmem:[%s9892_s2 + $0x208] sm:$0xff] }
 0x15c   :  { %v1200_v13 = vadd.f32 %v4902_v8, %v9287_v15  ;;  %v4903_v38 = vpop.f32.mrb[32].mxu0  ;;  %6582 = vmatprep.subr.bf16.mxu1 %v6581_v61  ;;  %5670 = vmatmul.mubr.msk.f32.vlgmr.msra.gmra.mrb[100].mxu0 %vm2110_vm6, %v1779_v6  ;;  %v1796_v15 = vld [vmem:[%s9892_s2 + $0x108] sm:$0xff] }
 0x15d   :  { %v4904_v20 = vpop.f32.mrb[33].mxu0  ;;  %v4950_v21 = vpop.f32.mrb[32].mxu1  ;;  %5672 = vmatprep.mubr.msk.f32.mxu0 %vm6757_vm5, %v6755_v16  ;;  %6601 = vmatpush3.bf16.msra.mxu0 %v6600_v7 }
 0x15e   :  { %v9501_v24 = vadd.f32 %v4949_v11, %v1200_v13  ;;  %v4905_v25 = vadd.f32 %v4904_v20, %v4903_v38  ;;  %v4951_v27 = vpop.f32.mrb[33].mxu1  ;;  %6602 = vmatprep.subr.bf16.mxu0 %v6754_v50 }
 0x15f   :  { %6584 = vmatpush3.bf16.msra.mxu1 %v6583_v12  ;;  %v4952_v28 = vadd.f32 %v4951_v27, %v4950_v21 }
 0x160   :  { %v1205_v30 = vadd.f32 %v4905_v25, %v9308_v35  ;;  %v4906_v5 = vpop.f32.mrb[34].mxu0  ;;  %6586 = vmatprep.subr.bf16.mxu1 %v6585_v17  ;;  %5673 = vmatmul.mubr.msk.f32.gmra.mrb[102].mxu0 %vm2110_vm6, %v1796_v15 }
 0x161   :  { %v4907_v31 = vpop.f32.mrb[35].mxu0  ;;  %v4953_v32 = vpop.f32.mrb[34].mxu1  ;;  %5675 = vmatprep.mubr.msk.f32.mxu0 %vm6757_vm5, %v6755_v16  ;;  %6604 = vmatpush3.bf16.msra.mxu0 %v6603_v23 }
 0x162   :  { %v9511_v59 = vadd.f32 %v4952_v28, %v1205_v30  ;;  %v4908_v36 = vadd.f32 %v4907_v31, %v4906_v5  ;;  %v4954_v37 = vpop.f32.mrb[35].mxu1  ;;  %6611 = vmatprep.subr.bf16.mxu0 %v6754_v50 }
 0x163   :  { %6588 = vmatpush3.bf16.msra.mxu1 %v6587_v29  ;;  %v4955_v35 = vadd.f32 %v4954_v37, %v4953_v32 }
 0x164   :  { %v1210_v39 = vadd.f32 %v4908_v36, %v9338_v56  ;;  %v4909_v40 = vpop.f32.mrb[36].mxu0  ;;  %5676 = vmatmul.mubr.msk.f32.gmra.mrb[104].mxu0 %vm2110_vm6, %v1813_v33  ;;  %6605 = vmatprep.subr.bf16.mxu1 %v6754_v50 }
 0x165   :  { %v4910_v2 = vpop.f32.mrb[37].mxu0  ;;  %v4956_v43 = vpop.f32.mrb[36].mxu1  ;;  %5678 = vmatprep.mubr.msk.f32.mxu0 %vm6757_vm5, %v6755_v16 }
 0x166   :  { %v1300_v45 = vadd.f32 %v4955_v35, %v1210_v39  ;;  %v4911_v56 = vadd.f32 %v4910_v2, %v4909_v40  ;;  %2825 = vmatmul.mubr.f32.vlgmr.msra.gmra.mrb[100].mxu1 %v1777_v62  ;;  %v4957_v47 = vpop.f32.mrb[37].mxu1 }
 0x167   :  { %v4958_v48 = vadd.f32 %v4957_v47, %v4956_v43  ;;  %2829 = vmatprep.mubr.f32.mxu1 %v1795_v42 }
 0x168   :  { %v1215_v51 = vadd.f32 %v4911_v56, %v9372_v14  ;;  %v4912_v52 = vpop.f32.mrb[38].mxu0  ;;  %5679 = vmatmul.mubr.msk.f32.gmra.mrb[106].mxu0 %vm2110_vm6, %v1830_v44 }
 0x169   :  { %v4913_v53 = vpop.f32.mrb[39].mxu0  ;;  %v4959_v54 = vpop.f32.mrb[38].mxu1  ;;  %5681 = vmatprep.mubr.msk.f32.mxu0 %vm6757_vm5, %v6755_v16 }
 0x16a   :  { %v1305_v57 = vadd.f32 %v4958_v48, %v1215_v51  ;;  %v4914_v58 = vadd.f32 %v4913_v53, %v4912_v52  ;;  %2830 = vmatmul.mubr.f32.gmra.mrb[102].mxu1 %v1794_v49  ;;  %v4960_v14 = vpop.f32.mrb[39].mxu1 }
 0x16b   :  { %v4961_v19 = vadd.f32 %v4960_v14, %v4959_v54  ;;  %2834 = vmatprep.mubr.f32.mxu1 %v1812_v22 }
 0x16c   :  { %v1220_v61 = vadd.f32 %v4914_v58, %v9406_v34  ;;  %5682 = vmatmul.mubr.msk.f32.gmra.mrb[108].mxu0 %vm2110_vm6, %v1847_v55  ;;  %v1846_v34 = vld [vmem:[%s9892_s2 + $0x298] sm:$0xff] }
 0x16d   :  { %5692 = vmatprep.mubr.msk.f32.mxu0 %vm6757_vm5, %v6755_v16 }
 0x16e   :  { %v1310_v0 = vadd.f32 %v4961_v19, %v1220_v61  ;;  %2835 = vmatmul.mubr.f32.gmra.mrb[104].mxu1 %v1811_v60 }
 0x16f   :  { %2839 = vmatprep.mubr.f32.mxu1 %v1829_v63 }
 0x172   :  { %2840 = vmatmul.mubr.f32.gmra.mrb[106].mxu1 %v1828_v26 }
 0x173   :  { %2844 = vmatprep.mubr.f32.mxu1 %v1846_v34 }
 0x176   :  { %2845 = vmatmul.mubr.f32.gmra.mrb[108].mxu1 %v1845_v1 }
 0x177   :  { %5715 = vmatprep.mubr.msk.f32.mxu1 %vm6757_vm5, %v6755_v16 }
 0x178   :  { %v4994_v3 = vpop.f32.mrb[40].mxu0 }
 0x179   :  { %v5041_v4 = vpop.f32.mrb[40].mxu1  ;;  %v4995_v6 = vpop.f32.mrb[41].mxu0 }
 0x17a   :  { %v4996_v7 = vadd.f32 %v4995_v6, %v4994_v3  ;;  %v5042_v8 = vpop.f32.mrb[41].mxu1 }
 0x17b   :  { %v5043_v9 = vadd.f32 %v5042_v8, %v5041_v4 }
 0x17c   :  { %v1380_v10 = vadd.f32 %v4996_v7, %v9501_v24  ;;  %v4997_v46 = vpop.f32.mrb[42].mxu0 }
 0x17d   :  { %v4998_v11 = vpop.f32.mrb[43].mxu0  ;;  %v5044_v12 = vpop.f32.mrb[42].mxu1 }
 0x17e   :  { %v1470_v13 = vadd.f32 %v5043_v9, %v1380_v10  ;;  %v4999_v38 = vadd.f32 %v4998_v11, %v4997_v46  ;;  %v5045_v17 = vpop.f32.mrb[43].mxu1 }
 0x17f   :  { %v5046_v18 = vadd.f32 %v5045_v17, %v5044_v12 }
 0x180   :  { %v1385_v41 = vadd.f32 %v4999_v38, %v9511_v59  ;;  %v5000_v20 = vpop.f32.mrb[44].mxu0 }
 0x181   :  { %v5001_v21 = vpop.f32.mrb[45].mxu0  ;;  %v5047_v15 = vpop.f32.mrb[44].mxu1 }
 0x182   :  { %v1475_v23 = vadd.f32 %v5046_v18, %v1385_v41  ;;  %v5002_v25 = vadd.f32 %v5001_v21, %v5000_v20  ;;  %v5048_v27 = vpop.f32.mrb[45].mxu1 }
 0x183   :  { %v5049_v28 = vadd.f32 %v5048_v27, %v5047_v15  ;;  %v3059_v27 = vld [vmem:[%s9897_s7 + $0x10] sm:$0xff] }
 0x184   :  { %v1390_v29 = vadd.f32 %v5002_v25, %v1300_v45  ;;  %v5003_v30 = vpop.f32.mrb[46].mxu0  ;;  %v3058_v25 = vld [vmem:[%s9897_s7 + $0x8] sm:$0xff] }
 0x185   :  { %v5004_v5 = vpop.f32.mrb[47].mxu0  ;;  %v5050_v24 = vpop.f32.mrb[46].mxu1 }
 0x186   :  { %v1480_v31 = vadd.f32 %v5049_v28, %v1390_v29  ;;  %v5005_v32 = vadd.f32 %v5004_v5, %v5003_v30  ;;  %v5051_v33 = vpop.f32.mrb[47].mxu1  ;;  %v3060_v29 = vld [vmem:[%s9897_s7 + $0x18] sm:$0xff] }
 0x187   :  { %v5052_v36 = vadd.f32 %v5051_v33, %v5050_v24  ;;  %v6609_v30 = vpack.c.bf16 %v3060_v29, %v3059_v27 }
 0x188   :  { %v1395_v37 = vadd.f32 %v5005_v32, %v1305_v57  ;;  %v5006_v35 = vpop.f32.mrb[48].mxu0 }
 0x189   :  { %v5007_v62 = vpop.f32.mrb[49].mxu0  ;;  %v5053_v39 = vpop.f32.mrb[48].mxu1 }
 0x18a   :  { %v1485_v59 = vadd.f32 %v5052_v36, %v1395_v37  ;;  %v5008_v40 = vadd.f32 %v5007_v62, %v5006_v35  ;;  %v5054_v42 = vpop.f32.mrb[49].mxu1 }
 0x18b   :  { %v5055_v2 = vadd.f32 %v5054_v42, %v5053_v39 }
 0x18c   :  { %v1400_v43 = vadd.f32 %v5008_v40, %v1310_v0 }
 0x18e   :  { %v1490_v44 = vadd.f32 %v5055_v2, %v1400_v43 }
 0x198   :  { %v5088_v56 = vpop.f32.mrb[50].mxu0 }
 0x199   :  { %v5135_v47 = vpop.f32.mrb[50].mxu1  ;;  %v5089_v45 = vpop.f32.mrb[51].mxu0 }
 0x19a   :  { %v5090_v48 = vadd.f32 %v5089_v45, %v5088_v56  ;;  %v5136_v49 = vpop.f32.mrb[51].mxu1 }
 0x19b   :  { %v5137_v51 = vadd.f32 %v5136_v49, %v5135_v47 }
 0x19c   :  { %v1560_v52 = vadd.f32 %v5090_v48, %v1470_v13  ;;  %v5091_v22 = vpop.f32.mrb[52].mxu0 }
 0x19d   :  { %v5092_v53 = vpop.f32.mrb[53].mxu0  ;;  %v5138_v54 = vpop.f32.mrb[52].mxu1 }
 0x19e   :  { %v5093_v55 = vadd.f32 %v5092_v53, %v5091_v22  ;;  %v5139_v57 = vpop.f32.mrb[53].mxu1  ;;  %v1650_v58 = vadd.f32 %v5137_v51, %v1560_v52 }
 0x19f   :  { %v5140_v14 = vadd.f32 %v5139_v57, %v5138_v54 }
 0x1a0   :  { %v1565_v19 = vadd.f32 %v5093_v55, %v1475_v23  ;;  %v5094_v60 = vpop.f32.mrb[54].mxu0  ;;  %v3057_v23 = vld [vmem:[%s9897_s7] sm:$0xff] }
 0x1a1   :  { %v5095_v61 = vpop.f32.mrb[55].mxu0  ;;  %v5141_v63 = vpop.f32.mrb[54].mxu1  ;;  %v6606_v28 = vpack.c.bf16 %v3058_v25, %v3057_v23 }
 0x1a2   :  { %v5096_v0 = vadd.f32 %v5095_v61, %v5094_v60  ;;  %v5142_v26 = vpop.f32.mrb[55].mxu1  ;;  %v1655_v34 = vadd.f32 %v5140_v14, %v1565_v19  ;;  %v3381_v19 = vld [vmem:[%s9890_s0 + $0x28] sm:$0xff]  ;;  %v3173_v60 = vld [vmem:[%s9890_s0] sm:$0xff]  ;;  %v6758_v61 = vmov 0  }
 0x1a3   :  { %v5143_v1 = vadd.f32 %v5142_v26, %v5141_v63  ;;  %6607 = vmatpush3.bf16.msra.mxu1 %v6606_v28  ;;  %6728 = vset.pattern.permute.xlu0 %v6758_v61  ;;  %v3382_v63 = vld [vmem:[%s9890_s0 + $0x30] sm:$0xff]  ;;  %v3384_v26 = vld [vmem:[%s9890_s0 + $0x40] sm:$0xff] }
 0x1a4   :  { %v1570_v3 = vadd.f32 %v5096_v0, %v1480_v31  ;;  %v5097_v4 = vpop.f32.mrb[56].mxu0  ;;  %6608 = vmatprep.subr.bf16.mxu1 %v6754_v50  ;;  %6729 = vset.pattern.permute.xlu1 %v6758_v61  ;;  %v3383_v0 = vld [vmem:[%s9890_s0 + $0x38] sm:$0xff] }
 0x1a5   :  { %v5098_v6 = vpop.f32.mrb[57].mxu0  ;;  %v5144_v7 = vpop.f32.mrb[56].mxu1  ;;  %3398 = vperm.xlu0 %6728, %v3381_v19   ;;  %3177 = vperm.xlu1 %6729, %v3173_v60  }
 0x1a6   :  { %v5099_v8 = vadd.f32 %v5098_v6, %v5097_v4  ;;  %v5145_v9 = vpop.f32.mrb[57].mxu1  ;;  %v1660_v10 = vadd.f32 %v5143_v1, %v1570_v3 }
 0x1a7   :  { %v5146_v46 = vadd.f32 %v5145_v9, %v5144_v7  ;;  %6610 = vmatpush3.bf16.msra.mxu1 %v6609_v30  ;;  %v3256_v9 = vld [vmem:[%s9890_s0 + $0x8] sm:$0xff] }
 0x1a8   :  { %v1575_v11 = vadd.f32 %v5099_v8, %v1485_v59  ;;  %v5100_v12 = vpop.f32.mrb[58].mxu0  ;;  %v3386_v8 = vld [vmem:[%s9890_s0 + $0x50] sm:$0xff] }
 0x1a9   :  { %v5101_v13 = vpop.f32.mrb[59].mxu0  ;;  %v5147_v38 = vpop.f32.mrb[58].mxu1  ;;  %3401 = vperm.xlu0 %6728, %v3382_v63   ;;  %3404 = vperm.xlu1 %6729, %v3383_v0  }
 0x1aa   :  { %v5102_v17 = vadd.f32 %v5101_v13, %v5100_v12  ;;  %v5148_v18 = vpop.f32.mrb[59].mxu1  ;;  %v1665_v41 = vadd.f32 %v5146_v46, %v1575_v11 }
 0x1ab   :  { %v5149_v20 = vadd.f32 %v5148_v18, %v5147_v38 }
 0x1ac   :  { %v1580_v21 = vadd.f32 %v5102_v17, %v1490_v44 }
 0x1ad   :  { %3407 = vperm.xlu0 %6728, %v3384_v26  }
 0x1ae   :  { %v1670_v15 = vadd.f32 %v5149_v20, %v1580_v21  ;;  %v3257_v20 = vld [vmem:[%s9890_s0 + $0x10] sm:$0xff] }
 0x1b1   :  { %3413 = vperm.xlu0 %6728, %v3386_v8  }
 0x1b9   :  { %v5182_v5 = vpop.f32.mrb[60].mxu1 }
 0x1ba   :  { %v5183_v24 = vpop.f32.mrb[61].mxu1  ;;  %v1739_v31 = vpop.f32.mrb[60].mxu0 }
 0x1bb   :  { %v5184_v32 = vadd.f32 %v5183_v24, %v5182_v5  ;;  %v1740_v33 = vadd.f32 %v1739_v31, %v1650_v58  ;;  %v1741_v36 = vpop.f32.mrb[61].mxu0  ;;  %v3388_v5 = vld [vmem:[%s9890_s0 + $0x60] sm:$0xff]  ;;  %v3258_v24 = vld [vmem:[%s9890_s0 + $0x18] sm:$0xff] }
 0x1bd   :  { %5693 = vmatmul.mubr.msk.f32.vlgmr.msra.gmra.mrb[110].mxu0 %vm2951_vm7, %v1740_v33 }
 0x1be   :  { %v1744_v37 = vpop.f32.mrb[62].mxu0  ;;  %5695 = vmatprep.mubr.msk.f32.mxu0 %vm6757_vm5, %v6755_v16 }
 0x1bf   :  { %v1745_v35 = vadd.f32 %v1744_v37, %v1655_v34  ;;  %v1746_v62 = vpop.f32.mrb[63].mxu0  ;;  %v3385_v34 = vld [vmem:[%s9890_s0 + $0x48] sm:$0xff] }
 0x1c0   :  { %v5185_v39 = vpop.f32.mrb[62].mxu1  ;;  %3410 = vperm.xlu1 %6729, %v3385_v34  }
 0x1c1   :  { %5696 = vmatmul.mubr.msk.f32.gmra.mrb[112].mxu0 %vm2951_vm7, %v1745_v35  ;;  %v5186_v59 = vpop.f32.mrb[63].mxu1 }
 0x1c2   :  { %v1749_v40 = vpop.f32.mrb[64].mxu0  ;;  %5698 = vmatprep.mubr.msk.f32.mxu0 %vm6757_vm5, %v6755_v16  ;;  %v5187_v42 = vadd.f32 %v5186_v59, %v5185_v39  ;;  %v3389_v59 = vld [vmem:[%s9890_s0 + $0x68] sm:$0xff] }
 0x1c3   :  { %v1750_v2 = vadd.f32 %v1749_v40, %v1660_v10  ;;  %v1751_v43 = vpop.f32.mrb[65].mxu0  ;;  %v3259_v40 = vld [vmem:[%s9890_s0 + $0x20] sm:$0xff] }
 0x1c4   :  { %v5188_v44 = vpop.f32.mrb[64].mxu1  ;;  %3261 = vperm.xlu1 %6729, %v3256_v9  }
 0x1c5   :  { %5699 = vmatmul.mubr.msk.f32.gmra.mrb[114].mxu0 %vm2951_vm7, %v1750_v2  ;;  %v5189_v56 = vpop.f32.mrb[65].mxu1 }
 0x1c6   :  { %v1754_v47 = vpop.f32.mrb[66].mxu0  ;;  %5701 = vmatprep.mubr.msk.f32.mxu0 %vm6757_vm5, %v6755_v16  ;;  %v5190_v45 = vadd.f32 %v5189_v56, %v5188_v44 }
 0x1c7   :  { %v1755_v48 = vadd.f32 %v1754_v47, %v1665_v41  ;;  %v1756_v49 = vpop.f32.mrb[67].mxu0  ;;  %v3387_v41 = vld [vmem:[%s9890_s0 + $0x58] sm:$0xff] }
 0x1c8   :  { %v5191_v51 = vpop.f32.mrb[66].mxu1  ;;  %3416 = vperm.xlu0 %6728, %v3387_v41   ;;  %3264 = vperm.xlu1 %6729, %v3257_v20   ;;  %v3390_v49 = vld [vmem:[%s9890_s0 + $0x70] sm:$0xff] }
 0x1c9   :  { %5702 = vmatmul.mubr.msk.f32.gmra.mrb[116].mxu0 %vm2951_vm7, %v1755_v48  ;;  %v5192_v52 = vpop.f32.mrb[67].mxu1 }
 0x1ca   :  { %v1759_v22 = vpop.f32.mrb[68].mxu0  ;;  %5704 = vmatprep.mubr.msk.f32.mxu0 %vm6757_vm5, %v6755_v16  ;;  %v9589_v53 = vadd.f32 %v5192_v52, %v5191_v51  ;;  %v3391_v51 = vld [vmem:[%s9890_s0 + $0x78] sm:$0xff] }
 0x1cb   :  { %v1760_v54 = vadd.f32 %v1759_v22, %v1670_v15  ;;  %v1761_v55 = vpop.f32.mrb[69].mxu0 }
 0x1cc   :  { %v5194_v57 = vpop.f32.mrb[68].mxu1  ;;  %3419 = vperm.xlu0 %6728, %v3388_v5   ;;  %3267 = vperm.xlu1 %6729, %v3258_v24   ;;  %v3393_v55 = vld [vmem:[%s9890_s0 + $0x88] sm:$0xff] }
 0x1cd   :  { %5705 = vmatmul.mubr.msk.f32.gmra.mrb[118].mxu0 %vm2951_vm7, %v1760_v54  ;;  %v5195_v58 = vpop.f32.mrb[69].mxu1  ;;  %v3392_v54 = vld [vmem:[%s9890_s0 + $0x80] sm:$0xff] }
 0x1ce   :  { %v9592_v14 = vadd.f32 %v5195_v58, %v5194_v57  ;;  %5740 = vmatprep.mubr.msk.f32.mxu0 %vm6757_vm5, %v6755_v16  ;;  %v3394_v57 = vld [vmem:[%s9890_s0 + $0x90] sm:$0xff]  ;;  %v3395_v58 = vld [vmem:[%s9890_s0 + $0x98] sm:$0xff] }
 0x1d0   :  { %3422 = vperm.xlu0 %6728, %v3389_v59   ;;  %3270 = vperm.xlu1 %6729, %v3259_v40  }
 0x1d4   :  { %3425 = vperm.xlu0 %6728, %v3390_v49   ;;  %3428 = vperm.xlu1 %6729, %v3391_v51  }
 0x1d8   :  { %3431 = vperm.xlu0 %6728, %v3392_v54   ;;  %3434 = vperm.xlu1 %6729, %v3393_v55  }
 0x1d9   :  { %v5229_v1 = vpop.f32.mrb[70].mxu1 }
 0x1da   :  { %v5230_v3 = vpop.f32.mrb[71].mxu1 }
 0x1db   :  { %v5231_v4 = vadd.f32 %v5230_v3, %v5229_v1  ;;  %v5276_v6 = vpop.f32.mrb[70].mxu0 }
 0x1dc   :  { %v5277_v7 = vpop.f32.mrb[71].mxu0  ;;  %3437 = vperm.xlu0 %6728, %v3394_v57   ;;  %3440 = vperm.xlu1 %6729, %v3395_v58  }
 0x1dd   :  { %v2287_v10 = vadd.f32 %v5231_v4, %v5184_v32  ;;  %v5278_v46 = vadd.f32 %v5277_v7, %v5276_v6  ;;  %v5232_v11 = vpop.f32.mrb[72].mxu1 }
 0x1de   :  { %v5233_v12 = vpop.f32.mrb[73].mxu1 }
 0x1df   :  { %v9620_v13 = vadd.f32 %v5278_v46, %v2287_v10  ;;  %v5234_v38 = vadd.f32 %v5233_v12, %v5232_v11  ;;  %v5279_v17 = vpop.f32.mrb[72].mxu0 }
 0x1e0   :  { %v5280_v18 = vpop.f32.mrb[73].mxu0 }
 0x1e1   :  { %v2292_v21 = vadd.f32 %v5234_v38, %v5187_v42  ;;  %v5281_v15 = vadd.f32 %v5280_v18, %v5279_v17  ;;  %v5235_v23 = vpop.f32.mrb[74].mxu1 }
 0x1e2   :  { %v5236_v25 = vpop.f32.mrb[75].mxu1 }
 0x1e3   :  { %v2382_v27 = vadd.f32 %v5281_v15, %v2292_v21  ;;  %v5237_v28 = vadd.f32 %v5236_v25, %v5235_v23  ;;  %v5282_v29 = vpop.f32.mrb[74].mxu0 }
 0x1e4   :  { %v5283_v30 = vpop.f32.mrb[75].mxu0 }
 0x1e5   :  { %v2297_v31 = vadd.f32 %v5237_v28, %v5190_v45  ;;  %v5284_v32 = vadd.f32 %v5283_v30, %v5282_v29  ;;  %v5238_v33 = vpop.f32.mrb[76].mxu1 }
 0x1e6   :  { %v5239_v36 = vpop.f32.mrb[77].mxu1 }
 0x1e7   :  { %v2387_v37 = vadd.f32 %v5284_v32, %v2297_v31  ;;  %v5240_v35 = vadd.f32 %v5239_v36, %v5238_v33  ;;  %v5285_v62 = vpop.f32.mrb[76].mxu0 }
 0x1e8   :  { %v5286_v39 = vpop.f32.mrb[77].mxu0 }
 0x1e9   :  { %v2302_v42 = vadd.f32 %v5240_v35, %v9589_v53  ;;  %v5287_v2 = vadd.f32 %v5286_v39, %v5285_v62  ;;  %v5241_v43 = vpop.f32.mrb[78].mxu1 }
 0x1ea   :  { %v5242_v44 = vpop.f32.mrb[79].mxu1 }
 0x1eb   :  { %v2392_v56 = vadd.f32 %v5287_v2, %v2302_v42  ;;  %v5243_v47 = vadd.f32 %v5242_v44, %v5241_v43  ;;  %v5288_v45 = vpop.f32.mrb[78].mxu0 }
 0x1ec   :  { %v5289_v48 = vpop.f32.mrb[79].mxu0 }
 0x1ed   :  { %v2307_v52 = vadd.f32 %v5243_v47, %v9592_v14  ;;  %v5290_v22 = vadd.f32 %v5289_v48, %v5288_v45  ;;  %v3396_v14 = vld [vmem:[%s9890_s0 + $0xa0] sm:$0xff] }
 0x1ee   :  { %3443 = vperm.xlu0 %6728, %v3396_v14  }
 0x1ef   :  { %v2397_v53 = vadd.f32 %v5290_v22, %v2307_v52 }
 0x1f9   :  { %v5323_v19 = vpop.f32.mrb[80].mxu1 }
 0x1fa   :  { %v5324_v60 = vpop.f32.mrb[81].mxu1 }
 0x1fb   :  { %v5325_v61 = vadd.f32 %v5324_v60, %v5323_v19  ;;  %v5370_v63 = vpop.f32.mrb[80].mxu0 }
 0x1fc   :  { %v5371_v0 = vpop.f32.mrb[81].mxu0 }
 0x1fd   :  { %v2467_v26 = vadd.f32 %v5325_v61, %v9620_v13  ;;  %v5372_v34 = vadd.f32 %v5371_v0, %v5370_v63  ;;  %v5326_v1 = vpop.f32.mrb[82].mxu1 }
 0x1fe   :  { %v5327_v3 = vpop.f32.mrb[83].mxu1 }
 0x1ff   :  { %v2557_v4 = vadd.f32 %v5372_v34, %v2467_v26  ;;  %v5328_v6 = vadd.f32 %v5327_v3, %v5326_v1  ;;  %v5373_v7 = vpop.f32.mrb[82].mxu0 }
 0x200   :  { %v5374_v8 = vpop.f32.mrb[83].mxu0 }
 0x201   :  { %v2472_v9 = vadd.f32 %v5328_v6, %v2382_v27  ;;  %v5375_v10 = vadd.f32 %v5374_v8, %v5373_v7  ;;  %v5329_v46 = vpop.f32.mrb[84].mxu1 }
 0x202   :  { %v5330_v11 = vpop.f32.mrb[85].mxu1 }
 0x203   :  { %v2562_v12 = vadd.f32 %v5375_v10, %v2472_v9  ;;  %v5331_v38 = vadd.f32 %v5330_v11, %v5329_v46  ;;  %v5376_v17 = vpop.f32.mrb[84].mxu0 }
 0x204   :  { %v5377_v18 = vpop.f32.mrb[85].mxu0 }
 0x205   :  { %v2477_v41 = vadd.f32 %v5331_v38, %v2387_v37  ;;  %v5378_v20 = vadd.f32 %v5377_v18, %v5376_v17  ;;  %v5332_v21 = vpop.f32.mrb[86].mxu1 }
 0x206   :  { %v5333_v15 = vpop.f32.mrb[87].mxu1 }
 0x207   :  { %v2567_v13 = vadd.f32 %v5378_v20, %v2477_v41  ;;  %v5334_v23 = vadd.f32 %v5333_v15, %v5332_v21  ;;  %v5379_v25 = vpop.f32.mrb[86].mxu0 }
 0x208   :  { %v5380_v28 = vpop.f32.mrb[87].mxu0 }
 0x209   :  { %v2482_v29 = vadd.f32 %v5334_v23, %v2392_v56  ;;  %v5381_v30 = vadd.f32 %v5380_v28, %v5379_v25  ;;  %v5335_v5 = vpop.f32.mrb[88].mxu1 }
 0x20a   :  { %v5336_v24 = vpop.f32.mrb[89].mxu1 }
 0x20b   :  { %v2572_v27 = vadd.f32 %v5381_v30, %v2482_v29  ;;  %v5337_v31 = vadd.f32 %v5336_v24, %v5335_v5  ;;  %v5382_v32 = vpop.f32.mrb[88].mxu0 }
 0x20c   :  { %v5383_v33 = vpop.f32.mrb[89].mxu0 }
 0x20d   :  { %v2487_v36 = vadd.f32 %v5337_v31, %v2397_v53  ;;  %v5384_v35 = vadd.f32 %v5383_v33, %v5382_v32 }
 0x20f   :  { %v2577_v62 = vadd.f32 %v5384_v35, %v2487_v36 }
 0x219   :  { %v5417_v39 = vpop.f32.mrb[90].mxu1 }
 0x21a   :  { %v5418_v37 = vpop.f32.mrb[91].mxu1 }
 0x21b   :  { %v5419_v59 = vadd.f32 %v5418_v37, %v5417_v39  ;;  %v5464_v40 = vpop.f32.mrb[90].mxu0 }
 0x21c   :  { %v5465_v42 = vpop.f32.mrb[91].mxu0 }
 0x21d   :  { %v2647_v2 = vadd.f32 %v5419_v59, %v2557_v4  ;;  %v5466_v43 = vadd.f32 %v5465_v42, %v5464_v40  ;;  %v5420_v44 = vpop.f32.mrb[92].mxu1 }
 0x21e   :  { %v5421_v47 = vpop.f32.mrb[93].mxu1 }
 0x21f   :  { %v2737_v56 = vadd.f32 %v5466_v43, %v2647_v2  ;;  %v5422_v45 = vadd.f32 %v5421_v47, %v5420_v44  ;;  %v5467_v48 = vpop.f32.mrb[92].mxu0 }
 0x220   :  { %v5468_v49 = vpop.f32.mrb[93].mxu0 }
 0x221   :  { %v2652_v51 = vadd.f32 %v5422_v45, %v2562_v12  ;;  %v5469_v52 = vadd.f32 %v5468_v49, %v5467_v48  ;;  %v5423_v22 = vpop.f32.mrb[94].mxu1  ;;  %v3174_v48 = vlaneseq }
 0x222   :  { %v5424_v54 = vpop.f32.mrb[95].mxu1 }
 0x223   :  { %v2742_v53 = vadd.f32 %v5469_v52, %v2652_v51  ;;  %v5425_v55 = vadd.f32 %v5424_v54, %v5423_v22  ;;  %v5470_v57 = vpop.f32.mrb[94].mxu0  ;;  %v9677_v52 = vand.u32 127, %v3174_v48 }
 0x224   :  { %v5471_v58 = vpop.f32.mrb[95].mxu0  ;;  %v3399_v22 = vpop.permute.xlu0 %3398 }
 0x225   :  { %v2657_v14 = vadd.f32 %v5425_v55, %v2567_v13  ;;  %v5472_v19 = vadd.f32 %v5471_v58, %v5470_v57  ;;  %v5426_v60 = vpop.f32.mrb[96].mxu1  ;;  %vm3445_vm9 = vcmp.eq.s32.totalorder %v9677_v52, %v3399_v22 }
 0x226   :  { %v5427_v61 = vpop.f32.mrb[97].mxu1  ;;  %v4521_v54 = vsel %vm3445_vm9, 1.0, %v6755_v16 }
 0x227   :  { %v2747_v63 = vadd.f32 %v5472_v19, %v2657_v14  ;;  %v5428_v0 = vadd.f32 %v5427_v61, %v5426_v60  ;;  %v5473_v26 = vpop.f32.mrb[96].mxu0 }
 0x228   :  { %v5474_v34 = vpop.f32.mrb[97].mxu0  ;;  %v3402_v55 = vpop.permute.xlu0 %3401 }
 0x229   :  { %v2662_v1 = vadd.f32 %v5428_v0, %v2572_v27  ;;  %v5475_v3 = vadd.f32 %v5474_v34, %v5473_v26  ;;  %v5429_v4 = vpop.f32.mrb[98].mxu1  ;;  %vm3446_vm11 = vcmp.eq.s32.totalorder %v9677_v52, %v3402_v55 }
 0x22a   :  { %v5430_v6 = vpop.f32.mrb[99].mxu1 }
 0x22b   :  { %v2752_v7 = vadd.f32 %v5475_v3, %v2662_v1  ;;  %v5431_v8 = vadd.f32 %v5430_v6, %v5429_v4  ;;  %v5476_v9 = vpop.f32.mrb[98].mxu0 }
 0x22c   :  { %v5477_v10 = vpop.f32.mrb[99].mxu0  ;;  %v3408_v58 = vpop.permute.xlu0 %3407 }
 0x22d   :  { %v2667_v46 = vadd.f32 %v5431_v8, %v2577_v62  ;;  %v5478_v11 = vadd.f32 %v5477_v10, %v5476_v9  ;;  %vm3448_vm14 = vcmp.eq.s32.totalorder %v9677_v52, %v3408_v58 }
 0x22f   :  { %v2757_v12 = vadd.f32 %v5478_v11, %v2667_v46  ;;  %v2916_v38 = vpop.f32.mrb[100].mxu0 }
 0x230   :  { %v5671_v17 = vpop.f32.mrb[101].mxu0  ;;  %v3414_v60 = vpop.permute.xlu0 %3413 }
 0x231   :  { %vm3450_vm0 = vcmp.eq.s32.totalorder %v9677_v52, %v3414_v60 }
 0x233   :  { %v2921_v18 = vpop.f32.mrb[102].mxu0 }
 0x234   :  { %v5674_v41 = vpop.f32.mrb[103].mxu0 }
 0x237   :  { %v2926_v20 = vpop.f32.mrb[104].mxu0 }
 0x238   :  { %v5677_v21 = vpop.f32.mrb[105].mxu0 }
 0x239   :  { %v5511_v15 = vpop.f32.mrb[100].mxu1 }
 0x23a   :  { %v5512_v13 = vpop.f32.mrb[101].mxu1 }
 0x23b   :  { %v5513_v23 = vadd.f32 %v5512_v13, %v5511_v15  ;;  %v2931_v25 = vpop.f32.mrb[106].mxu0 }
 0x23c   :  { %v5680_v28 = vpop.f32.mrb[107].mxu0 }
 0x23d   :  { %v5514_v29 = vpop.f32.mrb[102].mxu1  ;;  %v2827_v30 = vadd.f32 %v5513_v23, %v2737_v56  ;;  %v4522_v23 = vsel %vm3446_vm11, 1.0, %v6755_v16 }
 0x23e   :  { %v5515_v5 = vpop.f32.mrb[103].mxu1 }
 0x23f   :  { %v2917_v24 = vadd.f32 %v2916_v38, %v2827_v30  ;;  %v5516_v27 = vadd.f32 %v5515_v5, %v5514_v29  ;;  %v2936_v31 = vpop.f32.mrb[108].mxu0  ;;  %v4524_v30 = vsel %vm3448_vm14, 1.0, %v6755_v16 }
 0x240   :  { %v5683_v32 = vpop.f32.mrb[109].mxu0 }
 0x241   :  { %v5517_v33 = vpop.f32.mrb[104].mxu1  ;;  %v2832_v36 = vadd.f32 %v5516_v27, %v2742_v53  ;;  %5716 = vmatmul.mubr.msk.f32.vlgmr.msra.gmra.mrb[110].mxu1 %vm2951_vm7, %v2917_v24  ;;  %v3178_v53 = vpop.permute.xlu1 %3177 }
 0x242   :  { %v5518_v35 = vpop.f32.mrb[105].mxu1  ;;  %5718 = vmatprep.mubr.msk.f32.mxu1 %vm6757_vm5, %v6755_v16  ;;  %vm3179_vm10 = vcmp.eq.s32.totalorder %v9677_v52, %v3178_v53 }
 0x243   :  { %v2922_v62 = vadd.f32 %v2921_v18, %v2832_v36  ;;  %v5519_v39 = vadd.f32 %v5518_v35, %v5517_v33  ;;  %v4511_v13 = vsel %vm3179_vm10, 1.0, %v6755_v16 }
 0x245   :  { %v5520_v37 = vpop.f32.mrb[106].mxu1  ;;  %v2837_v59 = vadd.f32 %v5519_v39, %v2747_v63  ;;  %5719 = vmatmul.mubr.msk.f32.gmra.mrb[112].mxu1 %vm2951_vm7, %v2922_v62  ;;  %v3405_v57 = vpop.permute.xlu1 %3404  ;;  %v4499_v63 = vld [vmem:[%s9896_s6] ss:$0 sm:$0xff] }
 0x246   :  { %v5521_v40 = vpop.f32.mrb[107].mxu1  ;;  %5721 = vmatprep.mubr.msk.f32.mxu1 %vm6757_vm5, %v6755_v16  ;;  %vm3447_vm13 = vcmp.eq.s32.totalorder %v9677_v52, %v3405_v57 }
 0x247   :  { %v2927_v42 = vadd.f32 %v2926_v20, %v2837_v59  ;;  %v5522_v2 = vadd.f32 %v5521_v40, %v5520_v37  ;;  %v3417_v4 = vpop.permute.xlu0 %3416  ;;  %v4523_v28 = vsel %vm3447_vm13, 1.0, %v6755_v16 }
 0x248   :  { %vm3451_vm1 = vcmp.eq.s32.totalorder %v9677_v52, %v3417_v4 }
 0x249   :  { %v5523_v43 = vpop.f32.mrb[108].mxu1  ;;  %v2842_v44 = vadd.f32 %v5522_v2, %v2752_v7  ;;  %5722 = vmatmul.mubr.msk.f32.gmra.mrb[114].mxu1 %vm2951_vm7, %v2927_v42  ;;  %v3411_v14 = vpop.permute.xlu1 %3410  ;;  %v4527_v32 = vsel %vm3451_vm1, 1.0, %v6755_v16 }
 0x24a   :  { %v5524_v47 = vpop.f32.mrb[109].mxu1  ;;  %5724 = vmatprep.mubr.msk.f32.mxu1 %vm6757_vm5, %v6755_v16  ;;  %vm3449_vm15 = vcmp.eq.s32.totalorder %v9677_v52, %v3411_v14 }
 0x24b   :  { %v2932_v56 = vadd.f32 %v2931_v25, %v2842_v44  ;;  %v5525_v45 = vadd.f32 %v5524_v47, %v5523_v43  ;;  %v3420_v46 = vpop.permute.xlu0 %3419  ;;  %v4525_v24 = vsel %vm3449_vm15, 1.0, %v6755_v16 }
 0x24c   :  { %vm3452_vm2 = vcmp.eq.s32.totalorder %v9677_v52, %v3420_v46 }
 0x24d   :  { %5725 = vmatmul.mubr.msk.f32.gmra.mrb[116].mxu1 %vm2951_vm7, %v2932_v56  ;;  %v2847_v49 = vadd.f32 %v5525_v45, %v2757_v12  ;;  %v3262_v0 = vpop.permute.xlu1 %3261  ;;  %v4528_v36 = vsel %vm3452_vm2, 1.0, %v6755_v16 }
 0x24e   :  { %5727 = vmatprep.mubr.msk.f32.mxu1 %vm6757_vm5, %v6755_v16  ;;  %vm3272_vm12 = vcmp.eq.s32.totalorder %v9677_v52, %v3262_v0 }
 0x24f   :  { %v2937_v51 = vadd.f32 %v2936_v31, %v2847_v49  ;;  %v3423_v15 = vpop.permute.xlu0 %3422  ;;  %v4513_v25 = vsel %vm3272_vm12, 1.0, %v6755_v16  ;;  %v4526_v31 = vsel %vm3450_vm0, 1.0, %v6755_v16 }
 0x250   :  { %vm3453_vm3 = vcmp.eq.s32.totalorder %v9677_v52, %v3423_v15 }
 0x251   :  { %5728 = vmatmul.mubr.msk.f32.gmra.mrb[118].mxu1 %vm2951_vm7, %v2937_v51  ;;  %v9686_v9 = vpop.permute.xlu1 %3264  ;;  %v4529_v35 = vsel %vm3453_vm3, 1.0, %v6755_v16  ;;  %v4505_v51 = vld [vmem:[%s9898_s8] ss:$0 sm:$0xff] }
 0x252   :  { %5769 = vmatprep.mubr.msk.f32.mxu1 %vm3182_vm8, %v4521_v54  ;;  %vm3273_vm14 = vcmp.eq.s32.totalorder %v9677_v52, %v9686_v9 }
 0x253   :  { %v3426_v5 = vpop.permute.xlu0 %3425 }
 0x254   :  { %vm3454_vm4 = vcmp.eq.s32.totalorder %v9677_v52, %v3426_v5 }
 0x255   :  { %v9689_v18 = vpop.permute.xlu1 %3267  ;;  %v4530_v39 = vsel %vm3454_vm4, 1.0, %v6755_v16 }
 0x256   :  { %vm3274_vm15 = vcmp.eq.s32.totalorder %v9677_v52, %v9689_v18 }
 0x257   :  { %v3432_v33 = vpop.permute.xlu0 %3431  ;;  %v4515_v4 = vsel %vm3274_vm15, 1.0, %v6755_v16 }
 0x258   :  { %vm3456_vm9 = vcmp.eq.s32.totalorder %v9677_v52, %v3432_v33 }
 0x259   :  { %v9701_v29 = vpop.permute.xlu1 %3270  ;;  %v4532_v42 = vsel %vm3456_vm9, 1.0, %v6755_v16 }
 0x25a   :  { %vm3275_vm0 = vcmp.eq.s32.totalorder %v9677_v52, %v9701_v29  ;;  %v6759_v29 = vmov 1.0  }
 0x25b   :  { %v3438_v37 = vpop.permute.xlu0 %3437 }
 0x25c   :  { %vm3458_vm11 = vcmp.eq.s32.totalorder %v9677_v52, %v3438_v37 }
 0x25d   :  { %v3429_v27 = vpop.permute.xlu1 %3428  ;;  %v4534_v44 = vsel %vm3458_vm11, 1.0, %v6755_v16 }
 0x25e   :  { %vm3455_vm6 = vcmp.eq.s32.totalorder %v9677_v52, %v3429_v27 }
 0x25f   :  { %v4531_v59 = vsel %vm3455_vm6, 1.0, %v6755_v16 }
 0x261   :  { %v3435_v62 = vpop.permute.xlu1 %3434 }
 0x262   :  { %vm3457_vm10 = vcmp.eq.s32.totalorder %v9677_v52, %v3435_v62 }
 0x263   :  { %v4533_v2 = vsel %vm3457_vm10, 1.0, %v6755_v16 }
 0x265   :  { %v3441_v40 = vpop.permute.xlu1 %3440 }
 0x266   :  { %vm3459_vm12 = vcmp.eq.s32.totalorder %v9677_v52, %v3441_v40 }
 0x267   :  { %v4535_v47 = vsel %vm3459_vm12, 1.0, %v6755_v16 }
 0x26d   :  { %v3444_v43 = vpop.permute.xlu0 %3443 }
 0x26e   :  { %vm3460_vm13 = vcmp.eq.s32.totalorder %v9677_v52, %v3444_v43 }
 0x26f   :  { %v4536_v56 = vsel %vm3460_vm13, 1.0, %v6755_v16 }
 0x290   :  { %v3033_v19 = vpop.f32.mrb[110].mxu0 }
 0x291   :  { %v5694_v61 = vpop.f32.mrb[111].mxu0  ;;  %v3034_v34 = vadd.f32 %v4499_v63, %v3033_v19 }
 0x294   :  { %v3038_v26 = vpop.f32.mrb[112].mxu0 }
 0x295   :  { %v3039_v1 = vadd.f32 %v4499_v63, %v3038_v26  ;;  %v5697_v3 = vpop.f32.mrb[113].mxu0 }
 0x296   :  { %v4514_v3 = vsel %vm3273_vm14, 1.0, %v6755_v16 }
 0x297   :  { %v6612_v6 = vpack.c.bf16 %v3039_v1, %v3034_v34 }
 0x298   :  { %v3043_v7 = vpop.f32.mrb[114].mxu0 }
 0x299   :  { %v5700_v8 = vpop.f32.mrb[115].mxu0  ;;  %6613 = vmatpush3.bf16.msra.mxu0 %v6612_v6  ;;  %6626 = vmatprep.subr.bf16.mxu1 %v6612_v6  ;;  %v3044_v11 = vadd.f32 %v4499_v63, %v3043_v7 }
 0x29a   :  { %6628 = vmatpush3.bf16.msra.mxu1 %v6612_v6  ;;  %6614 = vmatprep.subr.bf16.mxu0 %v6754_v50  ;;  %v4516_v6 = vsel %vm3275_vm0, 1.0, %v6755_v16 }
 0x29c   :  { %v3048_v10 = vpop.f32.mrb[116].mxu0 }
 0x29d   :  { %v3049_v12 = vadd.f32 %v4499_v63, %v3048_v10  ;;  %v5703_v38 = vpop.f32.mrb[117].mxu0 }
 0x29f   :  { %v6615_v17 = vpack.c.bf16 %v3049_v12, %v3044_v11 }
 0x2a0   :  { %v3053_v41 = vpop.f32.mrb[118].mxu0 }
 0x2a1   :  { %v3054_v20 = vadd.f32 %v4499_v63, %v3053_v41  ;;  %v5706_v21 = vpop.f32.mrb[119].mxu0  ;;  %6616 = vmatpush3.bf16.msra.mxu0 %v6615_v17  ;;  %6630 = vmatprep.subr.bf16.mxu1 %v6615_v17 }
 0x2a2   :  { %6632 = vmatpush3.bf16.msra.mxu1 %v6615_v17  ;;  %5738 = vmatprep.subr.mxu0 %v6755_v16  ;;  %v3687_v17 = vshrl.u32 %v3174_v48, 7 }
 0x2a3   :  { %5767 = vmatprep.subr.mxu1 %v3054_v20 }
 0x2a4   :  { %v3688_v41 = vmul.u32 4, %v3687_v17  ;;  %v3696_v27 = vadd.s32 16, %v3687_v17 }
 0x2a5   :  { %5739 = vmatpush3.msra.mxu0 %v3054_v20 }
 0x2a6   :  { %5768 = vmatpush3.msra.mxu1 %v3054_v20  ;;  %5741 = vmatmul.mubr.msk.f32.vlgmr.msra.gmra.mrb[120].mxu0 %vm3182_vm8, %v4511_v13  ;;  %v3690_v15 = vadd.s32 4, %v3688_v41  ;;  %v3699_v62 = vmul.u32 4, %v3696_v27 }
 0x2a7   :  { %5770 = vmatmul.mubr.msk.f32.vlgmr.msra.gmra.mrb[120].mxu1 %vm3182_vm8, %v4522_v23  ;;  %5753 = vmatprep.mubr.msk.f32.mxu0 %vm3182_vm8, %v4513_v25 }
 0x2a8   :  { %5772 = vmatprep.mubr.msk.f32.mxu1 %vm3182_vm8, %v4523_v28  ;;  %vm3691_vm1 = vcmp.lt.s32.totalorder %v9677_v52, %v3690_v15  ;;  %vm3702_vm6 = vcmp.ge.s32.totalorder %v9677_v52, %v3699_v62 }
 0x2ab   :  { %5773 = vmatmul.mubr.msk.f32.gmra.mrb[122].mxu1 %vm3182_vm8, %v4524_v30 }
 0x2ac   :  { %5775 = vmatprep.mubr.msk.f32.mxu1 %vm3182_vm8, %v4525_v24  ;;  %v3695_v24 = vadd.s32 8, %v3687_v17 }
 0x2af   :  { %5776 = vmatmul.mubr.msk.f32.gmra.mrb[124].mxu1 %vm3182_vm8, %v4526_v31 }
 0x2b0   :  { %5778 = vmatprep.mubr.msk.f32.mxu1 %vm3182_vm8, %v4527_v32 }
 0x2b3   :  { %5779 = vmatmul.mubr.msk.f32.gmra.mrb[126].mxu1 %vm3182_vm8, %v4528_v36  ;;  %v3698_v36 = vmul.u32 4, %v3695_v24 }
 0x2b4   :  { %5781 = vmatprep.mubr.msk.f32.mxu1 %vm3182_vm8, %v4529_v35  ;;  %v3697_v35 = vadd.s32 24, %v3687_v17 }
 0x2b5   :  { %v3704_v40 = vadd.s32 4, %v3698_v36  ;;  %vm3701_vm3 = vcmp.ge.s32.totalorder %v9677_v52, %v3698_v36 }
 0x2b7   :  { %5782 = vmatmul.mubr.msk.f32.gmra.mrb[128].mxu1 %vm3182_vm8, %v4530_v39  ;;  %vm3707_vm4 = vcmp.lt.s32.totalorder %v9677_v52, %v3704_v40 }
 0x2b8   :  { %5784 = vmatprep.mubr.msk.f32.mxu1 %vm3182_vm8, %v4531_v59  ;;  %vm3710_vm10 = vmand %vm3701_vm3, %vm3707_vm4 }
 0x2bb   :  { %5785 = vmatmul.mubr.msk.f32.gmra.mrb[130].mxu1 %vm3182_vm8, %v4532_v42  ;;  %v3700_v42 = vmul.u32 4, %v3697_v35  ;;  %v4576_v35 = vld [vmem:[%s9899_s9 + $0x30] sm:$0xff] }
 0x2bc   :  { %5787 = vmatprep.mubr.msk.f32.mxu1 %vm3182_vm8, %v4533_v2  ;;  %v3705_v2 = vadd.s32 4, %v3699_v62  ;;  %v4577_v62 = vld [vmem:[%s9899_s9 + $0x38] sm:$0xff] }
 0x2bd   :  { %vm3703_vm12 = vcmp.ge.s32.totalorder %v9677_v52, %v3700_v42 }
 0x2be   :  { %vm3708_vm9 = vcmp.lt.s32.totalorder %v9677_v52, %v3705_v2 }
 0x2bf   :  { %5788 = vmatmul.mubr.msk.f32.gmra.mrb[132].mxu1 %vm3182_vm8, %v4534_v44  ;;  %vm3711_vm11 = vmand %vm3702_vm6, %vm3708_vm9 }
 0x2c0   :  { %5790 = vmatprep.mubr.msk.f32.mxu1 %vm3182_vm8, %v4535_v47 }
 0x2c3   :  { %5791 = vmatmul.mubr.msk.f32.gmra.mrb[134].mxu1 %vm3182_vm8, %v4536_v56  ;;  %v3706_v56 = vadd.s32 4, %v3700_v42 }
 0x2c5   :  { %vm3709_vm13 = vcmp.lt.s32.totalorder %v9677_v52, %v3706_v56 }
 0x2c6   :  { %vm3712_vm14 = vmand %vm3703_vm12, %vm3709_vm13 }
 0x314   :  { %v3149_v45 = vpop.f32.mrb[110].mxu1 }
 0x315   :  { %v5717_v49 = vpop.f32.mrb[111].mxu1  ;;  %v3150_v54 = vadd.f32 %v4505_v51, %v3149_v45 }
 0x318   :  { %v3154_v22 = vpop.f32.mrb[112].mxu1 }
 0x319   :  { %v3155_v53 = vadd.f32 %v4505_v51, %v3154_v22  ;;  %v5720_v55 = vpop.f32.mrb[113].mxu1 }
 0x31b   :  { %v6617_v57 = vpack.c.bf16 %v3155_v53, %v3150_v54  ;;  %v3797_v53 = vld [vmem:[%s9900_s10 + $0x8] sm:$0xff] }
 0x31c   :  { %v3159_v58 = vpop.f32.mrb[114].mxu1 }
 0x31d   :  { %v5723_v14 = vpop.f32.mrb[115].mxu1  ;;  %6618 = vmatprep.subr.bf16.mxu0 %v6617_v57  ;;  %v3160_v60 = vadd.f32 %v4505_v51, %v3159_v58 }
 0x31e   :  { %6620 = vmatpush3.bf16.msra.mxu0 %v6617_v57  ;;  %v3798_v14 = vld [vmem:[%s9900_s10 + $0x10] sm:$0xff] }
 0x320   :  { %v3164_v19 = vpop.f32.mrb[116].mxu1 }
 0x321   :  { %v3165_v61 = vadd.f32 %v4505_v51, %v3164_v19  ;;  %v5726_v63 = vpop.f32.mrb[117].mxu1  ;;  %v3799_v19 = vld [vmem:[%s9900_s10 + $0x18] sm:$0xff] }
 0x323   :  { %v6621_v0 = vpack.c.bf16 %v3165_v61, %v3160_v60  ;;  %v6643_v60 = vpack.c.bf16 %v3799_v19, %v3798_v14 }
 0x324   :  { %v3169_v26 = vpop.f32.mrb[118].mxu1 }
 0x325   :  { %v3170_v34 = vadd.f32 %v4505_v51, %v3169_v26  ;;  %v5729_v1 = vpop.f32.mrb[119].mxu1  ;;  %6622 = vmatprep.subr.bf16.mxu0 %v6621_v0 }
 0x326   :  { %6624 = vmatpush3.bf16.msra.mxu0 %v6621_v0  ;;  %v3793_v1 = vld [vmem:[%s9899_s9 + $0x8] sm:$0xff] }
 0x327   :  { %5751 = vmatprep.subr.mxu0 %v3170_v34 }
 0x32a   :  { %5752 = vmatpush3.msra.mxu0 %v3170_v34  ;;  %v3792_v34 = vld [vmem:[%s9899_s9] sm:$0xff] }
 0x32b   :  { %5754 = vmatmul.mubr.msk.f32.vlgmr.msra.gmra.mrb[122].mxu0 %vm3182_vm8, %v4514_v3  ;;  %6633 = vmatprep.subr.bf16.mxu0 %v6754_v50  ;;  %v6646_v3 = vpack.c.bf16 %v3793_v1, %v3792_v34 }
 0x32c   :  { %5756 = vmatprep.mubr.msk.f32.mxu0 %vm3182_vm8, %v4515_v4  ;;  %v3794_v4 = vld [vmem:[%s9899_s9 + $0x10] sm:$0xff] }
 0x32f   :  { %5757 = vmatmul.mubr.msk.f32.gmra.mrb[124].mxu0 %vm3182_vm8, %v4516_v6  ;;  %vm3689_vm8 = vcmp.ge.s32.totalorder %v9677_v52, %v3688_v41  ;;  %v3796_v52 = vld [vmem:[%s9900_s10] sm:$0xff]  ;;  %v3795_v6 = vld [vmem:[%s9899_s9 + $0x18] sm:$0xff] }
 0x330   :  { %5801 = vmatprep.mubr.msk.f32.mxu0 %vm6757_vm5, %v6755_v16  ;;  %vm9768_vm2 = vmand %vm3689_vm8, %vm3691_vm1  ;;  %v6640_v58 = vpack.c.bf16 %v3797_v53, %v3796_v52 }
 0x331   :  { %5858 = vmatprep.mubr.msk.f32.mxu1 %vm9768_vm2, %v6759_v29  ;;  %v9793_v57 = vsel %vm9768_vm2, 1.0, %v6755_v16 }
 0x379   :  { %v9763_v7 = vpop.f32.mrb[120].mxu0 }
 0x37a   :  { %v5771_v8 = vpop.f32.mrb[120].mxu1  ;;  %v5742_v9 = vpop.f32.mrb[121].mxu0 }
 0x37b   :  { %v3607_v10 = vpop.f32.mrb[121].mxu1 }
 0x37c   :  { %v6651_v46 = vpack.c.bf16 %v5771_v8, %v3607_v10  ;;  %v6649_v10 = vpack.c.bf16 %v3795_v6, %v3794_v4 }
 0x37e   :  { %v5774_v11 = vpop.f32.mrb[122].mxu1  ;;  %6652 = vmatprep.subr.bf16.mxu1 %v6651_v46 }
 0x37f   :  { %v3617_v12 = vpop.f32.mrb[123].mxu1  ;;  %6654 = vmatpush3.bf16.msra.mxu1 %v6651_v46  ;;  %v4579_v46 = vld [vmem:[%s9900_s10 + $0x28] sm:$0xff] }
 0x380   :  { %v6655_v38 = vpack.c.bf16 %v5774_v11, %v3617_v12  ;;  %v4580_v11 = vld [vmem:[%s9900_s10 + $0x30] sm:$0xff] }
 0x382   :  { %v5777_v18 = vpop.f32.mrb[124].mxu1  ;;  %6656 = vmatprep.subr.bf16.mxu1 %v6655_v38 }
 0x383   :  { %v3627_v20 = vpop.f32.mrb[125].mxu1  ;;  %6658 = vmatpush3.bf16.msra.mxu1 %v6655_v38  ;;  %v4581_v38 = vld [vmem:[%s9900_s10 + $0x38] sm:$0xff] }
 0x384   :  { %v6659_v21 = vpack.c.bf16 %v5777_v18, %v3627_v20  ;;  %v6709_v17 = vpack.c.bf16 %v4581_v38, %v4580_v11 }
 0x386   :  { %v5780_v13 = vpop.f32.mrb[126].mxu1  ;;  %6660 = vmatprep.subr.bf16.mxu1 %v6659_v21 }
 0x387   :  { %v3637_v23 = vpop.f32.mrb[127].mxu1  ;;  %6662 = vmatpush3.bf16.msra.mxu1 %v6659_v21 }
 0x388   :  { %v6663_v25 = vpack.c.bf16 %v5780_v13, %v3637_v23  ;;  %v4560_v13 = vld [vmem:[%s9901_s11] ss:$0 sm:$0xff] }
 0x38a   :  { %v5783_v48 = vpop.f32.mrb[128].mxu1  ;;  %6664 = vmatprep.subr.bf16.mxu1 %v6663_v25 }
 0x38b   :  { %v3647_v30 = vpop.f32.mrb[129].mxu1  ;;  %6666 = vmatpush3.bf16.msra.mxu1 %v6663_v25 }
 0x38c   :  { %v6667_v5 = vpack.c.bf16 %v5783_v48, %v3647_v30 }
 0x38e   :  { %v5786_v31 = vpop.f32.mrb[130].mxu1  ;;  %6668 = vmatprep.subr.bf16.mxu1 %v6667_v5 }
 0x38f   :  { %v3657_v32 = vpop.f32.mrb[131].mxu1  ;;  %6670 = vmatpush3.bf16.msra.mxu1 %v6667_v5 }
 0x390   :  { %v6671_v33 = vpack.c.bf16 %v5786_v31, %v3657_v32  ;;  %v4574_v31 = vld [vmem:[%s9899_s9 + $0x20] sm:$0xff]  ;;  %v4575_v32 = vld [vmem:[%s9899_s9 + $0x28] sm:$0xff] }
 0x391   :  { %v6712_v36 = vpack.c.bf16 %v4575_v32, %v4574_v31 }
 0x392   :  { %v5789_v39 = vpop.f32.mrb[132].mxu1  ;;  %6672 = vmatprep.subr.bf16.mxu1 %v6671_v33 }
 0x393   :  { %v3667_v37 = vpop.f32.mrb[133].mxu1  ;;  %6674 = vmatpush3.bf16.msra.mxu1 %v6671_v33 }
 0x394   :  { %v6675_v59 = vpack.c.bf16 %v5789_v39, %v3667_v37  ;;  %v6715_v39 = vpack.c.bf16 %v4577_v62, %v4576_v35 }
 0x396   :  { %v5792_v43 = vpop.f32.mrb[134].mxu1  ;;  %6676 = vmatprep.subr.bf16.mxu1 %v6675_v59 }
 0x397   :  { %v3677_v44 = vpop.f32.mrb[135].mxu1  ;;  %6678 = vmatpush3.bf16.msra.mxu1 %v6675_v59 }
 0x398   :  { %v6679_v47 = vpack.c.bf16 %v5792_v43, %v3677_v44  ;;  %v4585_v44 = vld [vmem:[%s9901_s11 + $0x1] ss:$0 sm:$0xff] }
 0x39a   :  { %6680 = vmatprep.subr.bf16.mxu1 %v6679_v47 }
 0x39b   :  { %6682 = vmatpush3.bf16.msra.mxu1 %v6679_v47 }
 0x39c   :  { %6699 = vmatprep.subr.bf16.mxu1 %v6754_v50 }
 0x39e   :  { %5859 = vmatmul.mubr.msk.f32.vlgmr.msra.gmra.mrb[136].mxu1 %vm3710_vm10, %v6759_v29 }
 0x39f   :  { %5861 = vmatprep.mubr.msk.f32.mxu1 %vm3711_vm11, %v6759_v29 }
 0x3a2   :  { %5862 = vmatmul.mubr.msk.f32.gmra.mrb[138].mxu1 %vm3712_vm14, %v6759_v29 }
 0x3a3   :  { %5900 = vmatprep.mubr.msk.f32.mxu1 %vm6757_vm5, %v6755_v16 }
 0x3fe   :  { %v5755_v45 = vpop.f32.mrb[122].mxu0 }
 0x3ff   :  { %v3362_v49 = vpop.f32.mrb[123].mxu0 }
 0x400   :  { %v6634_v51 = vpack.c.bf16 %v5755_v45, %v3362_v49 }
 0x402   :  { %v5758_v22 = vpop.f32.mrb[124].mxu0  ;;  %6635 = vmatpush3.bf16.msra.mxu0 %v6634_v51 }
 0x403   :  { %v3372_v54 = vpop.f32.mrb[125].mxu0  ;;  %6636 = vmatprep.subr.bf16.mxu0 %v6754_v50 }
 0x404   :  { %v6637_v55 = vpack.c.bf16 %v5758_v22, %v3372_v54 }
 0x406   :  { %6638 = vmatpush3.bf16.msra.mxu0 %v6637_v55 }
 0x407   :  { %6639 = vmatprep.subr.bf16.mxu0 %v6754_v50 }
 0x409   :  { %5802 = vmatmul.mubr.msk.f32.vlgmr.msra.gmra.mrb[126].mxu0 %vm2951_vm7, %v9793_v57 }
 0x40a   :  { %6641 = vmatpush3.bf16.msra.mxu0 %v6640_v58  ;;  %5812 = vmatprep.mubr.msk.f32.mxu0 %vm6757_vm5, %v6755_v16 }
 0x40b   :  { %6642 = vmatprep.subr.bf16.mxu0 %v6754_v50 }
 0x40e   :  { %6644 = vmatpush3.bf16.msra.mxu0 %v6643_v60 }
 0x40f   :  { %6645 = vmatprep.subr.bf16.mxu0 %v6754_v50 }
 0x471   :  { %v5860_v61 = vpop.f32.mrb[136].mxu1 }
 0x472   :  { %v4020_v63 = vpop.f32.mrb[137].mxu1 }
 0x475   :  { %v5863_v0 = vpop.f32.mrb[138].mxu1 }
 0x476   :  { %v4030_v26 = vpop.f32.mrb[139].mxu1 }
 0x4dc   :  { %v3788_v8 = vpop.f32.mrb[126].mxu0 }
 0x4dd   :  { %v5803_v9 = vpop.f32.mrb[127].mxu0  ;;  %5813 = vmatmul.mubr.msk.f32.vlgmr.msra.gmra.mrb[128].mxu0 %vm2951_vm7, %v3788_v8 }
 0x4de   :  { %6647 = vmatpush3.bf16.msra.mxu0 %v6646_v3  ;;  %5823 = vmatprep.mubr.msk.f32.mxu0 %vm6757_vm5, %v6755_v16 }
 0x4df   :  { %6648 = vmatprep.subr.bf16.mxu0 %v6754_v50 }
 0x4e2   :  { %6650 = vmatpush3.bf16.msra.mxu0 %v6649_v10 }
 0x4e3   :  { %6684 = vmatprep.subr.bf16.mxu0 %v6640_v58 }
 0x4e5   :  { %5824 = vmatmul.mubr.msk.f32.vlgmr.msra.gmra.mrb[130].mxu0 %vm2951_vm7, %v9763_v7  ;;  %v4578_v7 = vld [vmem:[%s9900_s10 + $0x20] sm:$0xff] }
 0x4e6   :  { %6686 = vmatpush3.bf16.msra.mxu0 %v6640_v58  ;;  %5872 = vmatprep.mubr.msk.f32.mxu0 %vm2951_vm7, %v4020_v63  ;;  %v6706_v12 = vpack.c.bf16 %v4579_v46, %v4578_v7 }
 0x4e7   :  { %6688 = vmatprep.subr.bf16.mxu0 %v6643_v60 }
 0x4ea   :  { %6690 = vmatpush3.bf16.msra.mxu0 %v6643_v60 }
 0x4eb   :  { %6692 = vmatprep.subr.bf16.mxu0 %v6646_v3 }
 0x4ed   :  { %5873 = vmatmul.mubr.msk.f32.vlgmr.msra.gmra.mrb[132].mxu0 %vm2951_vm7, %v5860_v61 }
 0x4ee   :  { %6694 = vmatpush3.bf16.msra.mxu0 %v6646_v3  ;;  %5875 = vmatprep.mubr.msk.f32.mxu0 %vm2951_vm7, %v4030_v26 }
 0x4ef   :  { %6696 = vmatprep.subr.bf16.mxu0 %v6649_v10 }
 0x4f1   :  { %5876 = vmatmul.mubr.msk.f32.gmra.mrb[134].mxu0 %vm2951_vm7, %v5863_v0 }
 0x4f2   :  { %6698 = vmatpush3.bf16.msra.mxu0 %v6649_v10  ;;  %5886 = vmatprep.mubr.msk.f32.mxu0 %vm2951_vm7, %v3362_v49 }
 0x4f3   :  { %6705 = vmatprep.subr.bf16.mxu0 %v6754_v50 }
 0x4f5   :  { %5887 = vmatmul.mubr.msk.f32.vlgmr.msra.gmra.mrb[132].mxu0 %vm2951_vm7, %v5755_v45 }
 0x4f6   :  { %5889 = vmatprep.mubr.msk.f32.mxu0 %vm2951_vm7, %v3372_v54  ;;  %6707 = vmatpush3.bf16.msra.mxu0 %v6706_v12 }
 0x4f7   :  { %6708 = vmatprep.subr.bf16.mxu0 %v6754_v50 }
 0x4f9   :  { %5890 = vmatmul.mubr.msk.f32.gmra.mrb[134].mxu0 %vm2951_vm7, %v5758_v22 }
 0x4fa   :  { %5911 = vmatprep.mubr.msk.f32.mxu0 %vm6757_vm5, %v6755_v16  ;;  %6710 = vmatpush3.bf16.msra.mxu0 %v6709_v17 }
 0x5b0   :  { %v3869_v18 = vpop.f32.mrb[128].mxu0 }
 0x5b1   :  { %v5814_v41 = vpop.f32.mrb[129].mxu0 }
 0x5b8   :  { %v3942_v20 = vpop.f32.mrb[130].mxu0 }
 0x5b9   :  { %v3943_v21 = vadd.f32 %v3942_v20, %v3869_v18  ;;  %v5825_v15 = vpop.f32.mrb[131].mxu0 }
 0x5bb   :  { %v3953_v37 = vadd.f32 %v4560_v13, %v3943_v21 }
 0x5c8   :  { %v5888_v23 = vpop.f32.mrb[132].mxu0 }
 0x5c9   :  { %v4234_v25 = vadd.f32 %v5888_v23, %v4560_v13  ;;  %v4214_v28 = vpop.f32.mrb[133].mxu0 }
 0x5ca   :  { %v4233_v48 = vadd.f32 %v4560_v13, %v4214_v28 }
 0x5cc   :  { %v6700_v29 = vpack.c.bf16 %v4234_v25, %v4233_v48  ;;  %v5891_v30 = vpop.f32.mrb[134].mxu0 }
 0x5cd   :  { %v4236_v5 = vadd.f32 %v5891_v30, %v4560_v13  ;;  %v4224_v24 = vpop.f32.mrb[135].mxu0 }
 0x5ce   :  { %v4235_v27 = vadd.f32 %v4560_v13, %v4224_v24  ;;  %6701 = vmatpush3.bf16.msra.mxu1 %v6700_v29 }
 0x5cf   :  { %6702 = vmatprep.subr.bf16.mxu1 %v6754_v50 }
 0x5d0   :  { %v6703_v33 = vpack.c.bf16 %v4236_v5, %v4235_v27 }
 0x5d2   :  { %6704 = vmatpush3.bf16.msra.mxu1 %v6703_v33 }
 0x5d3   :  { %6711 = vmatprep.subr.bf16.mxu1 %v6754_v50 }
 0x5d5   :  { %5901 = vmatmul.mubr.msk.f32.vlgmr.msra.gmra.mrb[140].mxu1 %vm2951_vm7, %v9793_v57 }
 0x5d6   :  { %6713 = vmatpush3.bf16.msra.mxu1 %v6712_v36  ;;  %5922 = vmatprep.mubr.msk.f32.mxu1 %vm6757_vm5, %v6755_v16 }
 0x5d7   :  { %6714 = vmatprep.subr.bf16.mxu1 %v6754_v50 }
 0x5da   :  { %6716 = vmatpush3.bf16.msra.mxu1 %v6715_v39 }
 0x5dd   :  { %5923 = vmatmul.mubr.msk.f32.vlgmr.msra.gmra.mrb[142].mxu1 %vm2951_vm7, %v3953_v37 }
 0x6a8   :  { %v4303_v59 = vpop.f32.mrb[140].mxu1 }
 0x6a9   :  { %v5902_v40 = vpop.f32.mrb[141].mxu1  ;;  %5912 = vmatmul.mubr.msk.f32.vlgmr.msra.gmra.mrb[136].mxu0 %vm2951_vm7, %v4303_v59 }
 0x6b0   :  { %v4459_v42 = vpop.f32.mrb[142].mxu1 }
 0x6b1   :  { %v5924_v2 = vpop.f32.mrb[143].mxu1 }
 0x77c   :  { %v4386_v43 = vpop.f32.mrb[136].mxu0 }
 0x77d   :  { %v4460_v16 = vadd.f32 %v4459_v42, %v4386_v43  ;;  %v5913_v47 = vpop.f32.mrb[137].mxu0 }
 0x77f   :  { %v4471_v50 = vadd.f32 %v4585_v44, %v4460_v16 }
 0x781   :  { %4472 = vst.msk [vmem:[#allocation2] sm:$0xff] %vm2951_vm7, %v4471_v50 }
 0x782   :  { %6741 = shalt.err (!%p6738_p4)
}
 0x783   :  { %s6742_s25 = scalar_lea.hbm %s9902_s12, 128 }
 0x784   :  { %p6743_p5 = scmp.ne.s32.totalorder %s9902_s12, %s6742_s25  ;;  %p6746_p6 = scmp.lt.u32.totalorder %s6742_s25, %s9902_s12 }
 0x786   :  { %p6748_p7 = pnand %p6746_p6, %p6743_p5 }
 0x788   :  { %6751 = shalt.err (!%p6748_p7)
}
 0x789   :  { %4482 = dma.vmem_to_hbm [thread:$0]  %s4480_s21, 128, %s9902_s12, [#allocation3]  }
 0x78a   :  { %6752 = dma.done.wait [#allocation3], 128  }
 0x78b   :  { %6753 = vsyncadd [#allocation3], 4294967168 }
 0x78c   :  { %4486 = vsyncpa [#allocation3], 1 }

</bundles_post_ra>
